<compile_context>
chip_gen: v7x
topology: tpu7x:2x2x1
jax: 0.10.0
libtpu: 0.0.40
codegen_flags: <defaults>
</compile_context>

<pallas_src>
import functools
import math

import jax
import jax.numpy as jnp
from jax.experimental import pallas as pl
from jax.experimental.pallas import tpu as pltpu


# ----------------------------------------------------------------------------- kernel
def reghead_kernel(x_ref, mask_ref, w1t_ref, b1_ref, wht_ref, bh_ref,
                   out_ref, patch_ref, *, C, S, shifts, eps):
    """One batch sample: conv1 + LeakyReLU + InstanceNorm + fused mean/sigma heads."""

    def build_patches(act):
        # act: (C, S).  For tap k, the zero-padded 'same' shifted volume equals a lane
        # rotation of the flat volume with out-of-bounds positions masked to zero.
        for k, sh in enumerate(shifts):
            rolled = act if sh == 0 else pltpu.roll(act, sh, axis=1)
            patch_ref[k * C:(k + 1) * C, :] = rolled * mask_ref[k:k + 1, :]

    x_flat = x_ref[...]                                           # (C, S)

    # ---- Conv3d(C -> C, k=3, padding='same'): single im2col matmul on the MXU
    build_patches(x_flat)
    y = jnp.dot(w1t_ref[...], patch_ref[...],
                preferred_element_type=jnp.float32) + b1_ref[...]  # (C, S)

    # ---- LeakyReLU(0.2)
    y = jnp.where(y >= 0, y, 0.2 * y)

    # ---- InstanceNorm3d (per channel, biased variance over the spatial axis, no affine)
    mu = jnp.mean(y, axis=1, keepdims=True)
    var = jnp.mean((y - mu) ** 2, axis=1, keepdims=True)
    xn = (y - mu) * jax.lax.rsqrt(var + eps)                      # (C, S)

    # ---- mean_head & sigma_head fused: single (6, 27C) x (27C, S) matmul
    build_patches(xn)
    out_ref[...] = jnp.dot(wht_ref[...], patch_ref[...],
                           preferred_element_type=jnp.float32) + bh_ref[...]   # (6, S)


# ---------------------------------------------------------------------------- wrapper
def reghead_forward(x, params, *, eps=1e-5):
    """x: (B, C, D, H, W) float32 (NCDHW).  Returns (SVF_mean, SVF_log_sigma),
    each (B, 3, D, H, W)."""
    B, C, D, H, W = x.shape
    S = D * H * W
    K = 27 * C

    x_flat = x.reshape(B, C, S)

    # weights stored DHWIO (3,3,3,Cin,Cout) -> (27*Cin, Cout) -> transposed for (M,K)x(K,S)
    w1t = params["w1"].reshape(K, C).T                            # (C, 27C)
    b1 = params["b1"].reshape(C, 1)
    wh = jnp.concatenate([params["wm"], params["ws"]], axis=-1)   # (3,3,3,C,6)
    wht = wh.reshape(K, 6).T                                      # (6, 27C)
    bh = jnp.concatenate([params["bm"], params["bs"]]).reshape(6, 1)

    # static per-tap lane shift + boundary mask implementing zero 'same' padding
    s_idx = jnp.arange(S, dtype=jnp.int32)
    d_idx = s_idx // (H * W)
    h_idx = (s_idx // W) % H
    w_idx = s_idx % W
    shifts, masks = [], []
    for kd in range(3):
        for kh in range(3):
            for kw in range(3):
                t = (kd - 1) * H * W + (kh - 1) * W + (kw - 1)
                shifts.append((-t) % S)
                dd = d_idx + (kd - 1)
                hh = h_idx + (kh - 1)
                ww = w_idx + (kw - 1)
                valid = ((dd >= 0) & (dd < D) & (hh >= 0) & (hh < H)
                         & (ww >= 0) & (ww < W))
                masks.append(valid.astype(jnp.float32))
    mask = jnp.stack(masks, axis=0)                               # (27, S)

    kernel = functools.partial(reghead_kernel, C=C, S=S,
                               shifts=tuple(shifts), eps=eps)

    flops = 2 * B * S * K * (C + 6)
    bytes_accessed = 4 * (B * C * S + B * 6 * S + 27 * S + K * (C + 6) + C + 6)

    out = pl.pallas_call(
        kernel,
        out_shape=jax.ShapeDtypeStruct((B, 6, S), jnp.float32),
        grid=(B,),
        in_specs=[
            pl.BlockSpec((None, C, S), lambda b: (b, 0, 0)),      # x_flat, per sample
            pl.BlockSpec((27, S), lambda b: (0, 0)),              # boundary masks
            pl.BlockSpec((C, K), lambda b: (0, 0)),               # conv1 weight (C, 27C)
            pl.BlockSpec((C, 1), lambda b: (0, 0)),               # conv1 bias
            pl.BlockSpec((6, K), lambda b: (0, 0)),               # fused head weight
            pl.BlockSpec((6, 1), lambda b: (0, 0)),               # fused head bias
        ],
        out_specs=pl.BlockSpec((None, 6, S), lambda b: (b, 0, 0)),
        scratch_shapes=[pltpu.VMEM((K, S), jnp.float32)],         # im2col slab (27C, S)
        compiler_params=pltpu.CompilerParams(
            dimension_semantics=("parallel",)),
        cost_estimate=pl.CostEstimate(flops=flops, transcendentals=B * C,
                                      bytes_accessed=bytes_accessed),
    )(x_flat, mask, w1t, b1, wht, bh)

    svf_mean = out[:, 0:3, :].reshape(B, 3, D, H, W)
    svf_log_sigma = out[:, 3:6, :].reshape(B, 3, D, H, W)
    return svf_mean, svf_log_sigma


# ------------------------------------------------------------------------- reference
def reghead_reference(x, params, *, eps=1e-5):
    """Pure-JAX NCDHW reference matching the PyTorch module semantics."""
    def conv3d_same(inp, w, b):
        dn = jax.lax.conv_dimension_numbers(inp.shape, w.shape,
                                            ("NCDHW", "DHWIO", "NCDHW"))
        y = jax.lax.conv_general_dilated(inp, w, (1, 1, 1), "SAME",
                                         dimension_numbers=dn)
        return y + b.reshape(1, -1, 1, 1, 1)

    y = conv3d_same(x, params["w1"], params["b1"])
    y = jnp.where(y >= 0, y, 0.2 * y)                               # LeakyReLU(0.2)
    mu = jnp.mean(y, axis=(2, 3, 4), keepdims=True)
    var = jnp.mean((y - mu) ** 2, axis=(2, 3, 4), keepdims=True)    # biased variance
    yn = (y - mu) / jnp.sqrt(var + eps)                             # InstanceNorm3d
    svf_mean = conv3d_same(yn, params["wm"], params["bm"])
    svf_log_sigma = conv3d_same(yn, params["ws"], params["bs"])
    return svf_mean, svf_log_sigma


# ------------------------------------------------------------------------------ main
if __name__ == "__main__":
    key = jax.random.PRNGKey(0)
    B, C, D, H, W = 2, 4, 8, 8, 8

    k_x, k_w1, k_b1, k_wm, k_ws = jax.random.split(key, 5)

    x = jax.random.normal(k_x, (B, C, D, H, W), jnp.float32)

    fan_in = C * 27
    bound = 1.0 / math.sqrt(fan_in)
    params = {
        # self.Conv: default-style init
        "w1": jax.random.uniform(k_w1, (3, 3, 3, C, C), jnp.float32, -bound, bound),
        "b1": jax.random.uniform(k_b1, (C,), jnp.float32, -bound, bound),
        # mean_head: weight ~ Normal(0, 1e-5), bias = 0
        "wm": jax.random.normal(k_wm, (3, 3, 3, C, 3), jnp.float32) * 1e-5,
        "bm": jnp.zeros((3,), jnp.float32),
        # sigma_head: weight ~ Normal(0, 1e-10), bias = -10
        "ws": jax.random.normal(k_ws, (3, 3, 3, C, 3), jnp.float32) * 1e-10,
        "bs": jnp.full((3,), -10.0, jnp.float32),
    }

    svf_mean, svf_log_sigma = reghead_forward(x, params)
    jax.block_until_ready((svf_mean, svf_log_sigma))

    ref_mean, ref_log_sigma = reghead_reference(x, params)
    assert svf_mean.shape == (B, 3, D, H, W)
    assert svf_log_sigma.shape == (B, 3, D, H, W)
    assert jnp.allclose(svf_mean, ref_mean, atol=1e-4, rtol=1e-3)
    assert jnp.allclose(svf_log_sigma, ref_log_sigma, atol=1e-4, rtol=1e-3)

    # TODO(synk): torch.utils.checkpoint (use_checkpoint) is a training-time recompute
    # trick; the inference forward pass implemented here does not need it.
    print("KERNEL_OK")
</pallas_src>

<mosaic_0001>
module attributes {stable_mosaic.version = 11 : i64} {
  func.func @reghead_kernel(%arg0: i32, %arg1: memref<1x4x512xf32, #tpu.memory_space<vmem>>, %arg2: memref<27x512xf32, #tpu.memory_space<vmem>>, %arg3: memref<4x108xf32, #tpu.memory_space<vmem>>, %arg4: memref<4x1xf32, #tpu.memory_space<vmem>>, %arg5: memref<6x108xf32, #tpu.memory_space<vmem>>, %arg6: memref<6x1xf32, #tpu.memory_space<vmem>>, %arg7: memref<1x6x512xf32, #tpu.memory_space<vmem>>, %arg8: memref<108x512xf32, #tpu.memory_space<vmem>>) attributes {dimension_semantics = [#tpu.dimension_semantics<parallel>], iteration_bounds = array<i64: 2>, scalar_prefetch = 0 : i64, scratch_operands = 1 : i64, tpu.core_type = #tpu.core_type<tc>, window_params = [{transform_indices = @transform_0, window_bounds = array<i64: 1, 4, 512>}, {pipeline_mode = #tpu.pipeline_mode<synchronous>, transform_indices = @transform_1, window_bounds = array<i64: 27, 512>}, {pipeline_mode = #tpu.pipeline_mode<synchronous>, transform_indices = @transform_2, window_bounds = array<i64: 4, 108>}, {pipeline_mode = #tpu.pipeline_mode<synchronous>, transform_indices = @transform_3, window_bounds = array<i64: 4, 1>}, {pipeline_mode = #tpu.pipeline_mode<synchronous>, transform_indices = @transform_4, window_bounds = array<i64: 6, 108>}, {pipeline_mode = #tpu.pipeline_mode<synchronous>, transform_indices = @transform_5, window_bounds = array<i64: 6, 1>}, {transform_indices = @transform_6, window_bounds = array<i64: 1, 6, 512>}]} {
    %c0 = arith.constant 0 : index
    %c0_0 = arith.constant 0 : index
    %c0_1 = arith.constant 0 : index
    %0 = vector.load %arg1[%c0, %c0_0, %c0_1] : memref<1x4x512xf32, #tpu.memory_space<vmem>>, vector<1x4x512xf32>
    %1 = vector.shape_cast %0 : vector<1x4x512xf32> to vector<4x512xf32>
    %c73_i32 = arith.constant 73 : i32
    %2 = tpu.dynamic_rotate %1 by %c73_i32 dim 1 : vector<4x512xf32>, i32 -> vector<4x512xf32>
    %c0_2 = arith.constant 0 : index
    %c0_3 = arith.constant 0 : index
    %3 = vector.load %arg2[%c0_2, %c0_3] : memref<27x512xf32, #tpu.memory_space<vmem>>, vector<1x512xf32>
    %4 = vector.broadcast %3 : vector<1x512xf32> to vector<4x512xf32>
    %5 = arith.mulf %2, %4 : vector<4x512xf32>
    %c0_4 = arith.constant 0 : index
    %c0_5 = arith.constant 0 : index
    %6 = vector.load %arg8[%c0_4, %c0_5] : memref<108x512xf32, #tpu.memory_space<vmem>>, vector<4x512xf32>
    tpu.vector_store %arg8[%c0_4, %c0_5], %5 {strides = array<i32>} : memref<108x512xf32, #tpu.memory_space<vmem>>, vector<4x512xf32>,
    %c72_i32 = arith.constant 72 : i32
    %7 = tpu.dynamic_rotate %1 by %c72_i32 dim 1 : vector<4x512xf32>, i32 -> vector<4x512xf32>
    %c1 = arith.constant 1 : index
    %c0_6 = arith.constant 0 : index
    %8 = vector.load %arg2[%c1, %c0_6] : memref<27x512xf32, #tpu.memory_space<vmem>>, vector<1x512xf32>
    %9 = vector.broadcast %8 : vector<1x512xf32> to vector<4x512xf32>
    %10 = arith.mulf %7, %9 : vector<4x512xf32>
    %c4 = arith.constant 4 : index
    %c0_7 = arith.constant 0 : index
    %11 = vector.load %arg8[%c4, %c0_7] : memref<108x512xf32, #tpu.memory_space<vmem>>, vector<4x512xf32>
    tpu.vector_store %arg8[%c4, %c0_7], %10 {strides = array<i32>} : memref<108x512xf32, #tpu.memory_space<vmem>>, vector<4x512xf32>,
    %c71_i32 = arith.constant 71 : i32
    %12 = tpu.dynamic_rotate %1 by %c71_i32 dim 1 : vector<4x512xf32>, i32 -> vector<4x512xf32>
    %c2 = arith.constant 2 : index
    %c0_8 = arith.constant 0 : index
    %13 = vector.load %arg2[%c2, %c0_8] : memref<27x512xf32, #tpu.memory_space<vmem>>, vector<1x512xf32>
    %14 = vector.broadcast %13 : vector<1x512xf32> to vector<4x512xf32>
    %15 = arith.mulf %12, %14 : vector<4x512xf32>
    %c8 = arith.constant 8 : index
    %c0_9 = arith.constant 0 : index
    %16 = vector.load %arg8[%c8, %c0_9] : memref<108x512xf32, #tpu.memory_space<vmem>>, vector<4x512xf32>
    tpu.vector_store %arg8[%c8, %c0_9], %15 {strides = array<i32>} : memref<108x512xf32, #tpu.memory_space<vmem>>, vector<4x512xf32>,
    %c65_i32 = arith.constant 65 : i32
    %17 = tpu.dynamic_rotate %1 by %c65_i32 dim 1 : vector<4x512xf32>, i32 -> vector<4x512xf32>
    %c3 = arith.constant 3 : index
    %c0_10 = arith.constant 0 : index
    %18 = vector.load %arg2[%c3, %c0_10] : memref<27x512xf32, #tpu.memory_space<vmem>>, vector<1x512xf32>
    %19 = vector.broadcast %18 : vector<1x512xf32> to vector<4x512xf32>
    %20 = arith.mulf %17, %19 : vector<4x512xf32>
    %c12 = arith.constant 12 : index
    %c0_11 = arith.constant 0 : index
    %21 = vector.load %arg8[%c12, %c0_11] : memref<108x512xf32, #tpu.memory_space<vmem>>, vector<4x512xf32>
    tpu.vector_store %arg8[%c12, %c0_11], %20 {strides = array<i32>} : memref<108x512xf32, #tpu.memory_space<vmem>>, vector<4x512xf32>,
    %c64_i32 = arith.constant 64 : i32
    %22 = tpu.dynamic_rotate %1 by %c64_i32 dim 1 : vector<4x512xf32>, i32 -> vector<4x512xf32>
    %c4_12 = arith.constant 4 : index
    %c0_13 = arith.constant 0 : index
    %23 = vector.load %arg2[%c4_12, %c0_13] : memref<27x512xf32, #tpu.memory_space<vmem>>, vector<1x512xf32>
    %24 = vector.broadcast %23 : vector<1x512xf32> to vector<4x512xf32>
    %25 = arith.mulf %22, %24 : vector<4x512xf32>
    %c16 = arith.constant 16 : index
    %c0_14 = arith.constant 0 : index
    %26 = vector.load %arg8[%c16, %c0_14] : memref<108x512xf32, #tpu.memory_space<vmem>>, vector<4x512xf32>
    tpu.vector_store %arg8[%c16, %c0_14], %25 {strides = array<i32>} : memref<108x512xf32, #tpu.memory_space<vmem>>, vector<4x512xf32>,
    %c63_i32 = arith.constant 63 : i32
    %27 = tpu.dynamic_rotate %1 by %c63_i32 dim 1 : vector<4x512xf32>, i32 -> vector<4x512xf32>
    %c5 = arith.constant 5 : index
    %c0_15 = arith.constant 0 : index
    %28 = vector.load %arg2[%c5, %c0_15] : memref<27x512xf32, #tpu.memory_space<vmem>>, vector<1x512xf32>
    %29 = vector.broadcast %28 : vector<1x512xf32> to vector<4x512xf32>
    %30 = arith.mulf %27, %29 : vector<4x512xf32>
    %c20 = arith.constant 20 : index
    %c0_16 = arith.constant 0 : index
    %31 = vector.load %arg8[%c20, %c0_16] : memref<108x512xf32, #tpu.memory_space<vmem>>, vector<4x512xf32>
    tpu.vector_store %arg8[%c20, %c0_16], %30 {strides = array<i32>} : memref<108x512xf32, #tpu.memory_space<vmem>>, vector<4x512xf32>,
    %c57_i32 = arith.constant 57 : i32
    %32 = tpu.dynamic_rotate %1 by %c57_i32 dim 1 : vector<4x512xf32>, i32 -> vector<4x512xf32>
    %c6 = arith.constant 6 : index
    %c0_17 = arith.constant 0 : index
    %33 = vector.load %arg2[%c6, %c0_17] : memref<27x512xf32, #tpu.memory_space<vmem>>, vector<1x512xf32>
    %34 = vector.broadcast %33 : vector<1x512xf32> to vector<4x512xf32>
    %35 = arith.mulf %32, %34 : vector<4x512xf32>
    %c24 = arith.constant 24 : index
    %c0_18 = arith.constant 0 : index
    %36 = vector.load %arg8[%c24, %c0_18] : memref<108x512xf32, #tpu.memory_space<vmem>>, vector<4x512xf32>
    tpu.vector_store %arg8[%c24, %c0_18], %35 {strides = array<i32>} : memref<108x512xf32, #tpu.memory_space<vmem>>, vector<4x512xf32>,
    %c56_i32 = arith.constant 56 : i32
    %37 = tpu.dynamic_rotate %1 by %c56_i32 dim 1 : vector<4x512xf32>, i32 -> vector<4x512xf32>
    %c7 = arith.constant 7 : index
    %c0_19 = arith.constant 0 : index
    %38 = vector.load %arg2[%c7, %c0_19] : memref<27x512xf32, #tpu.memory_space<vmem>>, vector<1x512xf32>
    %39 = vector.broadcast %38 : vector<1x512xf32> to vector<4x512xf32>
    %40 = arith.mulf %37, %39 : vector<4x512xf32>
    %c28 = arith.constant 28 : index
    %c0_20 = arith.constant 0 : index
    %41 = vector.load %arg8[%c28, %c0_20] : memref<108x512xf32, #tpu.memory_space<vmem>>, vector<4x512xf32>
    tpu.vector_store %arg8[%c28, %c0_20], %40 {strides = array<i32>} : memref<108x512xf32, #tpu.memory_space<vmem>>, vector<4x512xf32>,
    %c55_i32 = arith.constant 55 : i32
    %42 = tpu.dynamic_rotate %1 by %c55_i32 dim 1 : vector<4x512xf32>, i32 -> vector<4x512xf32>
    %c8_21 = arith.constant 8 : index
    %c0_22 = arith.constant 0 : index
    %43 = vector.load %arg2[%c8_21, %c0_22] : memref<27x512xf32, #tpu.memory_space<vmem>>, vector<1x512xf32>
    %44 = vector.broadcast %43 : vector<1x512xf32> to vector<4x512xf32>
    %45 = arith.mulf %42, %44 : vector<4x512xf32>
    %c32 = arith.constant 32 : index
    %c0_23 = arith.constant 0 : index
    %46 = vector.load %arg8[%c32, %c0_23] : memref<108x512xf32, #tpu.memory_space<vmem>>, vector<4x512xf32>
    tpu.vector_store %arg8[%c32, %c0_23], %45 {strides = array<i32>} : memref<108x512xf32, #tpu.memory_space<vmem>>, vector<4x512xf32>,
    %c9_i32 = arith.constant 9 : i32
    %47 = tpu.dynamic_rotate %1 by %c9_i32 dim 1 : vector<4x512xf32>, i32 -> vector<4x512xf32>
    %c9 = arith.constant 9 : index
    %c0_24 = arith.constant 0 : index
    %48 = vector.load %arg2[%c9, %c0_24] : memref<27x512xf32, #tpu.memory_space<vmem>>, vector<1x512xf32>
    %49 = vector.broadcast %48 : vector<1x512xf32> to vector<4x512xf32>
    %50 = arith.mulf %47, %49 : vector<4x512xf32>
    %c36 = arith.constant 36 : index
    %c0_25 = arith.constant 0 : index
    %51 = vector.load %arg8[%c36, %c0_25] : memref<108x512xf32, #tpu.memory_space<vmem>>, vector<4x512xf32>
    tpu.vector_store %arg8[%c36, %c0_25], %50 {strides = array<i32>} : memref<108x512xf32, #tpu.memory_space<vmem>>, vector<4x512xf32>,
    %c8_i32 = arith.constant 8 : i32
    %52 = tpu.dynamic_rotate %1 by %c8_i32 dim 1 : vector<4x512xf32>, i32 -> vector<4x512xf32>
    %c10 = arith.constant 10 : index
    %c0_26 = arith.constant 0 : index
    %53 = vector.load %arg2[%c10, %c0_26] : memref<27x512xf32, #tpu.memory_space<vmem>>, vector<1x512xf32>
    %54 = vector.broadcast %53 : vector<1x512xf32> to vector<4x512xf32>
    %55 = arith.mulf %52, %54 : vector<4x512xf32>
    %c40 = arith.constant 40 : index
    %c0_27 = arith.constant 0 : index
    %56 = vector.load %arg8[%c40, %c0_27] : memref<108x512xf32, #tpu.memory_space<vmem>>, vector<4x512xf32>
    tpu.vector_store %arg8[%c40, %c0_27], %55 {strides = array<i32>} : memref<108x512xf32, #tpu.memory_space<vmem>>, vector<4x512xf32>,
    %c7_i32 = arith.constant 7 : i32
    %57 = tpu.dynamic_rotate %1 by %c7_i32 dim 1 : vector<4x512xf32>, i32 -> vector<4x512xf32>
    %c11 = arith.constant 11 : index
    %c0_28 = arith.constant 0 : index
    %58 = vector.load %arg2[%c11, %c0_28] : memref<27x512xf32, #tpu.memory_space<vmem>>, vector<1x512xf32>
    %59 = vector.broadcast %58 : vector<1x512xf32> to vector<4x512xf32>
    %60 = arith.mulf %57, %59 : vector<4x512xf32>
    %c44 = arith.constant 44 : index
    %c0_29 = arith.constant 0 : index
    %61 = vector.load %arg8[%c44, %c0_29] : memref<108x512xf32, #tpu.memory_space<vmem>>, vector<4x512xf32>
    tpu.vector_store %arg8[%c44, %c0_29], %60 {strides = array<i32>} : memref<108x512xf32, #tpu.memory_space<vmem>>, vector<4x512xf32>,
    %c1_i32 = arith.constant 1 : i32
    %62 = tpu.dynamic_rotate %1 by %c1_i32 dim 1 : vector<4x512xf32>, i32 -> vector<4x512xf32>
    %c12_30 = arith.constant 12 : index
    %c0_31 = arith.constant 0 : index
    %63 = vector.load %arg2[%c12_30, %c0_31] : memref<27x512xf32, #tpu.memory_space<vmem>>, vector<1x512xf32>
    %64 = vector.broadcast %63 : vector<1x512xf32> to vector<4x512xf32>
    %65 = arith.mulf %62, %64 : vector<4x512xf32>
    %c48 = arith.constant 48 : index
    %c0_32 = arith.constant 0 : index
    %66 = vector.load %arg8[%c48, %c0_32] : memref<108x512xf32, #tpu.memory_space<vmem>>, vector<4x512xf32>
    tpu.vector_store %arg8[%c48, %c0_32], %65 {strides = array<i32>} : memref<108x512xf32, #tpu.memory_space<vmem>>, vector<4x512xf32>,
    %c13 = arith.constant 13 : index
    %c0_33 = arith.constant 0 : index
    %67 = vector.load %arg2[%c13, %c0_33] : memref<27x512xf32, #tpu.memory_space<vmem>>, vector<1x512xf32>
    %68 = vector.broadcast %67 : vector<1x512xf32> to vector<4x512xf32>
    %69 = arith.mulf %1, %68 : vector<4x512xf32>
    %c52 = arith.constant 52 : index
    %c0_34 = arith.constant 0 : index
    %70 = vector.load %arg8[%c52, %c0_34] : memref<108x512xf32, #tpu.memory_space<vmem>>, vector<4x512xf32>
    tpu.vector_store %arg8[%c52, %c0_34], %69 {strides = array<i32>} : memref<108x512xf32, #tpu.memory_space<vmem>>, vector<4x512xf32>,
    %c511_i32 = arith.constant 511 : i32
    %71 = tpu.dynamic_rotate %1 by %c511_i32 dim 1 : vector<4x512xf32>, i32 -> vector<4x512xf32>
    %c14 = arith.constant 14 : index
    %c0_35 = arith.constant 0 : index
    %72 = vector.load %arg2[%c14, %c0_35] : memref<27x512xf32, #tpu.memory_space<vmem>>, vector<1x512xf32>
    %73 = vector.broadcast %72 : vector<1x512xf32> to vector<4x512xf32>
    %74 = arith.mulf %71, %73 : vector<4x512xf32>
    %c56 = arith.constant 56 : index
    %c0_36 = arith.constant 0 : index
    %75 = vector.load %arg8[%c56, %c0_36] : memref<108x512xf32, #tpu.memory_space<vmem>>, vector<4x512xf32>
    tpu.vector_store %arg8[%c56, %c0_36], %74 {strides = array<i32>} : memref<108x512xf32, #tpu.memory_space<vmem>>, vector<4x512xf32>,
    %c505_i32 = arith.constant 505 : i32
    %76 = tpu.dynamic_rotate %1 by %c505_i32 dim 1 : vector<4x512xf32>, i32 -> vector<4x512xf32>
    %c15 = arith.constant 15 : index
    %c0_37 = arith.constant 0 : index
    %77 = vector.load %arg2[%c15, %c0_37] : memref<27x512xf32, #tpu.memory_space<vmem>>, vector<1x512xf32>
    %78 = vector.broadcast %77 : vector<1x512xf32> to vector<4x512xf32>
    %79 = arith.mulf %76, %78 : vector<4x512xf32>
    %c60 = arith.constant 60 : index
    %c0_38 = arith.constant 0 : index
    %80 = vector.load %arg8[%c60, %c0_38] : memref<108x512xf32, #tpu.memory_space<vmem>>, vector<4x512xf32>
    tpu.vector_store %arg8[%c60, %c0_38], %79 {strides = array<i32>} : memref<108x512xf32, #tpu.memory_space<vmem>>, vector<4x512xf32>,
    %c504_i32 = arith.constant 504 : i32
    %81 = tpu.dynamic_rotate %1 by %c504_i32 dim 1 : vector<4x512xf32>, i32 -> vector<4x512xf32>
    %c16_39 = arith.constant 16 : index
    %c0_40 = arith.constant 0 : index
    %82 = vector.load %arg2[%c16_39, %c0_40] : memref<27x512xf32, #tpu.memory_space<vmem>>, vector<1x512xf32>
    %83 = vector.broadcast %82 : vector<1x512xf32> to vector<4x512xf32>
    %84 = arith.mulf %81, %83 : vector<4x512xf32>
    %c64 = arith.constant 64 : index
    %c0_41 = arith.constant 0 : index
    %85 = vector.load %arg8[%c64, %c0_41] : memref<108x512xf32, #tpu.memory_space<vmem>>, vector<4x512xf32>
    tpu.vector_store %arg8[%c64, %c0_41], %84 {strides = array<i32>} : memref<108x512xf32, #tpu.memory_space<vmem>>, vector<4x512xf32>,
    %c503_i32 = arith.constant 503 : i32
    %86 = tpu.dynamic_rotate %1 by %c503_i32 dim 1 : vector<4x512xf32>, i32 -> vector<4x512xf32>
    %c17 = arith.constant 17 : index
    %c0_42 = arith.constant 0 : index
    %87 = vector.load %arg2[%c17, %c0_42] : memref<27x512xf32, #tpu.memory_space<vmem>>, vector<1x512xf32>
    %88 = vector.broadcast %87 : vector<1x512xf32> to vector<4x512xf32>
    %89 = arith.mulf %86, %88 : vector<4x512xf32>
    %c68 = arith.constant 68 : index
    %c0_43 = arith.constant 0 : index
    %90 = vector.load %arg8[%c68, %c0_43] : memref<108x512xf32, #tpu.memory_space<vmem>>, vector<4x512xf32>
    tpu.vector_store %arg8[%c68, %c0_43], %89 {strides = array<i32>} : memref<108x512xf32, #tpu.memory_space<vmem>>, vector<4x512xf32>,
    %c457_i32 = arith.constant 457 : i32
    %91 = tpu.dynamic_rotate %1 by %c457_i32 dim 1 : vector<4x512xf32>, i32 -> vector<4x512xf32>
    %c18 = arith.constant 18 : index
    %c0_44 = arith.constant 0 : index
    %92 = vector.load %arg2[%c18, %c0_44] : memref<27x512xf32, #tpu.memory_space<vmem>>, vector<1x512xf32>
    %93 = vector.broadcast %92 : vector<1x512xf32> to vector<4x512xf32>
    %94 = arith.mulf %91, %93 : vector<4x512xf32>
    %c72 = arith.constant 72 : index
    %c0_45 = arith.constant 0 : index
    %95 = vector.load %arg8[%c72, %c0_45] : memref<108x512xf32, #tpu.memory_space<vmem>>, vector<4x512xf32>
    tpu.vector_store %arg8[%c72, %c0_45], %94 {strides = array<i32>} : memref<108x512xf32, #tpu.memory_space<vmem>>, vector<4x512xf32>,
    %c456_i32 = arith.constant 456 : i32
    %96 = tpu.dynamic_rotate %1 by %c456_i32 dim 1 : vector<4x512xf32>, i32 -> vector<4x512xf32>
    %c19 = arith.constant 19 : index
    %c0_46 = arith.constant 0 : index
    %97 = vector.load %arg2[%c19, %c0_46] : memref<27x512xf32, #tpu.memory_space<vmem>>, vector<1x512xf32>
    %98 = vector.broadcast %97 : vector<1x512xf32> to vector<4x512xf32>
    %99 = arith.mulf %96, %98 : vector<4x512xf32>
    %c76 = arith.constant 76 : index
    %c0_47 = arith.constant 0 : index
    %100 = vector.load %arg8[%c76, %c0_47] : memref<108x512xf32, #tpu.memory_space<vmem>>, vector<4x512xf32>
    tpu.vector_store %arg8[%c76, %c0_47], %99 {strides = array<i32>} : memref<108x512xf32, #tpu.memory_space<vmem>>, vector<4x512xf32>,
    %c455_i32 = arith.constant 455 : i32
    %101 = tpu.dynamic_rotate %1 by %c455_i32 dim 1 : vector<4x512xf32>, i32 -> vector<4x512xf32>
    %c20_48 = arith.constant 20 : index
    %c0_49 = arith.constant 0 : index
    %102 = vector.load %arg2[%c20_48, %c0_49] : memref<27x512xf32, #tpu.memory_space<vmem>>, vector<1x512xf32>
    %103 = vector.broadcast %102 : vector<1x512xf32> to vector<4x512xf32>
    %104 = arith.mulf %101, %103 : vector<4x512xf32>
    %c80 = arith.constant 80 : index
    %c0_50 = arith.constant 0 : index
    %105 = vector.load %arg8[%c80, %c0_50] : memref<108x512xf32, #tpu.memory_space<vmem>>, vector<4x512xf32>
    tpu.vector_store %arg8[%c80, %c0_50], %104 {strides = array<i32>} : memref<108x512xf32, #tpu.memory_space<vmem>>, vector<4x512xf32>,
    %c449_i32 = arith.constant 449 : i32
    %106 = tpu.dynamic_rotate %1 by %c449_i32 dim 1 : vector<4x512xf32>, i32 -> vector<4x512xf32>
    %c21 = arith.constant 21 : index
    %c0_51 = arith.constant 0 : index
    %107 = vector.load %arg2[%c21, %c0_51] : memref<27x512xf32, #tpu.memory_space<vmem>>, vector<1x512xf32>
    %108 = vector.broadcast %107 : vector<1x512xf32> to vector<4x512xf32>
    %109 = arith.mulf %106, %108 : vector<4x512xf32>
    %c84 = arith.constant 84 : index
    %c0_52 = arith.constant 0 : index
    %110 = vector.load %arg8[%c84, %c0_52] : memref<108x512xf32, #tpu.memory_space<vmem>>, vector<4x512xf32>
    tpu.vector_store %arg8[%c84, %c0_52], %109 {strides = array<i32>} : memref<108x512xf32, #tpu.memory_space<vmem>>, vector<4x512xf32>,
    %c448_i32 = arith.constant 448 : i32
    %111 = tpu.dynamic_rotate %1 by %c448_i32 dim 1 : vector<4x512xf32>, i32 -> vector<4x512xf32>
    %c22 = arith.constant 22 : index
    %c0_53 = arith.constant 0 : index
    %112 = vector.load %arg2[%c22, %c0_53] : memref<27x512xf32, #tpu.memory_space<vmem>>, vector<1x512xf32>
    %113 = vector.broadcast %112 : vector<1x512xf32> to vector<4x512xf32>
    %114 = arith.mulf %111, %113 : vector<4x512xf32>
    %c88 = arith.constant 88 : index
    %c0_54 = arith.constant 0 : index
    %115 = vector.load %arg8[%c88, %c0_54] : memref<108x512xf32, #tpu.memory_space<vmem>>, vector<4x512xf32>
    tpu.vector_store %arg8[%c88, %c0_54], %114 {strides = array<i32>} : memref<108x512xf32, #tpu.memory_space<vmem>>, vector<4x512xf32>,
    %c447_i32 = arith.constant 447 : i32
    %116 = tpu.dynamic_rotate %1 by %c447_i32 dim 1 : vector<4x512xf32>, i32 -> vector<4x512xf32>
    %c23 = arith.constant 23 : index
    %c0_55 = arith.constant 0 : index
    %117 = vector.load %arg2[%c23, %c0_55] : memref<27x512xf32, #tpu.memory_space<vmem>>, vector<1x512xf32>
    %118 = vector.broadcast %117 : vector<1x512xf32> to vector<4x512xf32>
    %119 = arith.mulf %116, %118 : vector<4x512xf32>
    %c92 = arith.constant 92 : index
    %c0_56 = arith.constant 0 : index
    %120 = vector.load %arg8[%c92, %c0_56] : memref<108x512xf32, #tpu.memory_space<vmem>>, vector<4x512xf32>
    tpu.vector_store %arg8[%c92, %c0_56], %119 {strides = array<i32>} : memref<108x512xf32, #tpu.memory_space<vmem>>, vector<4x512xf32>,
    %c441_i32 = arith.constant 441 : i32
    %121 = tpu.dynamic_rotate %1 by %c441_i32 dim 1 : vector<4x512xf32>, i32 -> vector<4x512xf32>
    %c24_57 = arith.constant 24 : index
    %c0_58 = arith.constant 0 : index
    %122 = vector.load %arg2[%c24_57, %c0_58] : memref<27x512xf32, #tpu.memory_space<vmem>>, vector<1x512xf32>
    %123 = vector.broadcast %122 : vector<1x512xf32> to vector<4x512xf32>
    %124 = arith.mulf %121, %123 : vector<4x512xf32>
    %c96 = arith.constant 96 : index
    %c0_59 = arith.constant 0 : index
    %125 = vector.load %arg8[%c96, %c0_59] : memref<108x512xf32, #tpu.memory_space<vmem>>, vector<4x512xf32>
    tpu.vector_store %arg8[%c96, %c0_59], %124 {strides = array<i32>} : memref<108x512xf32, #tpu.memory_space<vmem>>, vector<4x512xf32>,
    %c440_i32 = arith.constant 440 : i32
    %126 = tpu.dynamic_rotate %1 by %c440_i32 dim 1 : vector<4x512xf32>, i32 -> vector<4x512xf32>
    %c25 = arith.constant 25 : index
    %c0_60 = arith.constant 0 : index
    %127 = vector.load %arg2[%c25, %c0_60] : memref<27x512xf32, #tpu.memory_space<vmem>>, vector<1x512xf32>
    %128 = vector.broadcast %127 : vector<1x512xf32> to vector<4x512xf32>
    %129 = arith.mulf %126, %128 : vector<4x512xf32>
    %c100 = arith.constant 100 : index
    %c0_61 = arith.constant 0 : index
    %130 = vector.load %arg8[%c100, %c0_61] : memref<108x512xf32, #tpu.memory_space<vmem>>, vector<4x512xf32>
    tpu.vector_store %arg8[%c100, %c0_61], %129 {strides = array<i32>} : memref<108x512xf32, #tpu.memory_space<vmem>>, vector<4x512xf32>,
    %c439_i32 = arith.constant 439 : i32
    %131 = tpu.dynamic_rotate %1 by %c439_i32 dim 1 : vector<4x512xf32>, i32 -> vector<4x512xf32>
    %c26 = arith.constant 26 : index
    %c0_62 = arith.constant 0 : index
    %132 = vector.load %arg2[%c26, %c0_62] : memref<27x512xf32, #tpu.memory_space<vmem>>, vector<1x512xf32>
    %133 = vector.broadcast %132 : vector<1x512xf32> to vector<4x512xf32>
    %134 = arith.mulf %131, %133 : vector<4x512xf32>
    %c104 = arith.constant 104 : index
    %c0_63 = arith.constant 0 : index
    %135 = vector.load %arg8[%c104, %c0_63] : memref<108x512xf32, #tpu.memory_space<vmem>>, vector<4x512xf32>
    tpu.vector_store %arg8[%c104, %c0_63], %134 {strides = array<i32>} : memref<108x512xf32, #tpu.memory_space<vmem>>, vector<4x512xf32>,
    %c0_64 = arith.constant 0 : index
    %c0_65 = arith.constant 0 : index
    %136 = vector.load %arg3[%c0_64, %c0_65] : memref<4x108xf32, #tpu.memory_space<vmem>>, vector<4x108xf32>
    %c0_66 = arith.constant 0 : index
    %c0_67 = arith.constant 0 : index
    %137 = vector.load %arg8[%c0_66, %c0_67] : memref<108x512xf32, #tpu.memory_space<vmem>>, vector<108x512xf32>
    %cst = arith.constant dense<0.000000e+00> : vector<4x512xf32>
    %138 = tpu.matmul %136, %137, %cst {dimension_numbers = #tpu.dot_dimension_numbers<[1], [0], [0], [1], [0, 0, 1, 1], [], []>} : vector<4x108xf32>, vector<108x512xf32>, vector<4x512xf32> -> vector<4x512xf32>
    %c0_68 = arith.constant 0 : index
    %c0_69 = arith.constant 0 : index
    %139 = vector.load %arg4[%c0_68, %c0_69] : memref<4x1xf32, #tpu.memory_space<vmem>>, vector<4x1xf32>
    %140 = vector.broadcast %139 : vector<4x1xf32> to vector<4x512xf32>
    %141 = arith.addf %138, %140 : vector<4x512xf32>
    %cst_70 = arith.constant 0.000000e+00 : f32
    %142 = vector.broadcast %cst_70 : f32 to vector<4x512xf32>
    %143 = arith.cmpf oge, %141, %142 : vector<4x512xf32>
    %cst_71 = arith.constant 2.000000e-01 : f32
    %144 = vector.broadcast %cst_71 : f32 to vector<4x512xf32>
    %145 = arith.mulf %144, %141 : vector<4x512xf32>
    %146 = arith.select %143, %141, %145 : vector<4x512xi1>, vector<4x512xf32>
    %cst_72 = arith.constant dense<0.000000e+00> : vector<4xf32>
    %147 = vector.multi_reduction <add>, %146, %cst_72 [1] : vector<4x512xf32> to vector<4xf32>
    %148 = vector.shape_cast %147 : vector<4xf32> to vector<4x1xf32>
    %cst_73 = arith.constant 5.120000e+02 : f32
    %149 = vector.broadcast %cst_73 : f32 to vector<4x1xf32>
    %150 = arith.divf %148, %149 : vector<4x1xf32>
    %151 = vector.broadcast %150 : vector<4x1xf32> to vector<4x512xf32>
    %152 = arith.subf %146, %151 : vector<4x512xf32>
    %153 = arith.mulf %152, %152 : vector<4x512xf32>
    %cst_74 = arith.constant dense<0.000000e+00> : vector<4xf32>
    %154 = vector.multi_reduction <add>, %153, %cst_74 [1] : vector<4x512xf32> to vector<4xf32>
    %155 = vector.shape_cast %154 : vector<4xf32> to vector<4x1xf32>
    %cst_75 = arith.constant 5.120000e+02 : f32
    %156 = vector.broadcast %cst_75 : f32 to vector<4x1xf32>
    %157 = arith.divf %155, %156 : vector<4x1xf32>
    %158 = vector.broadcast %150 : vector<4x1xf32> to vector<4x512xf32>
    %159 = arith.subf %146, %158 : vector<4x512xf32>
    %cst_76 = arith.constant 9.99999974E-6 : f32
    %160 = vector.broadcast %cst_76 : f32 to vector<4x1xf32>
    %161 = arith.addf %157, %160 : vector<4x1xf32>
    %162 = math.rsqrt %161 : vector<4x1xf32>
    %163 = vector.broadcast %162 : vector<4x1xf32> to vector<4x512xf32>
    %164 = arith.mulf %159, %163 : vector<4x512xf32>
    %c73_i32_77 = arith.constant 73 : i32
    %165 = tpu.dynamic_rotate %164 by %c73_i32_77 dim 1 : vector<4x512xf32>, i32 -> vector<4x512xf32>
    %c0_78 = arith.constant 0 : index
    %c0_79 = arith.constant 0 : index
    %166 = vector.load %arg2[%c0_78, %c0_79] : memref<27x512xf32, #tpu.memory_space<vmem>>, vector<1x512xf32>
    %167 = vector.broadcast %166 : vector<1x512xf32> to vector<4x512xf32>
    %168 = arith.mulf %165, %167 : vector<4x512xf32>
    %c0_80 = arith.constant 0 : index
    %c0_81 = arith.constant 0 : index
    %169 = vector.load %arg8[%c0_80, %c0_81] : memref<108x512xf32, #tpu.memory_space<vmem>>, vector<4x512xf32>
    tpu.vector_store %arg8[%c0_80, %c0_81], %168 {strides = array<i32>} : memref<108x512xf32, #tpu.memory_space<vmem>>, vector<4x512xf32>,
    %c72_i32_82 = arith.constant 72 : i32
    %170 = tpu.dynamic_rotate %164 by %c72_i32_82 dim 1 : vector<4x512xf32>, i32 -> vector<4x512xf32>
    %c1_83 = arith.constant 1 : index
    %c0_84 = arith.constant 0 : index
    %171 = vector.load %arg2[%c1_83, %c0_84] : memref<27x512xf32, #tpu.memory_space<vmem>>, vector<1x512xf32>
    %172 = vector.broadcast %171 : vector<1x512xf32> to vector<4x512xf32>
    %173 = arith.mulf %170, %172 : vector<4x512xf32>
    %c4_85 = arith.constant 4 : index
    %c0_86 = arith.constant 0 : index
    %174 = vector.load %arg8[%c4_85, %c0_86] : memref<108x512xf32, #tpu.memory_space<vmem>>, vector<4x512xf32>
    tpu.vector_store %arg8[%c4_85, %c0_86], %173 {strides = array<i32>} : memref<108x512xf32, #tpu.memory_space<vmem>>, vector<4x512xf32>,
    %c71_i32_87 = arith.constant 71 : i32
    %175 = tpu.dynamic_rotate %164 by %c71_i32_87 dim 1 : vector<4x512xf32>, i32 -> vector<4x512xf32>
    %c2_88 = arith.constant 2 : index
    %c0_89 = arith.constant 0 : index
    %176 = vector.load %arg2[%c2_88, %c0_89] : memref<27x512xf32, #tpu.memory_space<vmem>>, vector<1x512xf32>
    %177 = vector.broadcast %176 : vector<1x512xf32> to vector<4x512xf32>
    %178 = arith.mulf %175, %177 : vector<4x512xf32>
    %c8_90 = arith.constant 8 : index
    %c0_91 = arith.constant 0 : index
    %179 = vector.load %arg8[%c8_90, %c0_91] : memref<108x512xf32, #tpu.memory_space<vmem>>, vector<4x512xf32>
    tpu.vector_store %arg8[%c8_90, %c0_91], %178 {strides = array<i32>} : memref<108x512xf32, #tpu.memory_space<vmem>>, vector<4x512xf32>,
    %c65_i32_92 = arith.constant 65 : i32
    %180 = tpu.dynamic_rotate %164 by %c65_i32_92 dim 1 : vector<4x512xf32>, i32 -> vector<4x512xf32>
    %c3_93 = arith.constant 3 : index
    %c0_94 = arith.constant 0 : index
    %181 = vector.load %arg2[%c3_93, %c0_94] : memref<27x512xf32, #tpu.memory_space<vmem>>, vector<1x512xf32>
    %182 = vector.broadcast %181 : vector<1x512xf32> to vector<4x512xf32>
    %183 = arith.mulf %180, %182 : vector<4x512xf32>
    %c12_95 = arith.constant 12 : index
    %c0_96 = arith.constant 0 : index
    %184 = vector.load %arg8[%c12_95, %c0_96] : memref<108x512xf32, #tpu.memory_space<vmem>>, vector<4x512xf32>
    tpu.vector_store %arg8[%c12_95, %c0_96], %183 {strides = array<i32>} : memref<108x512xf32, #tpu.memory_space<vmem>>, vector<4x512xf32>,
    %c64_i32_97 = arith.constant 64 : i32
    %185 = tpu.dynamic_rotate %164 by %c64_i32_97 dim 1 : vector<4x512xf32>, i32 -> vector<4x512xf32>
    %c4_98 = arith.constant 4 : index
    %c0_99 = arith.constant 0 : index
    %186 = vector.load %arg2[%c4_98, %c0_99] : memref<27x512xf32, #tpu.memory_space<vmem>>, vector<1x512xf32>
    %187 = vector.broadcast %186 : vector<1x512xf32> to vector<4x512xf32>
    %188 = arith.mulf %185, %187 : vector<4x512xf32>
    %c16_100 = arith.constant 16 : index
    %c0_101 = arith.constant 0 : index
    %189 = vector.load %arg8[%c16_100, %c0_101] : memref<108x512xf32, #tpu.memory_space<vmem>>, vector<4x512xf32>
    tpu.vector_store %arg8[%c16_100, %c0_101], %188 {strides = array<i32>} : memref<108x512xf32, #tpu.memory_space<vmem>>, vector<4x512xf32>,
    %c63_i32_102 = arith.constant 63 : i32
    %190 = tpu.dynamic_rotate %164 by %c63_i32_102 dim 1 : vector<4x512xf32>, i32 -> vector<4x512xf32>
    %c5_103 = arith.constant 5 : index
    %c0_104 = arith.constant 0 : index
    %191 = vector.load %arg2[%c5_103, %c0_104] : memref<27x512xf32, #tpu.memory_space<vmem>>, vector<1x512xf32>
    %192 = vector.broadcast %191 : vector<1x512xf32> to vector<4x512xf32>
    %193 = arith.mulf %190, %192 : vector<4x512xf32>
    %c20_105 = arith.constant 20 : index
    %c0_106 = arith.constant 0 : index
    %194 = vector.load %arg8[%c20_105, %c0_106] : memref<108x512xf32, #tpu.memory_space<vmem>>, vector<4x512xf32>
    tpu.vector_store %arg8[%c20_105, %c0_106], %193 {strides = array<i32>} : memref<108x512xf32, #tpu.memory_space<vmem>>, vector<4x512xf32>,
    %c57_i32_107 = arith.constant 57 : i32
    %195 = tpu.dynamic_rotate %164 by %c57_i32_107 dim 1 : vector<4x512xf32>, i32 -> vector<4x512xf32>
    %c6_108 = arith.constant 6 : index
    %c0_109 = arith.constant 0 : index
    %196 = vector.load %arg2[%c6_108, %c0_109] : memref<27x512xf32, #tpu.memory_space<vmem>>, vector<1x512xf32>
    %197 = vector.broadcast %196 : vector<1x512xf32> to vector<4x512xf32>
    %198 = arith.mulf %195, %197 : vector<4x512xf32>
    %c24_110 = arith.constant 24 : index
    %c0_111 = arith.constant 0 : index
    %199 = vector.load %arg8[%c24_110, %c0_111] : memref<108x512xf32, #tpu.memory_space<vmem>>, vector<4x512xf32>
    tpu.vector_store %arg8[%c24_110, %c0_111], %198 {strides = array<i32>} : memref<108x512xf32, #tpu.memory_space<vmem>>, vector<4x512xf32>,
    %c56_i32_112 = arith.constant 56 : i32
    %200 = tpu.dynamic_rotate %164 by %c56_i32_112 dim 1 : vector<4x512xf32>, i32 -> vector<4x512xf32>
    %c7_113 = arith.constant 7 : index
    %c0_114 = arith.constant 0 : index
    %201 = vector.load %arg2[%c7_113, %c0_114] : memref<27x512xf32, #tpu.memory_space<vmem>>, vector<1x512xf32>
    %202 = vector.broadcast %201 : vector<1x512xf32> to vector<4x512xf32>
    %203 = arith.mulf %200, %202 : vector<4x512xf32>
    %c28_115 = arith.constant 28 : index
    %c0_116 = arith.constant 0 : index
    %204 = vector.load %arg8[%c28_115, %c0_116] : memref<108x512xf32, #tpu.memory_space<vmem>>, vector<4x512xf32>
    tpu.vector_store %arg8[%c28_115, %c0_116], %203 {strides = array<i32>} : memref<108x512xf32, #tpu.memory_space<vmem>>, vector<4x512xf32>,
    %c55_i32_117 = arith.constant 55 : i32
    %205 = tpu.dynamic_rotate %164 by %c55_i32_117 dim 1 : vector<4x512xf32>, i32 -> vector<4x512xf32>
    %c8_118 = arith.constant 8 : index
    %c0_119 = arith.constant 0 : index
    %206 = vector.load %arg2[%c8_118, %c0_119] : memref<27x512xf32, #tpu.memory_space<vmem>>, vector<1x512xf32>
    %207 = vector.broadcast %206 : vector<1x512xf32> to vector<4x512xf32>
    %208 = arith.mulf %205, %207 : vector<4x512xf32>
    %c32_120 = arith.constant 32 : index
    %c0_121 = arith.constant 0 : index
    %209 = vector.load %arg8[%c32_120, %c0_121] : memref<108x512xf32, #tpu.memory_space<vmem>>, vector<4x512xf32>
    tpu.vector_store %arg8[%c32_120, %c0_121], %208 {strides = array<i32>} : memref<108x512xf32, #tpu.memory_space<vmem>>, vector<4x512xf32>,
    %c9_i32_122 = arith.constant 9 : i32
    %210 = tpu.dynamic_rotate %164 by %c9_i32_122 dim 1 : vector<4x512xf32>, i32 -> vector<4x512xf32>
    %c9_123 = arith.constant 9 : index
    %c0_124 = arith.constant 0 : index
    %211 = vector.load %arg2[%c9_123, %c0_124] : memref<27x512xf32, #tpu.memory_space<vmem>>, vector<1x512xf32>
    %212 = vector.broadcast %211 : vector<1x512xf32> to vector<4x512xf32>
    %213 = arith.mulf %210, %212 : vector<4x512xf32>
    %c36_125 = arith.constant 36 : index
    %c0_126 = arith.constant 0 : index
    %214 = vector.load %arg8[%c36_125, %c0_126] : memref<108x512xf32, #tpu.memory_space<vmem>>, vector<4x512xf32>
    tpu.vector_store %arg8[%c36_125, %c0_126], %213 {strides = array<i32>} : memref<108x512xf32, #tpu.memory_space<vmem>>, vector<4x512xf32>,
    %c8_i32_127 = arith.constant 8 : i32
    %215 = tpu.dynamic_rotate %164 by %c8_i32_127 dim 1 : vector<4x512xf32>, i32 -> vector<4x512xf32>
    %c10_128 = arith.constant 10 : index
    %c0_129 = arith.constant 0 : index
    %216 = vector.load %arg2[%c10_128, %c0_129] : memref<27x512xf32, #tpu.memory_space<vmem>>, vector<1x512xf32>
    %217 = vector.broadcast %216 : vector<1x512xf32> to vector<4x512xf32>
    %218 = arith.mulf %215, %217 : vector<4x512xf32>
    %c40_130 = arith.constant 40 : index
    %c0_131 = arith.constant 0 : index
    %219 = vector.load %arg8[%c40_130, %c0_131] : memref<108x512xf32, #tpu.memory_space<vmem>>, vector<4x512xf32>
    tpu.vector_store %arg8[%c40_130, %c0_131], %218 {strides = array<i32>} : memref<108x512xf32, #tpu.memory_space<vmem>>, vector<4x512xf32>,
    %c7_i32_132 = arith.constant 7 : i32
    %220 = tpu.dynamic_rotate %164 by %c7_i32_132 dim 1 : vector<4x512xf32>, i32 -> vector<4x512xf32>
    %c11_133 = arith.constant 11 : index
    %c0_134 = arith.constant 0 : index
    %221 = vector.load %arg2[%c11_133, %c0_134] : memref<27x512xf32, #tpu.memory_space<vmem>>, vector<1x512xf32>
    %222 = vector.broadcast %221 : vector<1x512xf32> to vector<4x512xf32>
    %223 = arith.mulf %220, %222 : vector<4x512xf32>
    %c44_135 = arith.constant 44 : index
    %c0_136 = arith.constant 0 : index
    %224 = vector.load %arg8[%c44_135, %c0_136] : memref<108x512xf32, #tpu.memory_space<vmem>>, vector<4x512xf32>
    tpu.vector_store %arg8[%c44_135, %c0_136], %223 {strides = array<i32>} : memref<108x512xf32, #tpu.memory_space<vmem>>, vector<4x512xf32>,
    %c1_i32_137 = arith.constant 1 : i32
    %225 = tpu.dynamic_rotate %164 by %c1_i32_137 dim 1 : vector<4x512xf32>, i32 -> vector<4x512xf32>
    %c12_138 = arith.constant 12 : index
    %c0_139 = arith.constant 0 : index
    %226 = vector.load %arg2[%c12_138, %c0_139] : memref<27x512xf32, #tpu.memory_space<vmem>>, vector<1x512xf32>
    %227 = vector.broadcast %226 : vector<1x512xf32> to vector<4x512xf32>
    %228 = arith.mulf %225, %227 : vector<4x512xf32>
    %c48_140 = arith.constant 48 : index
    %c0_141 = arith.constant 0 : index
    %229 = vector.load %arg8[%c48_140, %c0_141] : memref<108x512xf32, #tpu.memory_space<vmem>>, vector<4x512xf32>
    tpu.vector_store %arg8[%c48_140, %c0_141], %228 {strides = array<i32>} : memref<108x512xf32, #tpu.memory_space<vmem>>, vector<4x512xf32>,
    %c13_142 = arith.constant 13 : index
    %c0_143 = arith.constant 0 : index
    %230 = vector.load %arg2[%c13_142, %c0_143] : memref<27x512xf32, #tpu.memory_space<vmem>>, vector<1x512xf32>
    %231 = vector.broadcast %230 : vector<1x512xf32> to vector<4x512xf32>
    %232 = arith.mulf %164, %231 : vector<4x512xf32>
    %c52_144 = arith.constant 52 : index
    %c0_145 = arith.constant 0 : index
    %233 = vector.load %arg8[%c52_144, %c0_145] : memref<108x512xf32, #tpu.memory_space<vmem>>, vector<4x512xf32>
    tpu.vector_store %arg8[%c52_144, %c0_145], %232 {strides = array<i32>} : memref<108x512xf32, #tpu.memory_space<vmem>>, vector<4x512xf32>,
    %c511_i32_146 = arith.constant 511 : i32
    %234 = tpu.dynamic_rotate %164 by %c511_i32_146 dim 1 : vector<4x512xf32>, i32 -> vector<4x512xf32>
    %c14_147 = arith.constant 14 : index
    %c0_148 = arith.constant 0 : index
    %235 = vector.load %arg2[%c14_147, %c0_148] : memref<27x512xf32, #tpu.memory_space<vmem>>, vector<1x512xf32>
    %236 = vector.broadcast %235 : vector<1x512xf32> to vector<4x512xf32>
    %237 = arith.mulf %234, %236 : vector<4x512xf32>
    %c56_149 = arith.constant 56 : index
    %c0_150 = arith.constant 0 : index
    %238 = vector.load %arg8[%c56_149, %c0_150] : memref<108x512xf32, #tpu.memory_space<vmem>>, vector<4x512xf32>
    tpu.vector_store %arg8[%c56_149, %c0_150], %237 {strides = array<i32>} : memref<108x512xf32, #tpu.memory_space<vmem>>, vector<4x512xf32>,
    %c505_i32_151 = arith.constant 505 : i32
    %239 = tpu.dynamic_rotate %164 by %c505_i32_151 dim 1 : vector<4x512xf32>, i32 -> vector<4x512xf32>
    %c15_152 = arith.constant 15 : index
    %c0_153 = arith.constant 0 : index
    %240 = vector.load %arg2[%c15_152, %c0_153] : memref<27x512xf32, #tpu.memory_space<vmem>>, vector<1x512xf32>
    %241 = vector.broadcast %240 : vector<1x512xf32> to vector<4x512xf32>
    %242 = arith.mulf %239, %241 : vector<4x512xf32>
    %c60_154 = arith.constant 60 : index
    %c0_155 = arith.constant 0 : index
    %243 = vector.load %arg8[%c60_154, %c0_155] : memref<108x512xf32, #tpu.memory_space<vmem>>, vector<4x512xf32>
    tpu.vector_store %arg8[%c60_154, %c0_155], %242 {strides = array<i32>} : memref<108x512xf32, #tpu.memory_space<vmem>>, vector<4x512xf32>,
    %c504_i32_156 = arith.constant 504 : i32
    %244 = tpu.dynamic_rotate %164 by %c504_i32_156 dim 1 : vector<4x512xf32>, i32 -> vector<4x512xf32>
    %c16_157 = arith.constant 16 : index
    %c0_158 = arith.constant 0 : index
    %245 = vector.load %arg2[%c16_157, %c0_158] : memref<27x512xf32, #tpu.memory_space<vmem>>, vector<1x512xf32>
    %246 = vector.broadcast %245 : vector<1x512xf32> to vector<4x512xf32>
    %247 = arith.mulf %244, %246 : vector<4x512xf32>
    %c64_159 = arith.constant 64 : index
    %c0_160 = arith.constant 0 : index
    %248 = vector.load %arg8[%c64_159, %c0_160] : memref<108x512xf32, #tpu.memory_space<vmem>>, vector<4x512xf32>
    tpu.vector_store %arg8[%c64_159, %c0_160], %247 {strides = array<i32>} : memref<108x512xf32, #tpu.memory_space<vmem>>, vector<4x512xf32>,
    %c503_i32_161 = arith.constant 503 : i32
    %249 = tpu.dynamic_rotate %164 by %c503_i32_161 dim 1 : vector<4x512xf32>, i32 -> vector<4x512xf32>
    %c17_162 = arith.constant 17 : index
    %c0_163 = arith.constant 0 : index
    %250 = vector.load %arg2[%c17_162, %c0_163] : memref<27x512xf32, #tpu.memory_space<vmem>>, vector<1x512xf32>
    %251 = vector.broadcast %250 : vector<1x512xf32> to vector<4x512xf32>
    %252 = arith.mulf %249, %251 : vector<4x512xf32>
    %c68_164 = arith.constant 68 : index
    %c0_165 = arith.constant 0 : index
    %253 = vector.load %arg8[%c68_164, %c0_165] : memref<108x512xf32, #tpu.memory_space<vmem>>, vector<4x512xf32>
    tpu.vector_store %arg8[%c68_164, %c0_165], %252 {strides = array<i32>} : memref<108x512xf32, #tpu.memory_space<vmem>>, vector<4x512xf32>,
    %c457_i32_166 = arith.constant 457 : i32
    %254 = tpu.dynamic_rotate %164 by %c457_i32_166 dim 1 : vector<4x512xf32>, i32 -> vector<4x512xf32>
    %c18_167 = arith.constant 18 : index
    %c0_168 = arith.constant 0 : index
    %255 = vector.load %arg2[%c18_167, %c0_168] : memref<27x512xf32, #tpu.memory_space<vmem>>, vector<1x512xf32>
    %256 = vector.broadcast %255 : vector<1x512xf32> to vector<4x512xf32>
    %257 = arith.mulf %254, %256 : vector<4x512xf32>
    %c72_169 = arith.constant 72 : index
    %c0_170 = arith.constant 0 : index
    %258 = vector.load %arg8[%c72_169, %c0_170] : memref<108x512xf32, #tpu.memory_space<vmem>>, vector<4x512xf32>
    tpu.vector_store %arg8[%c72_169, %c0_170], %257 {strides = array<i32>} : memref<108x512xf32, #tpu.memory_space<vmem>>, vector<4x512xf32>,
    %c456_i32_171 = arith.constant 456 : i32
    %259 = tpu.dynamic_rotate %164 by %c456_i32_171 dim 1 : vector<4x512xf32>, i32 -> vector<4x512xf32>
    %c19_172 = arith.constant 19 : index
    %c0_173 = arith.constant 0 : index
    %260 = vector.load %arg2[%c19_172, %c0_173] : memref<27x512xf32, #tpu.memory_space<vmem>>, vector<1x512xf32>
    %261 = vector.broadcast %260 : vector<1x512xf32> to vector<4x512xf32>
    %262 = arith.mulf %259, %261 : vector<4x512xf32>
    %c76_174 = arith.constant 76 : index
    %c0_175 = arith.constant 0 : index
    %263 = vector.load %arg8[%c76_174, %c0_175] : memref<108x512xf32, #tpu.memory_space<vmem>>, vector<4x512xf32>
    tpu.vector_store %arg8[%c76_174, %c0_175], %262 {strides = array<i32>} : memref<108x512xf32, #tpu.memory_space<vmem>>, vector<4x512xf32>,
    %c455_i32_176 = arith.constant 455 : i32
    %264 = tpu.dynamic_rotate %164 by %c455_i32_176 dim 1 : vector<4x512xf32>, i32 -> vector<4x512xf32>
    %c20_177 = arith.constant 20 : index
    %c0_178 = arith.constant 0 : index
    %265 = vector.load %arg2[%c20_177, %c0_178] : memref<27x512xf32, #tpu.memory_space<vmem>>, vector<1x512xf32>
    %266 = vector.broadcast %265 : vector<1x512xf32> to vector<4x512xf32>
    %267 = arith.mulf %264, %266 : vector<4x512xf32>
    %c80_179 = arith.constant 80 : index
    %c0_180 = arith.constant 0 : index
    %268 = vector.load %arg8[%c80_179, %c0_180] : memref<108x512xf32, #tpu.memory_space<vmem>>, vector<4x512xf32>
    tpu.vector_store %arg8[%c80_179, %c0_180], %267 {strides = array<i32>} : memref<108x512xf32, #tpu.memory_space<vmem>>, vector<4x512xf32>,
    %c449_i32_181 = arith.constant 449 : i32
    %269 = tpu.dynamic_rotate %164 by %c449_i32_181 dim 1 : vector<4x512xf32>, i32 -> vector<4x512xf32>
    %c21_182 = arith.constant 21 : index
    %c0_183 = arith.constant 0 : index
    %270 = vector.load %arg2[%c21_182, %c0_183] : memref<27x512xf32, #tpu.memory_space<vmem>>, vector<1x512xf32>
    %271 = vector.broadcast %270 : vector<1x512xf32> to vector<4x512xf32>
    %272 = arith.mulf %269, %271 : vector<4x512xf32>
    %c84_184 = arith.constant 84 : index
    %c0_185 = arith.constant 0 : index
    %273 = vector.load %arg8[%c84_184, %c0_185] : memref<108x512xf32, #tpu.memory_space<vmem>>, vector<4x512xf32>
    tpu.vector_store %arg8[%c84_184, %c0_185], %272 {strides = array<i32>} : memref<108x512xf32, #tpu.memory_space<vmem>>, vector<4x512xf32>,
    %c448_i32_186 = arith.constant 448 : i32
    %274 = tpu.dynamic_rotate %164 by %c448_i32_186 dim 1 : vector<4x512xf32>, i32 -> vector<4x512xf32>
    %c22_187 = arith.constant 22 : index
    %c0_188 = arith.constant 0 : index
    %275 = vector.load %arg2[%c22_187, %c0_188] : memref<27x512xf32, #tpu.memory_space<vmem>>, vector<1x512xf32>
    %276 = vector.broadcast %275 : vector<1x512xf32> to vector<4x512xf32>
    %277 = arith.mulf %274, %276 : vector<4x512xf32>
    %c88_189 = arith.constant 88 : index
    %c0_190 = arith.constant 0 : index
    %278 = vector.load %arg8[%c88_189, %c0_190] : memref<108x512xf32, #tpu.memory_space<vmem>>, vector<4x512xf32>
    tpu.vector_store %arg8[%c88_189, %c0_190], %277 {strides = array<i32>} : memref<108x512xf32, #tpu.memory_space<vmem>>, vector<4x512xf32>,
    %c447_i32_191 = arith.constant 447 : i32
    %279 = tpu.dynamic_rotate %164 by %c447_i32_191 dim 1 : vector<4x512xf32>, i32 -> vector<4x512xf32>
    %c23_192 = arith.constant 23 : index
    %c0_193 = arith.constant 0 : index
    %280 = vector.load %arg2[%c23_192, %c0_193] : memref<27x512xf32, #tpu.memory_space<vmem>>, vector<1x512xf32>
    %281 = vector.broadcast %280 : vector<1x512xf32> to vector<4x512xf32>
    %282 = arith.mulf %279, %281 : vector<4x512xf32>
    %c92_194 = arith.constant 92 : index
    %c0_195 = arith.constant 0 : index
    %283 = vector.load %arg8[%c92_194, %c0_195] : memref<108x512xf32, #tpu.memory_space<vmem>>, vector<4x512xf32>
    tpu.vector_store %arg8[%c92_194, %c0_195], %282 {strides = array<i32>} : memref<108x512xf32, #tpu.memory_space<vmem>>, vector<4x512xf32>,
    %c441_i32_196 = arith.constant 441 : i32
    %284 = tpu.dynamic_rotate %164 by %c441_i32_196 dim 1 : vector<4x512xf32>, i32 -> vector<4x512xf32>
    %c24_197 = arith.constant 24 : index
    %c0_198 = arith.constant 0 : index
    %285 = vector.load %arg2[%c24_197, %c0_198] : memref<27x512xf32, #tpu.memory_space<vmem>>, vector<1x512xf32>
    %286 = vector.broadcast %285 : vector<1x512xf32> to vector<4x512xf32>
    %287 = arith.mulf %284, %286 : vector<4x512xf32>
    %c96_199 = arith.constant 96 : index
    %c0_200 = arith.constant 0 : index
    %288 = vector.load %arg8[%c96_199, %c0_200] : memref<108x512xf32, #tpu.memory_space<vmem>>, vector<4x512xf32>
    tpu.vector_store %arg8[%c96_199, %c0_200], %287 {strides = array<i32>} : memref<108x512xf32, #tpu.memory_space<vmem>>, vector<4x512xf32>,
    %c440_i32_201 = arith.constant 440 : i32
    %289 = tpu.dynamic_rotate %164 by %c440_i32_201 dim 1 : vector<4x512xf32>, i32 -> vector<4x512xf32>
    %c25_202 = arith.constant 25 : index
    %c0_203 = arith.constant 0 : index
    %290 = vector.load %arg2[%c25_202, %c0_203] : memref<27x512xf32, #tpu.memory_space<vmem>>, vector<1x512xf32>
    %291 = vector.broadcast %290 : vector<1x512xf32> to vector<4x512xf32>
    %292 = arith.mulf %289, %291 : vector<4x512xf32>
    %c100_204 = arith.constant 100 : index
    %c0_205 = arith.constant 0 : index
    %293 = vector.load %arg8[%c100_204, %c0_205] : memref<108x512xf32, #tpu.memory_space<vmem>>, vector<4x512xf32>
    tpu.vector_store %arg8[%c100_204, %c0_205], %292 {strides = array<i32>} : memref<108x512xf32, #tpu.memory_space<vmem>>, vector<4x512xf32>,
    %c439_i32_206 = arith.constant 439 : i32
    %294 = tpu.dynamic_rotate %164 by %c439_i32_206 dim 1 : vector<4x512xf32>, i32 -> vector<4x512xf32>
    %c26_207 = arith.constant 26 : index
    %c0_208 = arith.constant 0 : index
    %295 = vector.load %arg2[%c26_207, %c0_208] : memref<27x512xf32, #tpu.memory_space<vmem>>, vector<1x512xf32>
    %296 = vector.broadcast %295 : vector<1x512xf32> to vector<4x512xf32>
    %297 = arith.mulf %294, %296 : vector<4x512xf32>
    %c104_209 = arith.constant 104 : index
    %c0_210 = arith.constant 0 : index
    %298 = vector.load %arg8[%c104_209, %c0_210] : memref<108x512xf32, #tpu.memory_space<vmem>>, vector<4x512xf32>
    tpu.vector_store %arg8[%c104_209, %c0_210], %297 {strides = array<i32>} : memref<108x512xf32, #tpu.memory_space<vmem>>, vector<4x512xf32>,
    %c0_211 = arith.constant 0 : index
    %c0_212 = arith.constant 0 : index
    %299 = vector.load %arg5[%c0_211, %c0_212] : memref<6x108xf32, #tpu.memory_space<vmem>>, vector<6x108xf32>
    %c0_213 = arith.constant 0 : index
    %c0_214 = arith.constant 0 : index
    %300 = vector.load %arg8[%c0_213, %c0_214] : memref<108x512xf32, #tpu.memory_space<vmem>>, vector<108x512xf32>
    %cst_215 = arith.constant dense<0.000000e+00> : vector<6x512xf32>
    %301 = tpu.matmul %299, %300, %cst_215 {dimension_numbers = #tpu.dot_dimension_numbers<[1], [0], [0], [1], [0, 0, 1, 1], [], []>} : vector<6x108xf32>, vector<108x512xf32>, vector<6x512xf32> -> vector<6x512xf32>
    %c0_216 = arith.constant 0 : index
    %c0_217 = arith.constant 0 : index
    %302 = vector.load %arg6[%c0_216, %c0_217] : memref<6x1xf32, #tpu.memory_space<vmem>>, vector<6x1xf32>
    %303 = vector.broadcast %302 : vector<6x1xf32> to vector<6x512xf32>
    %304 = arith.addf %301, %303 : vector<6x512xf32>
    %c0_218 = arith.constant 0 : index
    %c0_219 = arith.constant 0 : index
    %c0_220 = arith.constant 0 : index
    %305 = vector.load %arg7[%c0_218, %c0_219, %c0_220] : memref<1x6x512xf32, #tpu.memory_space<vmem>>, vector<1x6x512xf32>
    %306 = vector.shape_cast %305 : vector<1x6x512xf32> to vector<6x512xf32>
    %307 = vector.shape_cast %304 : vector<6x512xf32> to vector<1x6x512xf32>
    tpu.vector_store %arg7[%c0_218, %c0_219, %c0_220], %307 {strides = array<i32>} : memref<1x6x512xf32, #tpu.memory_space<vmem>>, vector<1x6x512xf32>,
    return
  }
  func.func @transform_0(%arg0: i32) -> (i32, i32, i32) {
    %c0_i32 = arith.constant 0 : i32
    %c0_i32_0 = arith.constant 0 : i32
    %c0_i32_1 = arith.constant 0 : i32
    return %arg0, %c0_i32, %c0_i32_0 : i32, i32, i32
  }
  func.func @transform_1(%arg0: i32) -> (i32, i32) {
    %c0_i32 = arith.constant 0 : i32
    %c0_i32_0 = arith.constant 0 : i32
    %c0_i32_1 = arith.constant 0 : i32
    return %c0_i32, %c0_i32_0 : i32, i32
  }
  func.func @transform_2(%arg0: i32) -> (i32, i32) {
    %c0_i32 = arith.constant 0 : i32
    %c0_i32_0 = arith.constant 0 : i32
    %c0_i32_1 = arith.constant 0 : i32
    return %c0_i32, %c0_i32_0 : i32, i32
  }
  func.func @transform_3(%arg0: i32) -> (i32, i32) {
    %c0_i32 = arith.constant 0 : i32
    %c0_i32_0 = arith.constant 0 : i32
    %c0_i32_1 = arith.constant 0 : i32
    return %c0_i32, %c0_i32_0 : i32, i32
  }
  func.func @transform_4(%arg0: i32) -> (i32, i32) {
    %c0_i32 = arith.constant 0 : i32
    %c0_i32_0 = arith.constant 0 : i32
    %c0_i32_1 = arith.constant 0 : i32
    return %c0_i32, %c0_i32_0 : i32, i32
  }
  func.func @transform_5(%arg0: i32) -> (i32, i32) {
    %c0_i32 = arith.constant 0 : i32
    %c0_i32_0 = arith.constant 0 : i32
    %c0_i32_1 = arith.constant 0 : i32
    return %c0_i32, %c0_i32_0 : i32, i32
  }
  func.func @transform_6(%arg0: i32) -> (i32, i32, i32) {
    %c0_i32 = arith.constant 0 : i32
    %c0_i32_0 = arith.constant 0 : i32
    %c0_i32_1 = arith.constant 0 : i32
    return %arg0, %c0_i32, %c0_i32_0 : i32, i32, i32
  }
}

</mosaic_0001>

<bundles_post_ra>
// kernel: tpu_custom_call.1
= control target key start
LH: loop header
LB: loop body
LE: loop exit
PB: predicated region body
PF: predicated region fallthrough
CT: control target
= control target key end

     0   :  { %11 = vsyncpa [#allocation4], 0  ;;  %s4941_s0 = inlined_call_operand.hbm [shape: f32[2,4,512], index: 0, kind: input, shape index: {}]   ;;  %s4942_s1 = inlined_call_operand.hbm [shape: f32[27,512], index: 1, kind: input, shape index: {}]   ;;  %s4943_s2 = inlined_call_operand.vmem [shape: f32[4,108], index: 2, kind: input, shape index: {}]   ;;  %s4944_s3 = inlined_call_operand.vmem [shape: f32[4,1], index: 3, kind: input, shape index: {}]   ;;  %s4945_s4 = inlined_call_operand.vmem [shape: f32[6,108], index: 4, kind: input, shape index: {}]   ;;  %s4946_s5 = inlined_call_operand.vmem [shape: f32[6,1], index: 5, kind: input, shape index: {}]   ;;  %s4947_s6 = inlined_call_operand.vmem [shape: f32[2,6,512], index: 6, kind: output, shape index: {}]  }
   0x1   :  { %13 = vsyncpa [#allocation4 + $0x1], 0 }
   0x2   :  { %14 = vsyncpa [#allocation6], 0  ;;  %s3622_s21 = smov 0   ;;  %s3624_s22 = smov 0  }
   0x3   :  { %s3626_s23 = smov 0   ;;  %s3628_s24 = smov 0  }
   0x4 LB: > { %s3641_s25 = sadd.s32 4294967295, %s3561_s24   ;;  %p40_p0 = scmp.ne.s32.totalorder %s3553_s22, %s3549_s21  ;;  %s3561_s24 = sphi %s3628_s24, %s5002_s24   ;;  %s3557_s23 = sphi %s3626_s23, %s5001_s23   ;;  %s3553_s22 = sphi %s3624_s22, %s5000_s22   ;;  %s3549_s21 = sphi %s3622_s21, %s4999_s21  }
   0x5   : > { %p4948_p1 = scmp.eq.s32.totalorder %s3641_s25, 0  ;;  %p3241_p2 = scmp.ge.s32.totalorder %s3561_s24, 1 }
   0x6   : > { %p182_p3 = scmp.lt.s32.totalorder %s3561_s24, 3  ;;  %s3563_s28 = smov [#allocation5]  }
   0x7   : > { %p3649_p4 = por %p4948_p1, %p40_p0  ;;  %s194_s29 = sshll.u32 %s3563_s28, 4  ;;  %s195_s29 = int_to_ptr.vmem [resolvable:$true] %s194_s29 }
   0x8   : > { %p3653_p5 = pnand %p3241_p2, %p182_p3  ;;  %s3666_s7 = sadd.s32 1, %s3561_s24  }
   0x9   : > { %s4959_s26 = scalar_select %p3649_p4, 1, 0 }
   0xa   : > { %s4960_s27 = scalar_select %p3653_p5, 1, 0 }
   0xb   : > { %p3394_p6 = pneg %p3653_p5  ;;  %s27_s8 = sadd.s32 1, %s3557_s23 }
   0xc   : > { %s24_s9 = ssub.s32 %s3561_s24, %s3666_s7  ;;  %s3465_s12 = scalar_lea.hbm %s4942_s1, 2048 }
   0xd   : > { %p3661_p7 = pnand %p3394_p6, %p4948_p1  ;;  %p3466_p8 = scmp.ne.s32.totalorder %s4942_s1, %s3465_s12 }
   0xe   : > { %p3472_p12 = scmp.lt.u32.totalorder %s3465_s12, %s4942_s1 }
   0xf   : > { %p3467_p9 = pneg %p3661_p7 }
  0x11   : > { %p3468_p10 = pnand %p3467_p9, %p3466_p8 }
  0x13   : > { %p3469_p11 = pneg %p3468_p10 }
  0x15   : > { %p3474_p13 = pnand %p3472_p12, %p3469_p11 }
  0x17   : > { %3477 = shalt.err (!%p3474_p13)
}
  0x18   : > { %s3478_s17 = scalar_lea.vmem %s195_s29, 2048  ;;  %p3486_p6 = scmp.lt.s32.totalorder %s195_s29, %s195_s29 }
  0x19   : > { %p3479_p0 = scmp.ne.s32.totalorder %s195_s29, %s3478_s17  ;;  %p3487_p1 = scmp.lt.s32.totalorder %s3478_s17, %s3478_s17 }
  0x1b   : > { %p3481_p2 = pnand %p3479_p0, %p3467_p9  ;;  %p3488_p4 = por %p3487_p1, %p3486_p6 }
  0x1d   : > { %p3482_p3 = pneg %p3481_p2 }
  0x1f   : > { %p3489_p5 = pnand %p3488_p4, %p3482_p3 }
  0x21   : > { %3492 = shalt.err (!%p3489_p5)
}
  0x22   : > { %s3564_s18 = smov 512   ;;  %s3565_s19 = smov 32  }
  0x23   : > { %3397 = dma.hbm_to_vmem [thread:$0]  (!%p3661_p7), %s4942_s1, 2048, %s195_s29, [#allocation6], %s3564_s18, %s3564_s18, %s3565_s19  }
  0x24   : > { %p25_p8 = scmp.eq.s32.totalorder %s24_s9, 0  ;;  %p34_p9 = scmp.ne.s32.totalorder %s3557_s23, %s3553_s22 }
  0x25   : > { %p35_p1 = scmp.eq.s32.totalorder %s3561_s24, 0  ;;  %p3403_p4 = scmp.lt.s32.totalorder %s3561_s24, 2 }
  0x26   : > { %s3692_s28 = scalar_select %p25_p8, %s3557_s23, %s27_s8  }
  0x27   : > { %p36_p5 = por %p35_p1, %p34_p9  ;;  %s220_s10 = sand.u32 1, %s3557_s23  }
  0x28   : > { %s3244_s11 = sshll.u32 %s220_s10, 4  ;;  %s3266_s12 = sshll.u32 %s3561_s24, 8 }
  0x29   : > { %s3699_s15 = scalar_lea.hbm %s4941_s0, %s3266_s12  ;;  %s224_s29 = scalar_lea.vmem [#allocation3], %s3244_s11 }
  0x2a   : > { %s232_s30 = sshll.u32 %s224_s29, 4  ;;  %p3703_p7 = pnand %p3403_p4, %p36_p5  ;;  %s3701_s30 = int_to_ptr.vmem [resolvable:$true] %s232_s30 }
  0x2b   : > { %s221_s24 = scalar_lea.sflag [#allocation4], %s220_s10  ;;  %s3493_s9 = scalar_lea.hbm %s3699_s15, 256 }
  0x2c   : > { %p3494_p10 = scmp.ne.s32.totalorder %s3699_s15, %s3493_s9  ;;  %p3495_p11 = pneg %p3703_p7 }
  0x2d   : > { %s3498_s18 = scalar_lea.hbm %s4941_s0, 512  ;;  %p3499_p0 = scmp.lt.u32.totalorder %s3699_s15, %s4941_s0 }
  0x2e   : > { %p3496_p12 = pnand %p3495_p11, %p3494_p10  ;;  %p3500_p2 = scmp.lt.u32.totalorder %s3498_s18, %s3493_s9 }
  0x2f   : > { %p3502_p6 = scmp.lt.u32.totalorder %s3493_s9, %s3699_s15 }
  0x30   : > { %p3497_p13 = pneg %p3496_p12  ;;  %p3501_p3 = por %p3500_p2, %p3499_p0 }
  0x32   : > { %p3503_p8 = por %p3502_p6, %p3501_p3 }
  0x34   : > { %p3504_p9 = pnand %p3503_p8, %p3497_p13 }
  0x36   : > { %3507 = shalt.err (!%p3504_p9)
}
  0x37   : > { %s3508_s21 = scalar_lea.vmem %s3701_s30, 256  ;;  %s3566_s10 = smov [#allocation3]  }
  0x38   : > { %p3509_p1 = scmp.ne.s32.totalorder %s3701_s30, %s3508_s21  ;;  %s3513_s11 = sshll.u32 %s3566_s10, 4  ;;  %s3514_s11 = int_to_ptr.vmem [resolvable:$false] %s3513_s11 }
  0x39   : > { %s3515_s12 = scalar_lea.vmem %s3514_s11, 512  ;;  %p3516_p10 = scmp.lt.s32.totalorder %s3701_s30, %s3514_s11 }
  0x3a   : > { %p3511_p4 = pnand %p3509_p1, %p3495_p11  ;;  %p3517_p12 = scmp.lt.s32.totalorder %s3515_s12, %s3508_s21 }
  0x3c   : > { %p3512_p5 = pneg %p3511_p4  ;;  %p3518_p0 = por %p3517_p12, %p3516_p10 }
  0x3e   : > { %p3519_p2 = pnand %p3518_p0, %p3512_p5 }
  0x40   : > { %3522 = shalt.err (!%p3519_p2)
}
  0x41   : > { %3401 = dma.hbm_to_vmem [thread:$0]  (!%p3703_p7), %s3699_s15, 256, %s3701_s30, %s221_s24  }
  0x42   : > { %p4963_p13 = scmp.ne.s32.totalorder %s4960_s27, 0 }
  0x43   : > { %s243_s13 = sand.u32 (!%p4963_p13), 1, %s3553_s22   ;;  %p4964_p11 = scmp.ne.s32.totalorder (!%p4963_p13), %s4959_s26, 0 }
  0x44   : > { %241 = sbr.rel (%p4963_p13) target bundleno = 1384 (0x568), region = 44  ;;  %s3248_s14 = sshll.u32 (!%p4963_p13), %s243_s13, 4 }
  0x45   : > { %s244_s29 = scalar_lea.sflag (!%p4963_p13), [#allocation4], %s243_s13  ;;  %s247_s9 = scalar_lea.vmem (!%p4963_p13), [#allocation3], %s3248_s14 }
  0x4b   : > { %3540 = dma.done.wait (%p4964_p11), %s244_s29, 256  }
  0x4c   : > { %3542 = vsyncadd (%p4964_p11), %s244_s29, 4294967040  ;;  %p4965_p3 = scmp.eq.s32.totalorder %s3641_s25, 0 }
  0x4e   : > { %3544 = dma.done.wait (%p4965_p3), [#allocation6], 2048   ;;  %p4966_p6 = pmov %p4965_p3 }
  0x4f   : > { %v3743_v0 = vld [vmem:[%s247_s9] sm:$0xff]  ;;  %s3567_s27 = smov 65   ;;  %s3568_s15 = smov 72   ;;  %v3753_v2 = vld [vmem:[%s247_s9 + $0x8] sm:$0xff]  ;;  %v301_v4 = vlaneseq }
  0x50   : > { %3546 = vsyncadd (%p4966_p6), [#allocation6], 4294965248  ;;  %438 = vrot.lane.b32.xlu1 %v3743_v0, %s3567_s27  ;;  %338 = vrot.lane.b32.xlu0 %v3743_v0, %s3568_s15  ;;  %v3751_v1 = vcombine.high %v3743_v0, %v3743_v0  ;;  %v3761_v3 = vcombine.high %v3753_v2, %v3753_v2  ;;  %s3569_s26 = smov 73   ;;  %s3570_s30 = smov 71  }
  0x51   : > { %s3571_s8 = smov 63   ;;  %s3572_s24 = smov 56   ;;  %v311_v5 = vshrl.u32 %v301_v4, 7  ;;  %v939_v8 = vld [vmem:[#allocation5 + $0x25] ss:$8 sm:$0xf] }
  0x52   : > { %s3573_s16 = smov 64   ;;  %s3574_s17 = smov 57   ;;  %v3881_v20 = vand.u32 127, %v301_v4  ;;  %v3887_v21 = vld [vmem:[#allocation5 + $0x3] ss:$8 sm:$0xf] }
  0x53   : > { %s3575_s18 = smov 9   ;;  %s3576_s19 = smov 7   ;;  %v3847_v6 = vsub.s32 0, %v311_v5  ;;  %v3849_v7 = vsub.s32 1, %v311_v5  ;;  %v3870_v14 = vsub.s32 3, %v311_v5  ;;  %v3872_v15 = vsub.s32 2, %v311_v5 }
  0x54   : > { %440 = vrot.lane.b32.xlu1 %v3751_v1, %s3567_s27  ;;  %340 = vrot.lane.b32.xlu0 %v3751_v1, %s3568_s15  ;;  %s3577_s20 = smov 55   ;;  %s3578_s21 = smov 8   ;;  %v3889_v22 = vld [vmem:[#allocation5 + $0x45] ss:$8 sm:$0xf]  ;;  %vm446_vm0 = vcmp.lt.s32.totalorder %v3881_v20, 65 }
  0x55   : > { %s3579_s10 = smov 121   ;;  %v944_v9 = vrot.slane %v939_v8, %v3847_v6  ;;  %v948_v10 = vrot.slane %v939_v8, %v3849_v7  ;;  %s3580_s11 = smov 1   ;;  %v952_v16 = vrot.slane %v939_v8, %v3872_v15  ;;  %v956_v17 = vrot.slane %v939_v8, %v3870_v14  ;;  %v3891_v24 = vld [vmem:[#allocation5 + $0x1] ss:$8 sm:$0xf] }
  0x56   : > { %s3581_s12 = smov 127   ;;  %v3893_v25 = vld [vmem:[#allocation5 + $0x43] ss:$8 sm:$0xf]  ;;  %v461_v28 = vrot.slane %v3887_v21, %v3849_v7  ;;  %s3582_s13 = smov 119   ;;  %v1284_v29 = vrot.slane %v3889_v22, %v3847_v6  ;;  %vm346_vm1 = vcmp.lt.s32.totalorder %v3881_v20, 72  ;;  %v361_v30 = vrot.slane %v3891_v24, %v3849_v7 }
  0x57   : > { %v957_v11 = vcombine.low %v944_v9, %v948_v10  ;;  %v958_v18 = vcombine.low %v952_v16, %v956_v17  ;;  %v1210_v31 = vrot.slane %v3893_v25, %v3847_v6  ;;  %v457_v34 = vrot.slane %v3887_v21, %v3847_v6  ;;  %v3929_v44 = vld [vmem:[#allocation5] ss:$8 sm:$0xf]  ;;  %v3931_v45 = vld [vmem:[#allocation5 + $0x42] ss:$8 sm:$0xf] }
  0x58   : > { %444 = vrot.lane.b32.xlu1 %v3761_v3, %s3567_s27  ;;  %344 = vrot.lane.b32.xlu0 %v3761_v3, %s3568_s15  ;;  %v1296_v35 = vrot.slane %v3889_v22, %v3870_v14  ;;  %v357_v38 = vrot.slane %v3891_v24, %v3847_v6  ;;  %v1222_v39 = vrot.slane %v3893_v25, %v3870_v14  ;;  %vm303_vm2 = vcmp.lt.s32.totalorder %v3881_v20, 73  ;;  %s3583_s14 = smov 120   ;;  %v3954_v60 = vld [vmem:[#allocation5 + $0x2] ss:$8 sm:$0xf]  ;;  %p280_p7 = scmp.lt.s32.totalorder %s3641_s25, 1 }
  0x59   : > { %v961_v12 = vmul.f32 %v957_v11, %v3743_v0  ;;  %v962_v19 = vmul.f32 %v958_v18, %v3753_v2  ;;  %v317_v54 = vrot.slane %v3929_v44, %v3849_v7  ;;  %v1179_v55 = vrot.slane %v3931_v45, %v3847_v6  ;;  %v3956_v61 = vld [vmem:[#allocation5 + $0x44] ss:$8 sm:$0xf] }
  0x5a   : > { %vm402_vm3 = vcmp.lt.s32.totalorder %v3881_v20, 71  ;;  %vm546_vm4 = vcmp.lt.s32.totalorder %v3881_v20, 63  ;;  %vm646_vm5 = vcmp.lt.s32.totalorder %v3881_v20, 56  ;;  %vm502_vm6 = vcmp.lt.s32.totalorder %v3881_v20, 64  ;;  %s5004_s25 = smov (!%p280_p7, %s3641_s25), 1 }
  0x5b   : > { %970 = vst [vmem:[#allocation2 + $0xc8] sm:$0xf0] %v961_v12  ;;  %v965_v13 = vcombine.low %v961_v12, %v961_v12  ;;  %972 = vst [vmem:[#allocation2 + $0xd8] sm:$0xf0] %v962_v19  ;;  %v966_v23 = vcombine.low %v962_v19, %v962_v19  ;;  %v417_v12 = vrot.slane %v3954_v60, %v3849_v7  ;;  %vm602_vm7 = vcmp.lt.s32.totalorder %v3881_v20, 57 }
  0x5c   : > { %295 = vrot.lane.b32.xlu1 %v3751_v1, %s3569_s26  ;;  %293 = vrot.lane.b32.xlu0 %v3743_v0, %s3569_s26  ;;  %v1214_v19 = vrot.slane %v3893_v25, %v3849_v7  ;;  %vm746_vm8 = vcmp.lt.s32.totalorder %v3881_v20, 9  ;;  %vm846_vm9 = vcmp.lt.s32.totalorder %v3881_v20, 7  ;;  %vm4958_vm10 = vcmp.lt.s32.totalorder %v3881_v20, 55 }
  0x5d   : > { %969 = vst [vmem:[#allocation2 + $0xc0] sm:$0xf0] %v965_v13  ;;  %971 = vst [vmem:[#allocation2 + $0xd0] sm:$0xf0] %v966_v23  ;;  %v1253_v13 = vrot.slane %v3956_v61, %v3847_v6  ;;  %vm4956_vm11 = vcmp.lt.s32.totalorder %v3881_v20, 8  ;;  %vm4955_vm12 = vcmp.lt.s32.totalorder %v3881_v20, 121 }
  0x5e   : > { %vm4954_vm13 = vcmp.lt.s32.totalorder %v3881_v20, 1  ;;  %vm4951_vm14 = vcmp.lt.s32.totalorder %v3881_v20, 127  ;;  %vm4953_vm15 = vcmp.lt.s32.totalorder %v3881_v20, 119 }
  0x60   : > { %396 = vrot.lane.b32.xlu1 %v3751_v1, %s3570_s30  ;;  %394 = vrot.lane.b32.xlu0 %v3743_v0, %s3570_s30 }
  0x64   : > { %342 = vrot.lane.b32.xlu1 %v3753_v2, %s3568_s15  ;;  %299 = vrot.lane.b32.xlu0 %v3761_v3, %s3569_s26 }
  0x68   : > { %442 = vrot.lane.b32.xlu1 %v3753_v2, %s3567_s27  ;;  %400 = vrot.lane.b32.xlu0 %v3761_v3, %s3570_s30 }
  0x6c   : > { %540 = vrot.lane.b32.xlu1 %v3751_v1, %s3571_s8  ;;  %538 = vrot.lane.b32.xlu0 %v3743_v0, %s3571_s8 }
  0x70   : > { %640 = vrot.lane.b32.xlu1 %v3751_v1, %s3572_s24  ;;  %638 = vrot.lane.b32.xlu0 %v3743_v0, %s3572_s24 }
  0x74   : > { %398 = vrot.lane.b32.xlu1 %v3753_v2, %s3570_s30  ;;  %297 = vrot.lane.b32.xlu0 %v3753_v2, %s3569_s26 }
  0x78   : > { %644 = vrot.lane.b32.xlu1 %v3761_v3, %s3572_s24  ;;  %544 = vrot.lane.b32.xlu0 %v3761_v3, %s3571_s8 }
  0x7c   : > { %496 = vrot.lane.b32.xlu1 %v3751_v1, %s3573_s16  ;;  %494 = vrot.lane.b32.xlu0 %v3743_v0, %s3573_s16 }
  0x80   : > { %596 = vrot.lane.b32.xlu1 %v3751_v1, %s3574_s17  ;;  %594 = vrot.lane.b32.xlu0 %v3743_v0, %s3574_s17 }
  0x84   : > { %542 = vrot.lane.b32.xlu1 %v3753_v2, %s3571_s8  ;;  %500 = vrot.lane.b32.xlu0 %v3761_v3, %s3573_s16 }
  0x88   : > { %642 = vrot.lane.b32.xlu1 %v3753_v2, %s3572_s24  ;;  %600 = vrot.lane.b32.xlu0 %v3761_v3, %s3574_s17 }
  0x8c   : > { %740 = vrot.lane.b32.xlu1 %v3751_v1, %s3575_s18  ;;  %738 = vrot.lane.b32.xlu0 %v3743_v0, %s3575_s18 }
  0x90   : > { %840 = vrot.lane.b32.xlu1 %v3751_v1, %s3576_s19  ;;  %838 = vrot.lane.b32.xlu0 %v3743_v0, %s3576_s19 }
  0x94   : > { %598 = vrot.lane.b32.xlu1 %v3753_v2, %s3574_s17  ;;  %498 = vrot.lane.b32.xlu0 %v3753_v2, %s3573_s16 }
  0x98   : > { %844 = vrot.lane.b32.xlu1 %v3761_v3, %s3576_s19  ;;  %744 = vrot.lane.b32.xlu0 %v3761_v3, %s3575_s18 }
  0x9c   : > { %696 = vrot.lane.b32.xlu1 %v3751_v1, %s3577_s20  ;;  %694 = vrot.lane.b32.xlu0 %v3743_v0, %s3577_s20 }
  0xa0   : > { %796 = vrot.lane.b32.xlu1 %v3751_v1, %s3578_s21  ;;  %794 = vrot.lane.b32.xlu0 %v3743_v0, %s3578_s21 }
  0xa4   : > { %742 = vrot.lane.b32.xlu1 %v3753_v2, %s3575_s18  ;;  %700 = vrot.lane.b32.xlu0 %v3761_v3, %s3577_s20 }
  0xa8   : > { %842 = vrot.lane.b32.xlu1 %v3753_v2, %s3576_s19  ;;  %800 = vrot.lane.b32.xlu0 %v3761_v3, %s3578_s21 }
  0xac   : > { %1021 = vrot.lane.b32.xlu1 %v3753_v2, %s3579_s10  ;;  %1019 = vrot.lane.b32.xlu0 %v3751_v1, %s3579_s10 }
  0xb0   : > { %798 = vrot.lane.b32.xlu1 %v3753_v2, %s3578_s21  ;;  %698 = vrot.lane.b32.xlu0 %v3753_v2, %s3577_s20 }
  0xb4   : > { %894 = vrot.lane.b32.xlu1 %v3743_v0, %s3580_s11  ;;  %1017 = vrot.lane.b32.xlu0 %v3743_v0, %s3579_s10 }
  0xb8   : > { %975 = vrot.lane.b32.xlu1 %v3751_v1, %s3581_s12  ;;  %896 = vrot.lane.b32.xlu0 %v3751_v1, %s3580_s11 }
  0xbc   : > { %900 = vrot.lane.b32.xlu1 %v3761_v3, %s3580_s11  ;;  %977 = vrot.lane.b32.xlu0 %v3753_v2, %s3581_s12 }
  0xc0   : > { %1023 = vrot.lane.b32.xlu1 %v3761_v3, %s3579_s10  ;;  %973 = vrot.lane.b32.xlu0 %v3743_v0, %s3581_s12 }
  0xc2   : > { %v439_v26 = vpop.permute.xlu1 %438  ;;  %v339_v27 = vpop.permute.xlu0 %338 }
  0xc4   : > { %1121 = vrot.lane.b32.xlu1 %v3753_v2, %s3582_s13  ;;  %1119 = vrot.lane.b32.xlu0 %v3751_v1, %s3582_s13 }
  0xc6   : > { %v3909_v32 = vpop.permute.xlu1 %440  ;;  %v3911_v33 = vpop.permute.xlu0 %340 }
  0xc7   : > { %v449_v36 = vsel %vm446_vm0, %v439_v26, %v3909_v32  ;;  %v349_v37 = vsel %vm346_vm1, %v339_v27, %v3911_v33 }
  0xc8   : > { %v475_v40 = vmul.f32 %v461_v28, %v449_v36  ;;  %v1301_v41 = vmul.f32 %v1284_v29, %v449_v36  ;;  %v375_v42 = vmul.f32 %v361_v30, %v349_v37  ;;  %v1227_v43 = vmul.f32 %v1210_v31, %v349_v37  ;;  %979 = vrot.lane.b32.xlu1 %v3761_v3, %s3581_s12  ;;  %v4007_v37 = vld [vmem:[#allocation5 + $0x5] ss:$8 sm:$0xf] }
  0xc9   : > { %898 = vrot.lane.b32.xlu0 %v3753_v2, %s3580_s11  ;;  %v313_v28 = vrot.slane %v3929_v44, %v3847_v6  ;;  %v1191_v29 = vrot.slane %v3931_v45, %v3870_v14  ;;  %v465_v30 = vrot.slane %v3887_v21, %v3872_v15  ;;  %v469_v31 = vrot.slane %v3887_v21, %v3870_v14  ;;  %v4009_v21 = vld [vmem:[#allocation5 + $0x47] ss:$8 sm:$0xf] }
  0xca   : > { %v483_v46 = vrot.slane %v475_v40, 4  ;;  %v1309_v47 = vrot.slane %v1301_v41, 4  ;;  %v383_v48 = vrot.slane %v375_v42, 4  ;;  %v1235_v49 = vrot.slane %v1227_v43, 4  ;;  %v3936_v50 = vpop.permute.xlu1 %444  ;;  %v3938_v51 = vpop.permute.xlu0 %344 }
  0xcb   : > { %v450_v52 = vsel %vm446_vm0, %v3936_v50, %v439_v26  ;;  %v350_v53 = vsel %vm346_vm1, %v3938_v51, %v339_v27  ;;  %v1218_v27 = vrot.slane %v3893_v25, %v3872_v15  ;;  %v1292_v25 = vrot.slane %v3889_v22, %v3872_v15 }
  0xcc   : > { %491 = vst [vmem:[#allocation2 + $0x28] sm:$0xf0] %v483_v46  ;;  %1317 = vst [vmem:[#allocation2 + $0x140] sm:$0xf0] %v1309_v47  ;;  %v474_v56 = vmul.f32 %v457_v34, %v450_v52  ;;  %v1304_v57 = vmul.f32 %v1296_v35, %v450_v52  ;;  %v374_v58 = vmul.f32 %v357_v38, %v350_v53  ;;  %1075 = vrot.lane.b32.xlu1 %v3751_v1, %s3583_s14 }
  0xcd   : > { %391 = vst [vmem:[#allocation2 + $0x8] sm:$0xf0] %v383_v48  ;;  %1243 = vst [vmem:[#allocation2 + $0x120] sm:$0xf0] %v1235_v49  ;;  %v1230_v59 = vmul.f32 %v1222_v39, %v350_v53  ;;  %1117 = vrot.lane.b32.xlu0 %v3743_v0, %s3582_s13  ;;  %v413_v35 = vrot.slane %v3954_v60, %v3847_v6  ;;  %v1265_v36 = vrot.slane %v3956_v61, %v3870_v14 }
  0xce   : > { %v482_v62 = vrot.slane %v474_v56, 4  ;;  %v1312_v63 = vrot.slane %v1304_v57, 4  ;;  %v382_v4 = vrot.slane %v374_v58, 4  ;;  %v3958_v8 = vpop.permute.xlu1 %295  ;;  %v294_v9 = vpop.permute.xlu0 %293  ;;  %v561_v48 = vrot.slane %v4007_v37, %v3849_v7 }
  0xcf   : > { %v1238_v5 = vrot.slane %v1230_v59, 4  ;;  %v306_v10 = vsel %vm303_vm2, %v294_v9, %v3958_v8  ;;  %v1358_v49 = vrot.slane %v4009_v21, %v3847_v6 }
  0xd0   : > { %490 = vst [vmem:[#allocation2 + $0x20] sm:$0xf0] %v482_v62  ;;  %1320 = vst [vmem:[#allocation2 + $0x158] sm:$0xf0] %v1312_v63  ;;  %v331_v1 = vmul.f32 %v317_v54, %v306_v10  ;;  %v1196_v11 = vmul.f32 %v1179_v55, %v306_v10  ;;  %1073 = vrot.lane.b32.xlu1 %v3743_v0, %s3583_s14  ;;  %v369_v0 = vrot.slane %v3891_v24, %v3870_v14 }
  0xd1   : > { %390 = vst [vmem:[#allocation2] sm:$0xf0] %v382_v4  ;;  %1246 = vst [vmem:[#allocation2 + $0x138] sm:$0xf0] %v1238_v5  ;;  %1077 = vrot.lane.b32.xlu0 %v3753_v2, %s3583_s14  ;;  %v365_v2 = vrot.slane %v3891_v24, %v3872_v15 }
  0xd2   : > { %335 = vst [vmem:[#allocation2 + $0x8] sm:$0xf] %v331_v1  ;;  %1200 = vst [vmem:[#allocation2 + $0x120] sm:$0xf] %v1196_v11  ;;  %v3972_v16 = vpop.permute.xlu1 %396  ;;  %v395_v17 = vpop.permute.xlu0 %394 }
  0xd3   : > { %v405_v18 = vsel %vm402_vm3, %v395_v17, %v3972_v16  ;;  %v4036_v5 = vld [vmem:[#allocation5 + $0x7] ss:$8 sm:$0xf]  ;;  %v4039_v1 = vld [vmem:[#allocation5 + $0x61] ss:$8 sm:$0xf] }
  0xd4   : > { %v431_v23 = vmul.f32 %v417_v12, %v405_v18  ;;  %v1270_v26 = vmul.f32 %v1253_v13, %v405_v18  ;;  %1079 = vrot.lane.b32.xlu1 %v3761_v3, %s3583_s14 }
  0xd5   : > { %1123 = vrot.lane.b32.xlu0 %v3761_v3, %s3582_s13  ;;  %v1288_v3 = vrot.slane %v3889_v22, %v3849_v7 }
  0xd6   : > { %435 = vst [vmem:[#allocation2 + $0x28] sm:$0xf] %v431_v23  ;;  %1274 = vst [vmem:[#allocation2 + $0x140] sm:$0xf] %v1270_v26  ;;  %v343_v24 = vpop.permute.xlu1 %342  ;;  %v3997_v34 = vpop.permute.xlu0 %299 }
  0xd7   : > { %v347_v38 = vsel %vm346_vm1, %v343_v24, %v3938_v51  ;;  %v348_v39 = vsel %vm346_vm1, %v3911_v33, %v343_v24  ;;  %v307_v22 = vsel %vm303_vm2, %v3997_v34, %v294_v9  ;;  %v3584_v9 = vmov 0.0  }
  0xd8   : > { %v376_v40 = vmul.f32 %v365_v2, %v348_v39  ;;  %v377_v41 = vmul.f32 %v369_v0, %v347_v38  ;;  %v1228_v42 = vmul.f32 %v1214_v19, %v348_v39  ;;  %v1229_v43 = vmul.f32 %v1218_v27, %v347_v38  ;;  %1644 = vmatprep.mubr.f32.mxu0 %v3584_v9 }
  0xd9   : > { %v330_v46 = vmul.f32 %v313_v28, %v307_v22  ;;  %v1199_v47 = vmul.f32 %v1191_v29, %v307_v22  ;;  %1715 = vmatprep.mubr.f32.mxu1 %v3584_v9  ;;  %v1502_v19 = vld [vmem:[#allocation2 + $0x8] sm:$0xff]  ;;  %v661_v28 = vrot.slane %v4036_v5, %v3849_v7  ;;  %v1432_v29 = vrot.slane %v4039_v1, %v3847_v6  ;;  %v1557_v22 = vld [vmem:[%s4944_s3] sm:$0xf] }
  0xda   : > { %v384_v51 = vrot.slane %v376_v40, 4  ;;  %v385_v33 = vrot.slane %v377_v41, 4  ;;  %v1236_v52 = vrot.slane %v1228_v42, 4  ;;  %v1237_v53 = vrot.slane %v1229_v43, 4  ;;  %v443_v54 = vpop.permute.xlu1 %442  ;;  %v4025_v55 = vpop.permute.xlu0 %400 }
  0xdb   : > { %334 = vst [vmem:[#allocation2] sm:$0xf] %v330_v46  ;;  %1203 = vst [vmem:[#allocation2 + $0x138] sm:$0xf] %v1199_v47  ;;  %v447_v56 = vsel %vm446_vm0, %v443_v54, %v3936_v50  ;;  %v448_v57 = vsel %vm446_vm0, %v3909_v32, %v443_v54  ;;  %v406_v58 = vsel %vm402_vm3, %v4025_v55, %v395_v17  ;;  %v3585_v43 = vmov 0  }
  0xdc   : > { %392 = vst [vmem:[#allocation2 + $0x10] sm:$0xf0] %v384_v51  ;;  %393 = vst [vmem:[#allocation2 + $0x18] sm:$0xf0] %v385_v33  ;;  %v476_v59 = vmul.f32 %v465_v30, %v448_v57  ;;  %v477_v62 = vmul.f32 %v469_v31, %v447_v56  ;;  %v1302_v63 = vmul.f32 %v1288_v3, %v448_v57  ;;  %3460 = vset.pattern.permute.xlu0 %v3585_v43 }
  0xdd   : > { %1244 = vst [vmem:[#allocation2 + $0x128] sm:$0xf0] %v1236_v52  ;;  %1245 = vst [vmem:[#allocation2 + $0x130] sm:$0xf0] %v1237_v53  ;;  %v1303_v4 = vmul.f32 %v1292_v25, %v447_v56  ;;  %v430_v50 = vmul.f32 %v413_v35, %v406_v58  ;;  %v1273_v10 = vmul.f32 %v1265_v36, %v406_v58  ;;  %v1506_v32 = vld [vmem:[#allocation2 + $0x28] sm:$0xff]  ;;  %1560 = vperm.xlu0 %3460, %v1557_v22  }
  0xde   : > { %v484_v11 = vrot.slane %v476_v59, 4  ;;  %v485_v12 = vrot.slane %v477_v62, 4  ;;  %v1310_v13 = vrot.slane %v1302_v63, 4  ;;  %v4042_v18 = vpop.permute.xlu1 %540  ;;  %v4044_v0 = vpop.permute.xlu0 %538  ;;  %v3268_v26 = vpack.c.bf16 %v1506_v32, %v1502_v19 }
  0xdf   : > { %v1311_v17 = vrot.slane %v1303_v4, 4  ;;  %434 = vst [vmem:[#allocation2 + $0x20] sm:$0xf] %v430_v50  ;;  %1277 = vst [vmem:[#allocation2 + $0x158] sm:$0xf] %v1273_v10  ;;  %v549_v23 = vsel %vm546_vm4, %v4044_v0, %v4042_v18  ;;  %v421_v25 = vrot.slane %v3954_v60, %v3872_v15  ;;  %v425_v35 = vrot.slane %v3954_v60, %v3870_v14 }
  0xe0   : > { %492 = vst [vmem:[#allocation2 + $0x30] sm:$0xf0] %v484_v11  ;;  %493 = vst [vmem:[#allocation2 + $0x38] sm:$0xf0] %v485_v12  ;;  %v575_v2 = vmul.f32 %v561_v48, %v549_v23  ;;  %v1375_v27 = vmul.f32 %v1358_v49, %v549_v23  ;;  %3269 = vmatprep.subr.bf16.mxu0 %v3268_v26  ;;  %v1257_v38 = vrot.slane %v3956_v61, %v3849_v7 }
  0xe1   : > { %1318 = vst [vmem:[#allocation2 + $0x148] sm:$0xf0] %v1310_v13  ;;  %1319 = vst [vmem:[#allocation2 + $0x150] sm:$0xf0] %v1311_v17  ;;  %v1261_v39 = vrot.slane %v3956_v61, %v3872_v15  ;;  %v321_v60 = vrot.slane %v3929_v44, %v3872_v15  ;;  %v325_v42 = vrot.slane %v3929_v44, %v3870_v14 }
  0xe2   : > { %v583_v30 = vrot.slane %v575_v2, 4  ;;  %v1383_v31 = vrot.slane %v1375_v27, 4  ;;  %v4055_v24 = vpop.permute.xlu1 %640  ;;  %v639_v3 = vpop.permute.xlu0 %638  ;;  %v1183_v46 = vrot.slane %v3931_v45, %v3849_v7  ;;  %v1187_v61 = vrot.slane %v3931_v45, %v3872_v15  ;;  %v4101_v50 = vld [vmem:[#allocation5 + $0x46] ss:$8 sm:$0xf] }
  0xe3   : > { %v649_v36 = vsel %vm646_vm5, %v639_v3, %v4055_v24  ;;  %v657_v47 = vrot.slane %v4036_v5, %v3847_v6  ;;  %v1444_v48 = vrot.slane %v4039_v1, %v3870_v14  ;;  %v557_v44 = vrot.slane %v4007_v37, %v3847_v6 }
  0xe4   : > { %591 = vst [vmem:[#allocation2 + $0x48] sm:$0xf0] %v583_v30  ;;  %1391 = vst [vmem:[#allocation2 + $0x160] sm:$0xf0] %v1383_v31  ;;  %v675_v40 = vmul.f32 %v661_v28, %v649_v36  ;;  %v1449_v41 = vmul.f32 %v1432_v29, %v649_v36  ;;  %v1370_v53 = vrot.slane %v4009_v21, %v3870_v14 }
  0xe5   : > { %v1327_v26 = vrot.slane %v4101_v50, %v3847_v6  ;;  %v4119_v30 = vld [vmem:[#allocation5 + $0x6] ss:$8 sm:$0xf]  ;;  %v4121_v31 = vld [vmem:[#allocation5 + $0x60] ss:$8 sm:$0xf] }
  0xe6   : > { %v683_v49 = vrot.slane %v675_v40, 4  ;;  %v1457_v51 = vrot.slane %v1449_v41, 4  ;;  %v399_v33 = vpop.permute.xlu1 %398  ;;  %v298_v52 = vpop.permute.xlu0 %297  ;;  %v1505_v58 = vld [vmem:[#allocation2 + $0x20] sm:$0xff]  ;;  %v617_v41 = vrot.slane %v4119_v30, %v3849_v7 }
  0xe7   : > { %v403_v45 = vsel %vm402_vm3, %v399_v33, %v4025_v55  ;;  %v404_v54 = vsel %vm402_vm3, %v3972_v16, %v399_v33  ;;  %v304_v56 = vsel %vm303_vm2, %v298_v52, %v3997_v34  ;;  %v305_v57 = vsel %vm303_vm2, %v3958_v8, %v298_v52  ;;  %v4099_v55 = vld [vmem:[#allocation5 + $0x4] ss:$8 sm:$0xf] }
  0xe8   : > { %691 = vst [vmem:[#allocation2 + $0x68] sm:$0xf0] %v683_v49  ;;  %1465 = vst [vmem:[#allocation2 + $0x180] sm:$0xf0] %v1457_v51  ;;  %v432_v59 = vmul.f32 %v421_v25, %v404_v54  ;;  %v433_v62 = vmul.f32 %v425_v35, %v403_v45  ;;  %v1271_v63 = vmul.f32 %v1257_v38, %v404_v54  ;;  %v1501_v34 = vld [vmem:[#allocation2] sm:$0xff] }
  0xe9   : > { %v1272_v4 = vmul.f32 %v1261_v39, %v403_v45  ;;  %v332_v16 = vmul.f32 %v321_v60, %v305_v57  ;;  %v333_v10 = vmul.f32 %v325_v42, %v304_v56  ;;  %v1197_v32 = vmul.f32 %v1183_v46, %v305_v57 }
  0xea   : > { %v1198_v11 = vmul.f32 %v1187_v61, %v304_v56  ;;  %436 = vst [vmem:[#allocation2 + $0x30] sm:$0xf] %v432_v59  ;;  %437 = vst [vmem:[#allocation2 + $0x38] sm:$0xf] %v433_v62  ;;  %v3270_v8 = vpack.c.bf16 %v1505_v58, %v1501_v34  ;;  %v4103_v12 = vpop.permute.xlu1 %644  ;;  %v4105_v13 = vpop.permute.xlu0 %544  ;;  %v517_v23 = vrot.slane %v4099_v55, %v3849_v7 }
  0xeb   : > { %1275 = vst [vmem:[#allocation2 + $0x148] sm:$0xf] %v1271_v63  ;;  %1276 = vst [vmem:[#allocation2 + $0x150] sm:$0xf] %v1272_v4  ;;  %v650_v17 = vsel %vm646_vm5, %v4103_v12, %v639_v3  ;;  %v550_v19 = vsel %vm546_vm4, %v4105_v13, %v4044_v0  ;;  %v1401_v60 = vrot.slane %v4121_v31, %v3847_v6 }
  0xec   : > { %336 = vst [vmem:[#allocation2 + $0x10] sm:$0xf] %v332_v16  ;;  %337 = vst [vmem:[#allocation2 + $0x18] sm:$0xf] %v333_v10  ;;  %3271 = vmatpush1.bf16.msra.mxu0 %v3270_v8  ;;  %v674_v2 = vmul.f32 %v657_v47, %v650_v17  ;;  %v1452_v27 = vmul.f32 %v1444_v48, %v650_v17  ;;  %v574_v28 = vmul.f32 %v557_v44, %v550_v19 }
  0xed   : > { %1201 = vst [vmem:[#allocation2 + $0x128] sm:$0xf] %v1197_v32  ;;  %1202 = vst [vmem:[#allocation2 + $0x130] sm:$0xf] %v1198_v11  ;;  %v1378_v29 = vmul.f32 %v1370_v53, %v550_v19  ;;  %v565_v49 = vrot.slane %v4007_v37, %v3872_v15  ;;  %v569_v44 = vrot.slane %v4007_v37, %v3870_v14 }
  0xee   : > { %v682_v3 = vrot.slane %v674_v2, 4  ;;  %v1460_v25 = vrot.slane %v1452_v27, 4  ;;  %v582_v35 = vrot.slane %v574_v28, 4  ;;  %v4123_v0 = vpop.permute.xlu1 %496  ;;  %v495_v38 = vpop.permute.xlu0 %494  ;;  %v1362_v54 = vrot.slane %v4009_v21, %v3849_v7 }
  0xef   : > { %v1386_v36 = vrot.slane %v1378_v29, 4  ;;  %v505_v39 = vsel %vm502_vm6, %v495_v38, %v4123_v0  ;;  %v1366_v56 = vrot.slane %v4009_v21, %v3872_v15  ;;  %v513_v57 = vrot.slane %v4099_v55, %v3847_v6 }
  0xf0   : > { %690 = vst [vmem:[#allocation2 + $0x60] sm:$0xf0] %v682_v3  ;;  %1468 = vst [vmem:[#allocation2 + $0x198] sm:$0xf0] %v1460_v25  ;;  %v531_v22 = vmul.f32 %v517_v23, %v505_v39  ;;  %v1344_v40 = vmul.f32 %v1327_v26, %v505_v39  ;;  %v1339_v58 = vrot.slane %v4101_v50, %v3870_v14 }
  0xf1   : > { %590 = vst [vmem:[#allocation2 + $0x40] sm:$0xf0] %v582_v35  ;;  %1394 = vst [vmem:[#allocation2 + $0x178] sm:$0xf0] %v1386_v36  ;;  %v1508_v42 = vld [vmem:[#allocation2 + $0x38] sm:$0xff]  ;;  %v1507_v43 = vld [vmem:[#allocation2 + $0x30] sm:$0xff]  ;;  %v665_v62 = vrot.slane %v4036_v5, %v3872_v15  ;;  %v669_v63 = vrot.slane %v4036_v5, %v3870_v14  ;;  %v1436_v21 = vrot.slane %v4039_v1, %v3849_v7 }
  0xf2   : > { %535 = vst [vmem:[#allocation2 + $0x48] sm:$0xf] %v531_v22  ;;  %1348 = vst [vmem:[#allocation2 + $0x160] sm:$0xf] %v1344_v40  ;;  %v4133_v46 = vpop.permute.xlu1 %596  ;;  %v595_v61 = vpop.permute.xlu0 %594  ;;  %v1440_v4 = vrot.slane %v4039_v1, %v3872_v15  ;;  %v613_v5 = vrot.slane %v4119_v30, %v3847_v6 }
  0xf3   : > { %v1504_v47 = vld [vmem:[#allocation2 + $0x18] sm:$0xff]  ;;  %v1503_v48 = vld [vmem:[#allocation2 + $0x10] sm:$0xff]  ;;  %v605_v51 = vsel %vm602_vm7, %v595_v61, %v4133_v46 }
  0xf4   : > { %v3298_v33 = vpack.c.bf16 %v1508_v42, %v1504_v47  ;;  %v3300_v52 = vpack.c.bf16 %v1507_v43, %v1503_v48  ;;  %v631_v53 = vmul.f32 %v617_v41, %v605_v51  ;;  %v1418_v45 = vmul.f32 %v1401_v60, %v605_v51  ;;  %v4171_v1 = vld [vmem:[#allocation5 + $0x21] ss:$8 sm:$0xf]  ;;  %v4186_v42 = vld [vmem:[#allocation5 + $0x23] ss:$8 sm:$0xf] }
  0xf5   : > { %v761_v36 = vrot.slane %v4171_v1, %v3849_v7 }
  0xf6   : > { %3299 = vmatprep.subr.bf16.mxu1 %v3298_v33  ;;  %635 = vst [vmem:[#allocation2 + $0x68] sm:$0xf] %v631_v53  ;;  %1422 = vst [vmem:[#allocation2 + $0x180] sm:$0xf] %v1418_v45  ;;  %v543_v59 = vpop.permute.xlu1 %542  ;;  %v4150_v37 = vpop.permute.xlu0 %500  ;;  %v861_v53 = vrot.slane %v4186_v42, %v3849_v7 }
  0xf7   : > { %3301 = vmatpush1.bf16.msra.mxu1 %v3300_v52  ;;  %v547_v16 = vsel %vm546_vm4, %v543_v59, %v4105_v13  ;;  %v548_v10 = vsel %vm546_vm4, %v4042_v18, %v543_v59  ;;  %v506_v32 = vsel %vm502_vm6, %v4150_v37, %v495_v38  ;;  %v1413_v13 = vrot.slane %v4121_v31, %v3870_v14 }
  0xf8   : > { %v576_v11 = vmul.f32 %v565_v49, %v548_v10  ;;  %v577_v34 = vmul.f32 %v569_v44, %v547_v16  ;;  %v1376_v8 = vmul.f32 %v1362_v54, %v548_v10  ;;  %v1377_v17 = vmul.f32 %v1366_v56, %v547_v16 }
  0xf9   : > { %v530_v19 = vmul.f32 %v513_v57, %v506_v32  ;;  %v1347_v23 = vmul.f32 %v1339_v58, %v506_v32  ;;  %v1510_v51 = vld [vmem:[#allocation2 + $0x48] sm:$0xff]  ;;  %v621_v58 = vrot.slane %v4119_v30, %v3872_v15  ;;  %v525_v16 = vrot.slane %v4099_v55, %v3870_v14 }
  0xfa   : > { %v584_v18 = vrot.slane %v576_v11, 4  ;;  %v585_v26 = vrot.slane %v577_v34, 4  ;;  %v1384_v2 = vrot.slane %v1376_v8, 4  ;;  %v1385_v27 = vrot.slane %v1377_v17, 4  ;;  %v643_v28 = vpop.permute.xlu1 %642  ;;  %v601_v29 = vpop.permute.xlu0 %600 }
  0xfb   : > { %534 = vst [vmem:[#allocation2 + $0x40] sm:$0xf] %v530_v19  ;;  %1351 = vst [vmem:[#allocation2 + $0x178] sm:$0xf] %v1347_v23  ;;  %v647_v3 = vsel %vm646_vm5, %v643_v28, %v4103_v12  ;;  %v648_v25 = vsel %vm646_vm5, %v4055_v24, %v643_v28  ;;  %v606_v35 = vsel %vm602_vm7, %v601_v29, %v595_v61 }
  0xfc   : > { %592 = vst [vmem:[#allocation2 + $0x50] sm:$0xf0] %v584_v18  ;;  %593 = vst [vmem:[#allocation2 + $0x58] sm:$0xf0] %v585_v26  ;;  %v676_v38 = vmul.f32 %v665_v62, %v648_v25  ;;  %v677_v39 = vmul.f32 %v669_v63, %v647_v3  ;;  %v1450_v22 = vmul.f32 %v1436_v21, %v648_v25 }
  0xfd   : > { %1392 = vst [vmem:[#allocation2 + $0x168] sm:$0xf0] %v1384_v2  ;;  %1393 = vst [vmem:[#allocation2 + $0x170] sm:$0xf0] %v1385_v27  ;;  %v1451_v40 = vmul.f32 %v1440_v4, %v647_v3  ;;  %v630_v41 = vmul.f32 %v613_v5, %v606_v35  ;;  %v1421_v12 = vmul.f32 %v1413_v13, %v606_v35  ;;  %v1514_v60 = vld [vmem:[#allocation2 + $0x68] sm:$0xff] }
  0xfe   : > { %v684_v24 = vrot.slane %v676_v38, 4  ;;  %v685_v43 = vrot.slane %v677_v39, 4  ;;  %v1458_v47 = vrot.slane %v1450_v22, 4  ;;  %v4188_v48 = vpop.permute.xlu1 %740  ;;  %v4190_v49 = vpop.permute.xlu0 %738  ;;  %v3272_v52 = vpack.c.bf16 %v1514_v60, %v1510_v51  ;;  %v4235_v2 = vld [vmem:[#allocation5 + $0x20] ss:$8 sm:$0xf] }
  0xff   : > { %v1459_v61 = vrot.slane %v1451_v40, 4  ;;  %634 = vst [vmem:[#allocation2 + $0x60] sm:$0xf] %v630_v41  ;;  %1425 = vst [vmem:[#allocation2 + $0x198] sm:$0xf] %v1421_v12  ;;  %v749_v33 = vsel %vm746_vm8, %v4190_v49, %v4188_v48  ;;  %v625_v62 = vrot.slane %v4119_v30, %v3870_v14  ;;  %v1405_v63 = vrot.slane %v4121_v31, %v3849_v7 }
 0x100   : > { %692 = vst [vmem:[#allocation2 + $0x70] sm:$0xf0] %v684_v24  ;;  %693 = vst [vmem:[#allocation2 + $0x78] sm:$0xf0] %v685_v43  ;;  %v775_v44 = vmul.f32 %v761_v36, %v749_v33  ;;  %3273 = vmatprep.subr.bf16.mxu0 %v3272_v52  ;;  %v1409_v21 = vrot.slane %v4121_v31, %v3872_v15  ;;  %v521_v4 = vrot.slane %v4099_v55, %v3872_v15 }
 0x101   : > { %1466 = vst [vmem:[#allocation2 + $0x188] sm:$0xf0] %v1458_v47  ;;  %1467 = vst [vmem:[#allocation2 + $0x190] sm:$0xf0] %v1459_v61  ;;  %v1331_v10 = vrot.slane %v4101_v50, %v3849_v7  ;;  %v1335_v32 = vrot.slane %v4101_v50, %v3872_v15  ;;  %v857_v34 = vrot.slane %v4186_v42, %v3847_v6 }
 0x102   : > { %v783_v45 = vrot.slane %v775_v44, 4  ;;  %v4199_v54 = vpop.permute.xlu1 %840  ;;  %v839_v56 = vpop.permute.xlu0 %838  ;;  %v757_v31 = vrot.slane %v4171_v1, %v3847_v6  ;;  %v1509_v3 = vld [vmem:[#allocation2 + $0x40] sm:$0xff]  ;;  %v717_v40 = vrot.slane %v4235_v2, %v3849_v7 }
 0x103   : > { %v849_v57 = vsel %vm846_vm9, %v839_v56, %v4199_v54  ;;  %v4237_v25 = vld [vmem:[#allocation5 + $0x62] ss:$8 sm:$0xf] }
 0x104   : > { %791 = vst [vmem:[#allocation2 + $0x88] sm:$0xf0] %v783_v45  ;;  %v875_v59 = vmul.f32 %v861_v53, %v849_v57  ;;  %v1475_v41 = vrot.slane %v4237_v25, %v3847_v6  ;;  %v4252_v12 = vld [vmem:[#allocation5 + $0x22] ss:$8 sm:$0xf] }
 0x105   : > { %v817_v33 = vrot.slane %v4252_v12, %v3849_v7 }
 0x106   : > { %v883_v5 = vrot.slane %v875_v59, 4  ;;  %v599_v30 = vpop.permute.xlu1 %598  ;;  %v499_v11 = vpop.permute.xlu0 %498  ;;  %v1513_v19 = vld [vmem:[#allocation2 + $0x60] sm:$0xff] }
 0x107   : > { %v603_v8 = vsel %vm602_vm7, %v599_v30, %v601_v29  ;;  %v604_v55 = vsel %vm602_vm7, %v4133_v46, %v599_v30  ;;  %v503_v50 = vsel %vm502_vm6, %v499_v11, %v4150_v37  ;;  %v504_v17 = vsel %vm502_vm6, %v4123_v0, %v499_v11 }
 0x108   : > { %891 = vst [vmem:[#allocation2 + $0xa8] sm:$0xf0] %v883_v5  ;;  %v632_v23 = vmul.f32 %v621_v58, %v604_v55  ;;  %v633_v13 = vmul.f32 %v625_v62, %v603_v8  ;;  %v1419_v18 = vmul.f32 %v1405_v63, %v604_v55  ;;  %v1420_v26 = vmul.f32 %v1409_v21, %v603_v8 }
 0x109   : > { %v532_v27 = vmul.f32 %v521_v4, %v504_v17  ;;  %v533_v28 = vmul.f32 %v525_v16, %v503_v50  ;;  %v1345_v29 = vmul.f32 %v1331_v10, %v504_v17  ;;  %v1346_v46 = vmul.f32 %v1335_v32, %v503_v50 }
 0x10a   : > { %636 = vst [vmem:[#allocation2 + $0x70] sm:$0xf] %v632_v23  ;;  %637 = vst [vmem:[#allocation2 + $0x78] sm:$0xf] %v633_v13  ;;  %v3274_v0 = vpack.c.bf16 %v1513_v19, %v1509_v3  ;;  %v4239_v37 = vpop.permute.xlu1 %844  ;;  %v745_v35 = vpop.permute.xlu0 %744  ;;  %v765_v63 = vrot.slane %v4171_v1, %v3872_v15  ;;  %v769_v4 = vrot.slane %v4171_v1, %v3870_v14 }
 0x10b   : > { %1423 = vst [vmem:[#allocation2 + $0x188] sm:$0xf] %v1419_v18  ;;  %1424 = vst [vmem:[#allocation2 + $0x190] sm:$0xf] %v1420_v26  ;;  %v850_v36 = vsel %vm846_vm9, %v4239_v37, %v839_v56  ;;  %v750_v38 = vsel %vm746_vm8, %v745_v35, %v4190_v49  ;;  %v713_v16 = vrot.slane %v4235_v2, %v3847_v6 }
 0x10c   : > { %536 = vst [vmem:[#allocation2 + $0x50] sm:$0xf] %v532_v27  ;;  %537 = vst [vmem:[#allocation2 + $0x58] sm:$0xf] %v533_v28  ;;  %3275 = vmatpush1.bf16.msra.mxu0 %v3274_v0  ;;  %v874_v39 = vmul.f32 %v857_v34, %v850_v36  ;;  %v774_v22 = vmul.f32 %v757_v31, %v750_v38  ;;  %v1487_v10 = vrot.slane %v4237_v25, %v3870_v14 }
 0x10d   : > { %1349 = vst [vmem:[#allocation2 + $0x168] sm:$0xf] %v1345_v29  ;;  %1350 = vst [vmem:[#allocation2 + $0x170] sm:$0xf] %v1346_v46  ;;  %v865_v30 = vrot.slane %v4186_v42, %v3872_v15  ;;  %v869_v11 = vrot.slane %v4186_v42, %v3870_v14  ;;  %v813_v8 = vrot.slane %v4252_v12, %v3847_v6 }
 0x10e   : > { %v882_v60 = vrot.slane %v874_v39, 4  ;;  %v782_v24 = vrot.slane %v774_v22, 4  ;;  %v4254_v43 = vpop.permute.xlu1 %696  ;;  %v695_v47 = vpop.permute.xlu0 %694  ;;  %v4288_v23 = vld [vmem:[#allocation5 + $0x27] ss:$8 sm:$0xf] }
 0x10f   : > { %v705_v61 = vsel %vm4958_vm10, %v695_v47, %v4254_v43  ;;  %v1040_v0 = vrot.slane %v4288_v23, %v3849_v7 }
 0x110   : > { %890 = vst [vmem:[#allocation2 + $0xa0] sm:$0xf0] %v882_v60  ;;  %790 = vst [vmem:[#allocation2 + $0x80] sm:$0xf0] %v782_v24  ;;  %v731_v49 = vmul.f32 %v717_v40, %v705_v61  ;;  %v1492_v51 = vmul.f32 %v1475_v41, %v705_v61  ;;  %v821_v41 = vrot.slane %v4252_v12, %v3872_v15 }
 0x111   : > { %v1516_v52 = vld [vmem:[#allocation2 + $0x78] sm:$0xff]  ;;  %v1515_v44 = vld [vmem:[#allocation2 + $0x70] sm:$0xff]  ;;  %v825_v24 = vrot.slane %v4252_v12, %v3870_v14  ;;  %v725_v61 = vrot.slane %v4235_v2, %v3870_v14 }
 0x112   : > { %735 = vst [vmem:[#allocation2 + $0x88] sm:$0xf] %v731_v49  ;;  %1496 = vst [vmem:[#allocation2 + $0x1a0] sm:$0xf] %v1492_v51  ;;  %v4262_v53 = vpop.permute.xlu1 %796  ;;  %v795_v45 = vpop.permute.xlu0 %794  ;;  %v1479_v49 = vrot.slane %v4237_v25, %v3849_v7  ;;  %v1483_v51 = vrot.slane %v4237_v25, %v3872_v15 }
 0x113   : > { %v1512_v56 = vld [vmem:[#allocation2 + $0x58] sm:$0xff]  ;;  %v1511_v57 = vld [vmem:[#allocation2 + $0x50] sm:$0xff]  ;;  %v805_v58 = vsel %vm4956_vm11, %v795_v45, %v4262_v53 }
 0x114   : > { %v3302_v59 = vpack.c.bf16 %v1516_v52, %v1512_v56  ;;  %v3304_v62 = vpack.c.bf16 %v1515_v44, %v1511_v57  ;;  %v831_v21 = vmul.f32 %v817_v33, %v805_v58 }
 0x116   : > { %3303 = vmatprep.subr.bf16.mxu1 %v3302_v59  ;;  %835 = vst [vmem:[#allocation2 + $0xa8] sm:$0xf] %v831_v21  ;;  %v743_v32 = vpop.permute.xlu1 %742  ;;  %v701_v5 = vpop.permute.xlu0 %700 }
 0x117   : > { %3305 = vmatpush1.bf16.msra.mxu1 %v3304_v62  ;;  %v747_v1 = vsel %vm746_vm8, %v743_v32, %v745_v35  ;;  %v748_v34 = vsel %vm746_vm8, %v4188_v48, %v743_v32  ;;  %v706_v31 = vsel %vm4958_vm10, %v701_v5, %v695_v47  ;;  %v721_v47 = vrot.slane %v4235_v2, %v3872_v15 }
 0x118   : > { %v776_v55 = vmul.f32 %v765_v63, %v748_v34  ;;  %v777_v50 = vmul.f32 %v769_v4, %v747_v1  ;;  %v730_v17 = vmul.f32 %v713_v16, %v706_v31  ;;  %v1495_v19 = vmul.f32 %v1487_v10, %v706_v31  ;;  %v4330_v10 = vld [vmem:[#allocation5 + $0x24] ss:$8 sm:$0xf]  ;;  %v4337_v1 = vld [vmem:[#allocation5 + $0x26] ss:$8 sm:$0xf] }
 0x119   : > { %v1518_v35 = vld [vmem:[#allocation2 + $0x88] sm:$0xff] }
 0x11a   : > { %v784_v42 = vrot.slane %v776_v55, 4  ;;  %v785_v13 = vrot.slane %v777_v50, 4  ;;  %734 = vst [vmem:[#allocation2 + $0x80] sm:$0xf] %v730_v17  ;;  %1499 = vst [vmem:[#allocation2 + $0x1b8] sm:$0xf] %v1495_v19  ;;  %v843_v18 = vpop.permute.xlu1 %842  ;;  %v801_v26 = vpop.permute.xlu0 %800  ;;  %v913_v17 = vrot.slane %v4330_v10, %v3847_v6  ;;  %v996_v19 = vrot.slane %v4337_v1, %v3849_v7 }
 0x11b   : > { %v847_v48 = vsel %vm846_vm9, %v843_v18, %v4239_v37  ;;  %v848_v27 = vsel %vm846_vm9, %v4199_v54, %v843_v18  ;;  %v806_v28 = vsel %vm4956_vm11, %v801_v26, %v795_v45  ;;  %v1036_v45 = vrot.slane %v4288_v23, %v3847_v6 }
 0x11c   : > { %792 = vst [vmem:[#allocation2 + $0x90] sm:$0xf0] %v784_v42  ;;  %793 = vst [vmem:[#allocation2 + $0x98] sm:$0xf0] %v785_v13  ;;  %v876_v29 = vmul.f32 %v865_v30, %v848_v27  ;;  %v877_v46 = vmul.f32 %v869_v11, %v847_v48  ;;  %v830_v3 = vmul.f32 %v813_v8, %v806_v28 }
 0x11d   : > { %v1522_v36 = vld [vmem:[#allocation2 + $0xa8] sm:$0xff]  ;;  %v917_v11 = vrot.slane %v4330_v10, %v3849_v7 }
 0x11e   : > { %v884_v37 = vrot.slane %v876_v29, 4  ;;  %v885_v38 = vrot.slane %v877_v46, 4  ;;  %834 = vst [vmem:[#allocation2 + $0xa0] sm:$0xf] %v830_v3  ;;  %v4301_v39 = vpop.permute.xlu1 %1021  ;;  %v1020_v54 = vpop.permute.xlu0 %1019  ;;  %v3276_v22 = vpack.c.bf16 %v1522_v36, %v1518_v35 }
 0x11f   : > { %v1027_v40 = vsel %vm4955_vm12, %v1020_v54, %v4301_v39 }
 0x120   : > { %892 = vst [vmem:[#allocation2 + $0xb0] sm:$0xf0] %v884_v37  ;;  %893 = vst [vmem:[#allocation2 + $0xb8] sm:$0xf0] %v885_v38  ;;  %v1054_v60 = vmul.f32 %v1040_v0, %v1027_v40  ;;  %3277 = vmatprep.subr.bf16.mxu0 %v3276_v22  ;;  %v1044_v0 = vrot.slane %v4288_v23, %v3872_v15  ;;  %v1048_v37 = vrot.slane %v4288_v23, %v3870_v14 }
 0x121   : > { %v1517_v4 = vld [vmem:[#allocation2 + $0x80] sm:$0xff]  ;;  %v992_v38 = vrot.slane %v4337_v1, %v3847_v6 }
 0x122   : > { %v1062_v33 = vrot.slane %v1054_v60, 4  ;;  %v799_v52 = vpop.permute.xlu1 %798  ;;  %v699_v44 = vpop.permute.xlu0 %698 }
 0x123   : > { %v803_v12 = vsel %vm4956_vm11, %v799_v52, %v801_v26  ;;  %v804_v56 = vsel %vm4956_vm11, %v4262_v53, %v799_v52  ;;  %v703_v2 = vsel %vm4958_vm10, %v699_v44, %v701_v5  ;;  %v704_v25 = vsel %vm4958_vm10, %v4254_v43, %v699_v44 }
 0x124   : > { %1070 = vst [vmem:[#allocation2 + $0xe8] sm:$0xf0] %v1062_v33  ;;  %v832_v57 = vmul.f32 %v821_v41, %v804_v56  ;;  %v833_v58 = vmul.f32 %v825_v24, %v803_v12  ;;  %v732_v59 = vmul.f32 %v721_v47, %v704_v25  ;;  %v733_v62 = vmul.f32 %v725_v61, %v703_v2 }
 0x125   : > { %v1493_v63 = vmul.f32 %v1479_v49, %v704_v25  ;;  %v1494_v21 = vmul.f32 %v1483_v51, %v703_v2  ;;  %v1521_v16 = vld [vmem:[#allocation2 + $0xa0] sm:$0xff]  ;;  %v1000_v12 = vrot.slane %v4337_v1, %v3872_v15  ;;  %v1004_v56 = vrot.slane %v4337_v1, %v3870_v14 }
 0x126   : > { %836 = vst [vmem:[#allocation2 + $0xb0] sm:$0xf] %v832_v57  ;;  %837 = vst [vmem:[#allocation2 + $0xb8] sm:$0xf] %v833_v58  ;;  %v895_v53 = vpop.permute.xlu1 %894  ;;  %v1018_v32 = vpop.permute.xlu0 %1017  ;;  %v3278_v5 = vpack.c.bf16 %v1521_v16, %v1517_v4  ;;  %v921_v2 = vrot.slane %v4330_v10, %v3872_v15  ;;  %v925_v25 = vrot.slane %v4330_v10, %v3870_v14 }
 0x127   : > { %736 = vst [vmem:[#allocation2 + $0x90] sm:$0xf] %v732_v59  ;;  %737 = vst [vmem:[#allocation2 + $0x98] sm:$0xf] %v733_v62  ;;  %v1028_v43 = vsel %vm4955_vm12, %v1018_v32, %v1020_v54 }
 0x128   : > { %1497 = vst [vmem:[#allocation2 + $0x1a8] sm:$0xf] %v1493_v63  ;;  %1498 = vst [vmem:[#allocation2 + $0x1b0] sm:$0xf] %v1494_v21  ;;  %v1053_v30 = vmul.f32 %v1036_v45, %v1028_v43  ;;  %3279 = vmatpush1.bf16.msra.mxu0 %v3278_v5 }
 0x129   : > { %v4359_v54 = vld [vmem:[#allocation5 + $0x41] ss:$8 sm:$0xf] }
 0x12a   : > { %v1061_v34 = vrot.slane %v1053_v30, 4  ;;  %v976_v31 = vpop.permute.xlu1 %975  ;;  %v4339_v8 = vpop.permute.xlu0 %896  ;;  %v1140_v49 = vrot.slane %v4359_v54, %v3849_v7 }
 0x12b   : > { %v905_v55 = vsel %vm4954_vm13, %v895_v53, %v4339_v8 }
 0x12c   : > { %1069 = vst [vmem:[#allocation2 + $0xe0] sm:$0xf0] %v1061_v34  ;;  %v931_v50 = vmul.f32 %v917_v11, %v905_v55  ;;  %v1136_v11 = vrot.slane %v4359_v54, %v3847_v6 }
 0x12d   : > { %v1524_v13 = vld [vmem:[#allocation2 + $0xb8] sm:$0xff]  ;;  %v1523_v28 = vld [vmem:[#allocation2 + $0xb0] sm:$0xff] }
 0x12e   : > { %v1520_v42 = vld [vmem:[#allocation2 + $0x98] sm:$0xff]  ;;  %v1519_v18 = vld [vmem:[#allocation2 + $0x90] sm:$0xff]  ;;  %935 = vst [vmem:[#allocation2 + $0xc8] sm:$0xf] %v931_v50  ;;  %v901_v26 = vpop.permute.xlu1 %900  ;;  %v978_v48 = vpop.permute.xlu0 %977 }
 0x12f   : > { %v3306_v27 = vpack.c.bf16 %v1524_v13, %v1520_v42  ;;  %v906_v29 = vsel %vm4954_vm13, %v901_v26, %v895_v53  ;;  %v983_v46 = vsel %vm4951_vm14, %v976_v31, %v978_v48  ;;  %v3308_v3 = vpack.c.bf16 %v1523_v28, %v1519_v18 }
 0x130   : > { %v930_v35 = vmul.f32 %v913_v17, %v906_v29  ;;  %v1010_v36 = vmul.f32 %v996_v19, %v983_v46 }
 0x131   : > { %3307 = vmatprep.subr.bf16.mxu1 %v3306_v27 }
 0x132   : > { %3309 = vmatpush1.bf16.msra.mxu1 %v3308_v3  ;;  %934 = vst [vmem:[#allocation2 + $0xc0] sm:$0xf] %v930_v35  ;;  %1014 = vst [vmem:[#allocation2 + $0xe8] sm:$0xf] %v1010_v36  ;;  %v1024_v22 = vpop.permute.xlu1 %1023  ;;  %v974_v40 = vpop.permute.xlu0 %973  ;;  %v1144_v35 = vrot.slane %v4359_v54, %v3872_v15  ;;  %v1148_v36 = vrot.slane %v4359_v54, %v3870_v14 }
 0x133   : > { %v1026_v41 = vsel %vm4955_vm12, %v4301_v39, %v1024_v22  ;;  %v1029_v60 = vsel %vm4955_vm12, %v1024_v22, %v1018_v32  ;;  %v984_v23 = vsel %vm4951_vm14, %v974_v40, %v976_v31  ;;  %v1087_v31 = vld [vmem:[#allocation5 + $0x40] ss:$8 sm:$0xf] }
 0x134   : > { %v1055_v24 = vmul.f32 %v1044_v0, %v1026_v41  ;;  %v1056_v47 = vmul.f32 %v1048_v37, %v1029_v60  ;;  %v1009_v61 = vmul.f32 %v992_v38, %v984_v23  ;;  %v1096_v13 = vrot.slane %v1087_v31, %v3849_v7 }
 0x135   : > { %v1526_v57 = vld [vmem:[#allocation2 + $0xc8] sm:$0xff]  ;;  %v1100_v46 = vrot.slane %v1087_v31, %v3872_v15  ;;  %v1104_v3 = vrot.slane %v1087_v31, %v3870_v14 }
 0x136   : > { %v1063_v51 = vrot.slane %v1055_v24, 4  ;;  %v1064_v33 = vrot.slane %v1056_v47, 4  ;;  %1013 = vst [vmem:[#allocation2 + $0xe0] sm:$0xf] %v1009_v61  ;;  %v4371_v52 = vpop.permute.xlu1 %1121  ;;  %v1120_v39 = vpop.permute.xlu0 %1119 }
 0x137   : > { %v1127_v44 = vsel %vm4953_vm15, %v1120_v39, %v4371_v52 }
 0x138   : > { %1071 = vst [vmem:[#allocation2 + $0xf0] sm:$0xf0] %v1063_v51  ;;  %1072 = vst [vmem:[#allocation2 + $0xf8] sm:$0xf0] %v1064_v33  ;;  %v1154_v45 = vmul.f32 %v1140_v49, %v1127_v44 }
 0x139   : > { %v1530_v58 = vld [vmem:[#allocation2 + $0xe8] sm:$0xff]  ;;  %v1525_v1 = vld [vmem:[#allocation2 + $0xc0] sm:$0xff] }
 0x13a   : > { %v1162_v59 = vrot.slane %v1154_v45, 4  ;;  %v980_v62 = vpop.permute.xlu1 %979  ;;  %v3280_v63 = vpack.c.bf16 %v1530_v58, %v1526_v57  ;;  %v1538_v57 = vld [vmem:[#allocation2 + $0x128] sm:$0xff] }
 0x13b   : > { %v982_v21 = vsel %vm4951_vm14, %v978_v48, %v980_v62  ;;  %v985_v4 = vsel %vm4951_vm14, %v980_v62, %v974_v40  ;;  %v899_v16 = vpop.permute.xlu0 %898  ;;  %vm4952_vm14 = vcmp.lt.s32.totalorder %v3881_v20, 120  ;;  %v1542_v62 = vld [vmem:[#allocation2 + $0x148] sm:$0xff] }
 0x13c   : > { %1170 = vst [vmem:[#allocation2 + $0x108] sm:$0xf0] %v1162_v59  ;;  %v1011_v53 = vmul.f32 %v1000_v12, %v982_v21  ;;  %v1012_v32 = vmul.f32 %v1004_v56, %v985_v4  ;;  %v903_v5 = vsel %vm4954_vm13, %v899_v16, %v901_v26  ;;  %v904_v10 = vsel %vm4954_vm13, %v4339_v8, %v899_v16  ;;  %v1546_v59 = vld [vmem:[#allocation2 + $0x168] sm:$0xff]  ;;  %v1545_v21 = vld [vmem:[#allocation2 + $0x160] sm:$0xff] }
 0x13d   : > { %3281 = vmatprep.subr.bf16.mxu0 %v3280_v63  ;;  %v932_v43 = vmul.f32 %v921_v2, %v904_v10  ;;  %v933_v30 = vmul.f32 %v925_v25, %v903_v5  ;;  %v1529_v34 = vld [vmem:[#allocation2 + $0xe0] sm:$0xff]  ;;  %v1092_v8 = vrot.slane %v1087_v31, %v3847_v6  ;;  %v3288_v63 = vpack.c.bf16 %v1546_v59, %v1542_v62  ;;  %v1554_v16 = vld [vmem:[#allocation2 + $0x1a8] sm:$0xf]  ;;  %v1539_v5 = vld [vmem:[#allocation2 + $0x130] sm:$0xff] }
 0x13e   : > { %1015 = vst [vmem:[#allocation2 + $0xf0] sm:$0xf] %v1011_v53  ;;  %1016 = vst [vmem:[#allocation2 + $0xf8] sm:$0xf] %v1012_v32  ;;  %v1076_v55 = vpop.permute.xlu1 %1075  ;;  %v3282_v50 = vpack.c.bf16 %v1529_v34, %v1525_v1  ;;  %v1537_v2 = vld [vmem:[#allocation2 + $0x120] sm:$0xff]  ;;  %v1540_v32 = vld [vmem:[#allocation2 + $0x138] sm:$0xff] }
 0x13f   : > { %936 = vst [vmem:[#allocation2 + $0xd0] sm:$0xf] %v932_v43  ;;  %937 = vst [vmem:[#allocation2 + $0xd8] sm:$0xf] %v933_v30  ;;  %v1118_v17 = vpop.permute.xlu0 %1117  ;;  %v1541_v4 = vld [vmem:[#allocation2 + $0x140] sm:$0xff]  ;;  %v1548_v10 = vld [vmem:[#allocation2 + $0x178] sm:$0xff] }
 0x140   : > { %v1128_v19 = vsel %vm4953_vm15, %v1118_v17, %v1120_v39  ;;  %3283 = vmatpush1.bf16.msra.mxu0 %v3282_v50  ;;  %v3290_v43 = vpack.c.bf16 %v1545_v21, %v1541_v4  ;;  %v1550_v30 = vld [vmem:[#allocation2 + $0x188] sm:$0xff]  ;;  %v1553_v50 = vld [vmem:[#allocation2 + $0x1a0] sm:$0xf] }
 0x141   : > { %v1153_v42 = vmul.f32 %v1136_v11, %v1128_v19  ;;  %v3292_v34 = vpack.c.bf16 %v1554_v16, %v1550_v30 }
 0x142   : > { %v1074_v18 = vpop.permute.xlu1 %1073 }
 0x143   : > { %v1161_v26 = vrot.slane %v1153_v42, 4  ;;  %v1084_v48 = vsel %vm4952_vm14, %v1074_v18, %v1076_v55  ;;  %v1078_v27 = vpop.permute.xlu0 %1077  ;;  %v1547_v42 = vld [vmem:[#allocation2 + $0x170] sm:$0xff] }
 0x144   : > { %v1109_v28 = vmul.f32 %v1092_v8, %v1084_v48  ;;  %v1083_v29 = vsel %vm4952_vm14, %v1076_v55, %v1078_v27  ;;  %v1549_v8 = vld [vmem:[#allocation2 + $0x180] sm:$0xff] }
 0x145   : > { %1169 = vst [vmem:[#allocation2 + $0x100] sm:$0xf0] %v1161_v26  ;;  %v1110_v0 = vmul.f32 %v1096_v13, %v1083_v29  ;;  %v1532_v37 = vld [vmem:[#allocation2 + $0xf8] sm:$0xff]  ;;  %v1531_v38 = vld [vmem:[#allocation2 + $0xf0] sm:$0xff]  ;;  %v3295_v13 = vpack.c.bf16 %v1553_v50, %v1549_v8 }
 0x146   : > { %1113 = vst [vmem:[#allocation2 + $0x100] sm:$0xf] %v1109_v28  ;;  %v1080_v22 = vpop.permute.xlu1 %1079  ;;  %v1528_v40 = vld [vmem:[#allocation2 + $0xd8] sm:$0xff]  ;;  %v1527_v41 = vld [vmem:[#allocation2 + $0xd0] sm:$0xff] }
 0x147   : > { %1114 = vst [vmem:[#allocation2 + $0x108] sm:$0xf] %v1110_v0  ;;  %v1082_v60 = vsel %vm4952_vm14, %v1078_v27, %v1080_v22  ;;  %v1085_v23 = vsel %vm4952_vm14, %v1080_v22, %v1074_v18  ;;  %v1124_v24 = vpop.permute.xlu0 %1123  ;;  %v3310_v47 = vpack.c.bf16 %v1532_v37, %v1528_v40  ;;  %v3312_v61 = vpack.c.bf16 %v1531_v38, %v1527_v41  ;;  %v1556_v18 = vld [vmem:[#allocation2 + $0x1b8] sm:$0xf]  ;;  %v1543_v26 = vld [vmem:[#allocation2 + $0x150] sm:$0xff] }
 0x148   : > { %v1111_v49 = vmul.f32 %v1100_v46, %v1082_v60  ;;  %v1112_v51 = vmul.f32 %v1104_v3, %v1085_v23  ;;  %v1126_v54 = vsel %vm4953_vm15, %v4371_v52, %v1124_v24  ;;  %v1129_v33 = vsel %vm4953_vm15, %v1124_v24, %v1118_v17  ;;  %v1544_v17 = vld [vmem:[#allocation2 + $0x158] sm:$0xff]  ;;  %v1500_v27 = vld [vmem:[%s4943_s2] sm:$0xf]  ;;  %v1555_v46 = vld [vmem:[#allocation2 + $0x1b0] sm:$0xf] }
 0x149   : > { %v1155_v39 = vmul.f32 %v1144_v35, %v1126_v54  ;;  %v1156_v44 = vmul.f32 %v1148_v36, %v1129_v33  ;;  %3311 = vmatprep.subr.bf16.mxu1 %v3310_v47  ;;  %vm1567_vm14 = vcmask 1043456   ;;  %vm3586_vm15 = vmmov 1   ;;  %v1552_v28 = vld [vmem:[#allocation2 + $0x198] sm:$0xff]  ;;  %v1551_v3 = vld [vmem:[#allocation2 + $0x190] sm:$0xff] }
 0x14a   : > { %1115 = vst [vmem:[#allocation2 + $0x110] sm:$0xf] %v1111_v49  ;;  %1116 = vst [vmem:[#allocation2 + $0x118] sm:$0xf] %v1112_v51  ;;  %3313 = vmatpush1.bf16.msra.mxu1 %v3312_v61  ;;  %v3318_v19 = vpack.c.bf16 %v1548_v10, %v1544_v17  ;;  %v3320_v48 = vpack.c.bf16 %v1547_v42, %v1543_v26  ;;  %v3322_v29 = vpack.c.bf16 %v1556_v18, %v1552_v28 }
 0x14b   : > { %v1163_v45 = vrot.slane %v1155_v39, 4  ;;  %v1164_v12 = vrot.slane %v1156_v44, 4  ;;  %vm4420_vm13 = vmpackc.low %vm1567_vm14, %vm3586_vm15  ;;  %vm4957_vm15 = vcmask 883712   ;;  %v3325_v0 = vpack.c.bf16 %v1555_v46, %v1551_v3  ;;  %v2387_v17 = vld [vmem:[#allocation5 + $0x25] ss:$8 sm:$0xf] }
 0x14c   : > { %v2392_v8 = vrot.slane %v2387_v17, %v3847_v6  ;;  %v2404_v42 = vrot.slane %v2387_v17, %v3870_v14  ;;  %v2400_v18 = vrot.slane %v2387_v17, %v3872_v15 }
 0x14d   : > { %1171 = vst [vmem:[#allocation2 + $0x110] sm:$0xf0] %v1163_v45  ;;  %1172 = vst [vmem:[#allocation2 + $0x118] sm:$0xf0] %v1164_v12  ;;  %v1533_v56 = vld [vmem:[#allocation2 + $0x100] sm:$0xff] }
 0x14e   : > { %v1534_v25 = vld [vmem:[#allocation2 + $0x108] sm:$0xff]  ;;  %v3286_v58 = vpack.c.bf16 %v1537_v2, %v1533_v56 }
 0x14f   : > { %v3284_v52 = vpack.c.bf16 %v1538_v57, %v1534_v25 }
 0x151   : > { %3285 = vmatprep.subr.bf16.mxu0 %v3284_v52 }
 0x152   : > { %3287 = vmatpush1.bf16.msra.mxu0 %v3286_v58 }
 0x153   : > { %3289 = vmatprep.subr.bf16.mxu0 %v3288_v63 }
 0x154   : > { %v1536_v11 = vld [vmem:[#allocation2 + $0x118] sm:$0xff]  ;;  %v1535_v1 = vld [vmem:[#allocation2 + $0x110] sm:$0xff] }
 0x155   : > { %v3314_v31 = vpack.c.bf16 %v1540_v32, %v1536_v11  ;;  %v3316_v55 = vpack.c.bf16 %v1539_v5, %v1535_v1 }
 0x156   : > { %3291 = vmatpush1.bf16.msra.mxu0 %v3290_v43 }
 0x157   : > { %3294 = vmatprep.subr.msk.bf16.mxu0 %vm4420_vm13, %v3292_v34  ;;  %3315 = vmatprep.subr.bf16.mxu1 %v3314_v31 }
 0x158   : > { %3317 = vmatpush1.bf16.msra.mxu1 %v3316_v55 }
 0x159   : > { %3319 = vmatprep.subr.bf16.mxu1 %v3318_v19  ;;  %v2396_v19 = vrot.slane %v2387_v17, %v3849_v7  ;;  %v4625_v17 = vld [vmem:[#allocation5] ss:$8 sm:$0xf] }
 0x15a   : > { %3297 = vmatpush1.bf16.msk.msra.mxu0 %vm4420_vm13, %v3295_v13 }
 0x15c   : > { %3321 = vmatpush1.bf16.msra.mxu1 %v3320_v48  ;;  %v1561_v35 = vpop.permute.xlu0 %1560 }
 0x15d   : > { %3254 = vmatmul.mubr.msk.f32.vlgmr.msra.gmra.mrb[0].mxu0 %vm4957_vm15, %v1500_v27  ;;  %3324 = vmatprep.subr.msk.bf16.mxu1 %vm4420_vm13, %v3322_v29 }
 0x15e   : > { %3081 = vmatprep.mubr.f32.mxu0 %v3584_v9 }
 0x160   : > { %3327 = vmatpush1.bf16.msk.msra.mxu1 %vm4420_vm13, %v3325_v0 }
 0x163   : > { %3257 = vmatmul.mubr.msk.f32.vlgmr.msra.gmra.mrb[0].mxu1 %vm4957_vm15, %v1500_v27 }
 0x164   : > { %3152 = vmatprep.mubr.f32.mxu1 %v3584_v9 }
 0x230   : > { %v1646_v36 = vpop.f32.mrb[0].mxu0 }
 0x231   : > { %v1648_v37 = vpop.f32.mrb[1].mxu0  ;;  %v1647_v38 = vadd.f32 %v1646_v36, %v1561_v35 }
 0x232   : > { %v1649_v22 = vadd.f32 %v1648_v37, %v1561_v35 }
 0x233   : > { %v1726_v40 = vmul.f32 0.2, %v1647_v38  ;;  %vm1722_vm12 = vcmp.ge.f32.partialorder %v1647_v38, 0.0 }
 0x234   : > { %v1727_v41 = vmul.f32 0.2, %v1649_v22  ;;  %vm1723_vm11 = vcmp.ge.f32.partialorder %v1649_v22, 0.0 }
 0x235   : > { %v1730_v60 = vsel %vm1722_vm12, %v1647_v38, %v1726_v40  ;;  %v2651_v40 = vld [vmem:[#allocation5 + $0x43] ss:$8 sm:$0xf]  ;;  %vm4981_vm12 = vcmp.lt.s32.totalorder %v3881_v20, 1 }
 0x236   : > { %v1717_v23 = vpop.f32.mrb[0].mxu1  ;;  %v1731_v24 = vsel %vm1723_vm11, %v1649_v22, %v1727_v41  ;;  %v1734_v51 = vsel %vm1567_vm14, %v1730_v60, 0.0  ;;  %v1823_v22 = vld [vmem:[#allocation5 + $0x1] ss:$8 sm:$0xf] }
 0x237   : > { %v1718_v47 = vadd.f32 %v1717_v23, %v1561_v35  ;;  %v1719_v61 = vpop.f32.mrb[1].mxu1  ;;  %v1735_v54 = vsel %vm1567_vm14, %v1731_v24, 0.0  ;;  %v1832_v41 = vrot.slane %v1823_v22, %v3849_v7 }
 0x238   : > { %v1720_v49 = vadd.f32 %v1719_v61, %v1561_v35  ;;  %v1736_v44 = vadd.f32 %v1735_v54, %v1734_v51  ;;  %v1836_v61 = vrot.slane %v1823_v22, %v3872_v15  ;;  %v2660_v54 = vrot.slane %v2651_v40, %v3849_v7 }
 0x239   : > { %vm1724_vm15 = vcmp.ge.f32.partialorder %v1718_v47, 0.0  ;;  %v1728_v9 = vmul.f32 0.2, %v1718_v47 }
 0x23a   : > { %vm1725_vm10 = vcmp.ge.f32.partialorder %v1720_v49, 0.0  ;;  %v1729_v33 = vmul.f32 0.2, %v1720_v49 }
 0x23b   : > { %v1732_v39 = vsel %vm1724_vm15, %v1718_v47, %v1728_v9  ;;  %vm4983_vm15 = vmmov %vm4981_vm12 }
 0x23c   : > { %v1733_v45 = vsel %vm1725_vm10, %v1720_v49, %v1729_v33  ;;  %v1737_v12 = vsel %vm1567_vm14, %v1732_v39, 0.0 }
 0x23d   : > { %v1738_v56 = vadd.f32 %v1737_v12, %v1736_v44  ;;  %v1739_v2 = vsel %vm1567_vm14, %v1733_v45, 0.0  ;;  %v1828_v12 = vrot.slane %v1823_v22, %v3847_v6 }
 0x23f   : > { %v1740_v25 = vadd.f32 %v1739_v2, %v1738_v56  ;;  %v1840_v56 = vrot.slane %v1823_v22, %v3870_v14  ;;  %v2664_v2 = vrot.slane %v2651_v40, %v3872_v15  ;;  %v4640_v22 = vld [vmem:[#allocation5 + $0x42] ss:$8 sm:$0xf] }
 0x241   : > { %1741 = vadd.xlane.f32.xlu1 %v1740_v25  ;;  %v4596_v25 = vld [vmem:[#allocation5 + $0x3] ss:$8 sm:$0xf] }
 0x2ce   : > { %v1742_v57 = vpop.xlane.xlu1 %1741 }
 0x2cf   : > { %v1744_v58 = vmul.f32 0.001953125, %v1742_v57 }
 0x2d1   : > { %v1745_v59 = vsub.f32 %v1730_v60, %v1744_v58  ;;  %v1746_v52 = vsub.f32 %v1731_v24, %v1744_v58  ;;  %v1747_v62 = vsub.f32 %v1732_v39, %v1744_v58  ;;  %v1748_v63 = vsub.f32 %v1733_v45, %v1744_v58 }
 0x2d2   : > { %v2656_v60 = vrot.slane %v2651_v40, %v3847_v6 }
 0x2d3   : > { %v1749_v21 = vmul.f32 %v1745_v59, %v1745_v59  ;;  %v1750_v4 = vmul.f32 %v1746_v52, %v1746_v52  ;;  %v1751_v16 = vmul.f32 %v1747_v62, %v1747_v62  ;;  %v1752_v32 = vmul.f32 %v1748_v63, %v1748_v63 }
 0x2d5   : > { %v1753_v5 = vsel %vm1567_vm14, %v1749_v21, 0.0  ;;  %v1754_v10 = vsel %vm1567_vm14, %v1750_v4, 0.0  ;;  %v1756_v30 = vsel %vm1567_vm14, %v1751_v16, 0.0  ;;  %v1758_v1 = vsel %vm1567_vm14, %v1752_v32, 0.0  ;;  %vm4982_vm14 = vmmov %vm4981_vm12 }
 0x2d6   : > { %v1755_v43 = vadd.f32 %v1754_v10, %v1753_v5  ;;  %v1928_v16 = vrot.slane %v4596_v25, %v3849_v7  ;;  %v1932_v32 = vrot.slane %v4596_v25, %v3872_v15 }
 0x2d8   : > { %v1757_v11 = vadd.f32 %v1756_v30, %v1755_v43 }
 0x2da   : > { %v1759_v34 = vadd.f32 %v1758_v1, %v1757_v11 }
 0x2dc   : > { %1760 = vadd.xlane.f32.xlu0 %v1759_v34 }
 0x369   : > { %v1761_v31 = vpop.xlane.xlu0 %1760 }
 0x36a   : > { %v1762_v55 = vmul.f32 0.001953125, %v1761_v31 }
 0x36c   : > { %v1763_v50 = vadd.f32 1e-05, %v1762_v55  ;;  %v1924_v55 = vrot.slane %v4596_v25, %v3847_v6 }
 0x36e   : > { %3463 = vrsqrt.f32 %v1763_v50  ;;  %v1936_v50 = vrot.slane %v4596_v25, %v3870_v14 }
 0x378   : > { %v3464_v13 = vpop.eup %3463 }
 0x379   : > { %v4451_v26 = vmul.f32 %v3464_v13, %v1745_v59  ;;  %v4453_v48 = vmul.f32 %v3464_v13, %v1746_v52  ;;  %v4455_v27 = vmul.f32 %v3464_v13, %v1747_v62  ;;  %v4457_v28 = vmul.f32 %v3464_v13, %v1748_v63  ;;  %v4603_v52 = vld [vmem:[#allocation5 + $0x45] ss:$8 sm:$0xf] }
 0x37a   : > { %v2668_v59 = vrot.slane %v2651_v40, %v3870_v14  ;;  %v2728_v43 = vrot.slane %v4603_v52, %v3847_v6  ;;  %v2732_v30 = vrot.slane %v4603_v52, %v3849_v7  ;;  %v2996_v40 = vld [vmem:[%s4946_s5] sm:$0x3f] }
 0x37b   : > { %1813 = vrot.lane.b32.xlu0 %v4453_v48, %s3568_s15  ;;  %1811 = vrot.lane.b32.xlu1 %v4451_v26, %s3568_s15  ;;  %v2410_v29 = vmul.f32 %v2396_v19, %v4453_v48  ;;  %v2409_v46 = vmul.f32 %v2392_v8, %v4451_v26  ;;  %v2412_v3 = vmul.f32 %v2404_v42, %v4457_v28 }
 0x37c   : > { %v2411_v37 = vmul.f32 %v2400_v18, %v4455_v27 }
 0x37d   : > { %v2418_v0 = vrot.slane %v2410_v29, 4  ;;  %v2417_v35 = vrot.slane %v2409_v46, 4  ;;  %v2420_v36 = vrot.slane %v2412_v3, 4  ;;  %v2736_v3 = vrot.slane %v4603_v52, %v3872_v15 }
 0x37e   : > { %v2419_v38 = vrot.slane %v2411_v37, 4 }
 0x37f   : > { %1907 = vrot.lane.b32.xlu0 %v4451_v26, %s3567_s27  ;;  %1815 = vrot.lane.b32.xlu1 %v4455_v27, %s3568_s15  ;;  %2426 = vst [vmem:[#allocation2 + $0xc8] sm:$0xf0] %v2418_v0  ;;  %2425 = vst [vmem:[#allocation2 + $0xc0] sm:$0xf0] %v2417_v35  ;;  %v2740_v0 = vrot.slane %v4603_v52, %v3870_v14 }
 0x380   : > { %2428 = vst [vmem:[#allocation2 + $0xd8] sm:$0xf0] %v2420_v36  ;;  %2427 = vst [vmem:[#allocation2 + $0xd0] sm:$0xf0] %v2419_v38 }
 0x383   : > { %1911 = vrot.lane.b32.xlu0 %v4455_v27, %s3567_s27  ;;  %1817 = vrot.lane.b32.xlu1 %v4457_v28, %s3568_s15 }
 0x387   : > { %1769 = vrot.lane.b32.xlu0 %v4451_v26, %s3569_s26  ;;  %1909 = vrot.lane.b32.xlu1 %v4453_v48, %s3567_s27 }
 0x38b   : > { %1773 = vrot.lane.b32.xlu0 %v4455_v27, %s3569_s26  ;;  %1913 = vrot.lane.b32.xlu1 %v4457_v28, %s3567_s27 }
 0x38f   : > { %1865 = vrot.lane.b32.xlu0 %v4451_v26, %s3570_s30  ;;  %1771 = vrot.lane.b32.xlu1 %v4453_v48, %s3569_s26 }
 0x393   : > { %1869 = vrot.lane.b32.xlu0 %v4455_v27, %s3570_s30  ;;  %1775 = vrot.lane.b32.xlu1 %v4457_v28, %s3569_s26 }
 0x397   : > { %2003 = vrot.lane.b32.xlu0 %v4451_v26, %s3571_s8  ;;  %1867 = vrot.lane.b32.xlu1 %v4453_v48, %s3570_s30 }
 0x39b   : > { %2007 = vrot.lane.b32.xlu0 %v4455_v27, %s3571_s8  ;;  %1871 = vrot.lane.b32.xlu1 %v4457_v28, %s3570_s30 }
 0x39f   : > { %2099 = vrot.lane.b32.xlu0 %v4451_v26, %s3572_s24  ;;  %2005 = vrot.lane.b32.xlu1 %v4453_v48, %s3571_s8 }
 0x3a3   : > { %2103 = vrot.lane.b32.xlu0 %v4455_v27, %s3572_s24  ;;  %2009 = vrot.lane.b32.xlu1 %v4457_v28, %s3571_s8  ;;  %s3267_s8 = sshll.u32 %s5004_s25, 5 }
 0x3a7   : > { %1961 = vrot.lane.b32.xlu0 %v4451_v26, %s3573_s16  ;;  %2101 = vrot.lane.b32.xlu1 %v4453_v48, %s3572_s24 }
 0x3ab   : > { %1965 = vrot.lane.b32.xlu0 %v4455_v27, %s3573_s16  ;;  %2105 = vrot.lane.b32.xlu1 %v4457_v28, %s3572_s24 }
 0x3af   : > { %2057 = vrot.lane.b32.xlu0 %v4451_v26, %s3574_s17  ;;  %1963 = vrot.lane.b32.xlu1 %v4453_v48, %s3573_s16 }
 0x3b3   : > { %2061 = vrot.lane.b32.xlu0 %v4455_v27, %s3574_s17  ;;  %1967 = vrot.lane.b32.xlu1 %v4457_v28, %s3573_s16 }
 0x3b7   : > { %2195 = vrot.lane.b32.xlu0 %v4451_v26, %s3575_s18  ;;  %2059 = vrot.lane.b32.xlu1 %v4453_v48, %s3574_s17 }
 0x3bb   : > { %2199 = vrot.lane.b32.xlu0 %v4455_v27, %s3575_s18  ;;  %2063 = vrot.lane.b32.xlu1 %v4457_v28, %s3574_s17  ;;  %s284_s17 = scalar_lea.vmem %s4947_s6, %s3267_s8 }
 0x3bf   : > { %2291 = vrot.lane.b32.xlu0 %v4451_v26, %s3576_s19  ;;  %2197 = vrot.lane.b32.xlu1 %v4453_v48, %s3575_s18 }
 0x3c3   : > { %2295 = vrot.lane.b32.xlu0 %v4455_v27, %s3576_s19  ;;  %2201 = vrot.lane.b32.xlu1 %v4457_v28, %s3575_s18 }
 0x3c7   : > { %2153 = vrot.lane.b32.xlu0 %v4451_v26, %s3577_s20  ;;  %2293 = vrot.lane.b32.xlu1 %v4453_v48, %s3576_s19 }
 0x3cb   : > { %2157 = vrot.lane.b32.xlu0 %v4455_v27, %s3577_s20  ;;  %2297 = vrot.lane.b32.xlu1 %v4457_v28, %s3576_s19 }
 0x3cf   : > { %2249 = vrot.lane.b32.xlu0 %v4451_v26, %s3578_s21  ;;  %2155 = vrot.lane.b32.xlu1 %v4453_v48, %s3577_s20 }
 0x3d3   : > { %2253 = vrot.lane.b32.xlu0 %v4455_v27, %s3578_s21  ;;  %2159 = vrot.lane.b32.xlu1 %v4457_v28, %s3577_s20 }
 0x3d7   : > { %2471 = vrot.lane.b32.xlu0 %v4451_v26, %s3579_s10  ;;  %2251 = vrot.lane.b32.xlu1 %v4453_v48, %s3578_s21 }
 0x3db   : > { %2475 = vrot.lane.b32.xlu0 %v4455_v27, %s3579_s10  ;;  %2255 = vrot.lane.b32.xlu1 %v4457_v28, %s3578_s21 }
 0x3df   : > { %2345 = vrot.lane.b32.xlu0 %v4451_v26, %s3580_s11  ;;  %2473 = vrot.lane.b32.xlu1 %v4453_v48, %s3579_s10 }
 0x3e3   : > { %2349 = vrot.lane.b32.xlu0 %v4455_v27, %s3580_s11  ;;  %2477 = vrot.lane.b32.xlu1 %v4457_v28, %s3579_s10 }
 0x3e7   : > { %2429 = vrot.lane.b32.xlu0 %v4451_v26, %s3581_s12  ;;  %2347 = vrot.lane.b32.xlu1 %v4453_v48, %s3580_s11 }
 0x3eb   : > { %2433 = vrot.lane.b32.xlu0 %v4455_v27, %s3581_s12  ;;  %2351 = vrot.lane.b32.xlu1 %v4457_v28, %s3580_s11 }
 0x3ed   : > { %v1814_v23 = vpop.permute.xlu0 %1813  ;;  %v1812_v24 = vpop.permute.xlu1 %1811 }
 0x3ee   : > { %v1821_v47 = vsel %vm346_vm1, %v1812_v24, %v1814_v23 }
 0x3ef   : > { %v1846_v49 = vmul.f32 %v1832_v41, %v1821_v47  ;;  %v2673_v51 = vmul.f32 %v2656_v60, %v1821_v47  ;;  %2567 = vrot.lane.b32.xlu0 %v4451_v26, %s3582_s13  ;;  %2431 = vrot.lane.b32.xlu1 %v4453_v48, %s3581_s12  ;;  %v1790_v41 = vrot.slane %v4625_v17, %v3849_v7 }
 0x3f0   : > { %v1794_v60 = vrot.slane %v4625_v17, %v3872_v15 }
 0x3f1   : > { %v1854_v9 = vrot.slane %v1846_v49, 4  ;;  %v2681_v33 = vrot.slane %v2673_v51, 4  ;;  %v4589_v39 = vpop.permute.xlu0 %1907  ;;  %v1816_v44 = vpop.permute.xlu1 %1815 }
 0x3f2   : > { %v1820_v45 = vsel %vm346_vm1, %v1814_v23, %v1816_v44 }
 0x3f3   : > { %1862 = vst [vmem:[#allocation2 + $0x8] sm:$0xf0] %v1854_v9  ;;  %2689 = vst [vmem:[#allocation2 + $0x120] sm:$0xf0] %v2681_v33  ;;  %v1847_v57 = vmul.f32 %v1836_v61, %v1820_v45  ;;  %v2674_v58 = vmul.f32 %v2660_v54, %v1820_v45  ;;  %2571 = vrot.lane.b32.xlu0 %v4455_v27, %s3582_s13  ;;  %2435 = vrot.lane.b32.xlu1 %v4457_v28, %s3581_s12 }
 0x3f4   : > { %v2626_v9 = vrot.slane %v4640_v22, %v3847_v6  ;;  %v2630_v33 = vrot.slane %v4640_v22, %v3849_v7 }
 0x3f5   : > { %v1855_v62 = vrot.slane %v1847_v57, 4  ;;  %v2682_v63 = vrot.slane %v2674_v58, 4  ;;  %v1912_v21 = vpop.permute.xlu0 %1911  ;;  %v1818_v4 = vpop.permute.xlu1 %1817 }
 0x3f6   : > { %v1819_v5 = vsel %vm346_vm1, %v1816_v44, %v1818_v4  ;;  %v1822_v10 = vsel %vm346_vm1, %v1818_v4, %v1812_v24  ;;  %v2638_v4 = vrot.slane %v4640_v22, %v3870_v14 }
 0x3f7   : > { %1863 = vst [vmem:[#allocation2 + $0x10] sm:$0xf0] %v1855_v62  ;;  %2690 = vst [vmem:[#allocation2 + $0x128] sm:$0xf0] %v2682_v63  ;;  %v1845_v11 = vmul.f32 %v1828_v12, %v1822_v10  ;;  %v1848_v1 = vmul.f32 %v1840_v56, %v1819_v5  ;;  %v2675_v34 = vmul.f32 %v2664_v2, %v1819_v5  ;;  %2525 = vrot.lane.b32.xlu0 %v4451_v26, %s3583_s14 }
 0x3f8   : > { %v2676_v31 = vmul.f32 %v2668_v59, %v1822_v10  ;;  %2569 = vrot.lane.b32.xlu1 %v4453_v48, %s3582_s13  ;;  %v1798_v2 = vrot.slane %v4625_v17, %v3870_v14 }
 0x3f9   : > { %v1853_v19 = vrot.slane %v1845_v11, 4  ;;  %v1856_v8 = vrot.slane %v1848_v1, 4  ;;  %v2683_v42 = vrot.slane %v2675_v34, 4  ;;  %v4627_v18 = vpop.permute.xlu0 %1769  ;;  %v1910_v29 = vpop.permute.xlu1 %1909 }
 0x3fa   : > { %v2684_v13 = vrot.slane %v2676_v31, 4  ;;  %v1916_v26 = vsel %vm446_vm0, %v1910_v29, %v1912_v21  ;;  %v1917_v46 = vsel %vm446_vm0, %v4589_v39, %v1910_v29 }
 0x3fb   : > { %1861 = vst [vmem:[#allocation2] sm:$0xf0] %v1853_v19  ;;  %1864 = vst [vmem:[#allocation2 + $0x18] sm:$0xf0] %v1856_v8  ;;  %v1942_v35 = vmul.f32 %v1928_v16, %v1917_v46  ;;  %v1943_v36 = vmul.f32 %v1932_v32, %v1916_v26  ;;  %v2745_v37 = vmul.f32 %v2728_v43, %v1917_v46  ;;  %2529 = vrot.lane.b32.xlu0 %v4455_v27, %s3583_s14 }
 0x3fc   : > { %2691 = vst [vmem:[#allocation2 + $0x130] sm:$0xf0] %v2683_v42  ;;  %2692 = vst [vmem:[#allocation2 + $0x138] sm:$0xf0] %v2684_v13  ;;  %v2746_v38 = vmul.f32 %v2732_v30, %v1916_v26  ;;  %2573 = vrot.lane.b32.xlu1 %v4457_v28, %s3582_s13 }
 0x3fd   : > { %v1950_v23 = vrot.slane %v1942_v35, 4  ;;  %v1951_v24 = vrot.slane %v1943_v36, 4  ;;  %v2753_v47 = vrot.slane %v2745_v37, 4  ;;  %v1774_v27 = vpop.permute.xlu0 %1773  ;;  %v1914_v49 = vpop.permute.xlu1 %1913  ;;  %v1877_v16 = vld [vmem:[#allocation5 + $0x2] ss:$8 sm:$0xf] }
 0x3fe   : > { %v2754_v61 = vrot.slane %v2746_v38, 4  ;;  %v1915_v51 = vsel %vm446_vm0, %v1912_v21, %v1914_v49  ;;  %v1918_v54 = vsel %vm446_vm0, %v1914_v49, %v4589_v39  ;;  %v1786_v39 = vrot.slane %v4625_v17, %v3847_v6  ;;  %v2693_v30 = vld [vmem:[#allocation5 + $0x44] ss:$8 sm:$0xf] }
 0x3ff   : > { %1958 = vst [vmem:[#allocation2 + $0x28] sm:$0xf0] %v1950_v23  ;;  %1959 = vst [vmem:[#allocation2 + $0x30] sm:$0xf0] %v1951_v24  ;;  %v1941_v44 = vmul.f32 %v1924_v55, %v1918_v54  ;;  %v1944_v45 = vmul.f32 %v1936_v50, %v1915_v51  ;;  %v2747_v12 = vmul.f32 %v2736_v3, %v1915_v51  ;;  %2999 = vperm.xlu0 %3460, %v2996_v40  }
 0x400   : > { %2761 = vst [vmem:[#allocation2 + $0x140] sm:$0xf0] %v2753_v47  ;;  %2762 = vst [vmem:[#allocation2 + $0x148] sm:$0xf0] %v2754_v61  ;;  %v2748_v56 = vmul.f32 %v2740_v0, %v1918_v54  ;;  %2527 = vrot.lane.b32.xlu1 %v4453_v48, %s3583_s14  ;;  %v2634_v48 = vrot.slane %v4640_v22, %v3872_v15  ;;  %v1886_v34 = vrot.slane %v1877_v16, %v3849_v7 }
 0x401   : > { %v1949_v25 = vrot.slane %v1941_v44, 4  ;;  %v1952_v57 = vrot.slane %v1944_v45, 4  ;;  %v2755_v58 = vrot.slane %v2747_v12, 4  ;;  %v1866_v52 = vpop.permute.xlu0 %1865  ;;  %v1772_v62 = vpop.permute.xlu1 %1771  ;;  %v1890_v31 = vrot.slane %v1877_v16, %v3872_v15  ;;  %v4696_v37 = vld [vmem:[#allocation5 + $0x5] ss:$8 sm:$0xf] }
 0x402   : > { %v2756_v59 = vrot.slane %v2748_v56, 4  ;;  %v1778_v63 = vsel %vm303_vm2, %v1772_v62, %v1774_v27  ;;  %v1779_v21 = vsel %vm303_vm2, %v4627_v18, %v1772_v62  ;;  %v2698_v17 = vrot.slane %v2693_v30, %v3847_v6 }
 0x403   : > { %1957 = vst [vmem:[#allocation2 + $0x20] sm:$0xf0] %v1949_v25  ;;  %1960 = vst [vmem:[#allocation2 + $0x38] sm:$0xf0] %v1952_v57  ;;  %v1804_v32 = vmul.f32 %v1790_v41, %v1779_v21  ;;  %v1805_v5 = vmul.f32 %v1794_v60, %v1778_v63  ;;  %v2643_v10 = vmul.f32 %v2626_v9, %v1779_v21  ;;  %vm4969_vm0 = vcmp.lt.s32.totalorder %v3881_v20, 55 }
 0x404   : > { %2763 = vst [vmem:[#allocation2 + $0x150] sm:$0xf0] %v2755_v58  ;;  %2764 = vst [vmem:[#allocation2 + $0x158] sm:$0xf0] %v2756_v59  ;;  %v2644_v43 = vmul.f32 %v2630_v33, %v1778_v63  ;;  %2531 = vrot.lane.b32.xlu1 %v4457_v28, %s3583_s14  ;;  %v2702_v28 = vrot.slane %v2693_v30, %v3849_v7  ;;  %v1882_v46 = vrot.slane %v1877_v16, %v3847_v6 }
 0x405   : > { %1808 = vst [vmem:[#allocation2 + $0x8] sm:$0xf] %v1804_v32  ;;  %1809 = vst [vmem:[#allocation2 + $0x10] sm:$0xf] %v1805_v5  ;;  %v1870_v11 = vpop.permute.xlu0 %1869  ;;  %v1776_v1 = vpop.permute.xlu1 %1775  ;;  %v1894_v3 = vrot.slane %v1877_v16, %v3870_v14  ;;  %v2706_v35 = vrot.slane %v2693_v30, %v3872_v15  ;;  %v2710_v36 = vrot.slane %v2693_v30, %v3870_v14 }
 0x406   : > { %2647 = vst [vmem:[#allocation2 + $0x120] sm:$0xf] %v2643_v10  ;;  %2648 = vst [vmem:[#allocation2 + $0x128] sm:$0xf] %v2644_v43  ;;  %v1777_v55 = vsel %vm303_vm2, %v1774_v27, %v1776_v1  ;;  %v1780_v50 = vsel %vm303_vm2, %v1776_v1, %v4627_v18  ;;  %v2024_v47 = vrot.slane %v4696_v37, %v3849_v7 }
 0x407   : > { %v1803_v19 = vmul.f32 %v1786_v39, %v1780_v50  ;;  %v1806_v8 = vmul.f32 %v1798_v2, %v1777_v55  ;;  %v2645_v42 = vmul.f32 %v2634_v48, %v1777_v55  ;;  %v2646_v13 = vmul.f32 %v2638_v4, %v1780_v50  ;;  %v2795_v60 = vld [vmem:[#allocation5 + $0x47] ss:$8 sm:$0xf]  ;;  %v4716_v57 = vld [vmem:[#allocation5 + $0x61] ss:$8 sm:$0xf]  ;;  %vm4970_vm1 = vmmov %vm4969_vm0 }
 0x408   : > { %v2028_v61 = vrot.slane %v4696_v37, %v3872_v15  ;;  %v2800_v51 = vrot.slane %v2795_v60, %v3847_v6  ;;  %v2804_v54 = vrot.slane %v2795_v60, %v3849_v7  ;;  %v2020_v39 = vrot.slane %v4696_v37, %v3847_v6  ;;  %v4714_v25 = vld [vmem:[#allocation5 + $0x7] ss:$8 sm:$0xf]  ;;  %vm4971_vm2 = vmmov %vm4969_vm0 }
 0x409   : > { %1807 = vst [vmem:[#allocation2] sm:$0xf] %v1803_v19  ;;  %1810 = vst [vmem:[#allocation2 + $0x18] sm:$0xf] %v1806_v8  ;;  %v4686_v29 = vpop.permute.xlu0 %2003  ;;  %v1868_v26 = vpop.permute.xlu1 %1867  ;;  %v2032_v2 = vrot.slane %v4696_v37, %v3870_v14  ;;  %v2812_v62 = vrot.slane %v2795_v60, %v3870_v14  ;;  %v2120_v32 = vrot.slane %v4714_v25, %v3849_v7 }
 0x40a   : > { %2649 = vst [vmem:[#allocation2 + $0x130] sm:$0xf] %v2645_v42  ;;  %2650 = vst [vmem:[#allocation2 + $0x138] sm:$0xf] %v2646_v13  ;;  %v1874_v18 = vsel %vm402_vm3, %v1868_v26, %v1870_v11  ;;  %v1875_v0 = vsel %vm402_vm3, %v1866_v52, %v1868_v26  ;;  %v2124_v5 = vrot.slane %v4714_v25, %v3872_v15 }
 0x40b   : > { %v1900_v38 = vmul.f32 %v1886_v34, %v1875_v0  ;;  %v1901_v22 = vmul.f32 %v1890_v31, %v1874_v18  ;;  %v2715_v40 = vmul.f32 %v2698_v17, %v1875_v0  ;;  %v2716_v41 = vmul.f32 %v2702_v28, %v1874_v18 }
 0x40c   : > { %v2872_v10 = vrot.slane %v4716_v57, %v3847_v6  ;;  %v2876_v43 = vrot.slane %v4716_v57, %v3849_v7  ;;  %v2941_v50 = vld [vmem:[#allocation2 + $0x8] sm:$0xff]  ;;  %v2116_v42 = vrot.slane %v4714_v25, %v3847_v6  ;;  %v2942_v18 = vld [vmem:[#allocation2 + $0x10] sm:$0xff]  ;;  %v2880_v37 = vrot.slane %v4716_v57, %v3872_v15 }
 0x40d   : > { %1904 = vst [vmem:[#allocation2 + $0x28] sm:$0xf] %v1900_v38  ;;  %1905 = vst [vmem:[#allocation2 + $0x30] sm:$0xf] %v1901_v22  ;;  %v2008_v23 = vpop.permute.xlu0 %2007  ;;  %v1872_v24 = vpop.permute.xlu1 %1871  ;;  %v2884_v38 = vrot.slane %v4716_v57, %v3870_v14 }
 0x40e   : > { %2719 = vst [vmem:[#allocation2 + $0x140] sm:$0xf] %v2715_v40  ;;  %2720 = vst [vmem:[#allocation2 + $0x148] sm:$0xf] %v2716_v41  ;;  %v1873_v27 = vsel %vm402_vm3, %v1870_v11, %v1872_v24  ;;  %v1876_v49 = vsel %vm402_vm3, %v1872_v24, %v1866_v52  ;;  %v2808_v52 = vrot.slane %v2795_v60, %v3872_v15 }
 0x40f   : > { %v1899_v9 = vmul.f32 %v1882_v46, %v1876_v49  ;;  %v1902_v33 = vmul.f32 %v1894_v3, %v1873_v27  ;;  %v2717_v44 = vmul.f32 %v2706_v35, %v1873_v27  ;;  %v2718_v45 = vmul.f32 %v2710_v36, %v1876_v49  ;;  %v4746_v22 = vld [vmem:[#allocation5 + $0x4] ss:$8 sm:$0xf]  ;;  %vm4972_vm3 = vmmov %vm4969_vm0 }
 0x410   : > { %v2943_v27 = vld [vmem:[#allocation2 + $0x18] sm:$0xff] }
 0x411   : > { %1903 = vst [vmem:[#allocation2 + $0x20] sm:$0xf] %v1899_v9  ;;  %1906 = vst [vmem:[#allocation2 + $0x38] sm:$0xf] %v1902_v33  ;;  %v4708_v12 = vpop.permute.xlu0 %2099  ;;  %v2006_v56 = vpop.permute.xlu1 %2005 }
 0x412   : > { %2721 = vst [vmem:[#allocation2 + $0x150] sm:$0xf] %v2717_v44  ;;  %2722 = vst [vmem:[#allocation2 + $0x158] sm:$0xf] %v2718_v45  ;;  %v2012_v58 = vsel %vm546_vm4, %v2006_v56, %v2008_v23  ;;  %v2013_v59 = vsel %vm546_vm4, %v4686_v29, %v2006_v56 }
 0x413   : > { %v2038_v63 = vmul.f32 %v2024_v47, %v2013_v59  ;;  %v2039_v21 = vmul.f32 %v2028_v61, %v2012_v58  ;;  %v2817_v48 = vmul.f32 %v2800_v51, %v2013_v59  ;;  %v2818_v4 = vmul.f32 %v2804_v54, %v2012_v58  ;;  %v2940_v61 = vld [vmem:[#allocation2] sm:$0xff] }
 0x414   : > { %v2945_v16 = vld [vmem:[#allocation2 + $0x28] sm:$0xff]  ;;  %v2946_v17 = vld [vmem:[#allocation2 + $0x30] sm:$0xff] }
 0x415   : > { %v2046_v30 = vrot.slane %v2038_v63, 4  ;;  %v2047_v11 = vrot.slane %v2039_v21, 4  ;;  %v2825_v1 = vrot.slane %v2817_v48, 4  ;;  %v2826_v34 = vrot.slane %v2818_v4, 4  ;;  %v2104_v31 = vpop.permute.xlu0 %2103  ;;  %v2010_v55 = vpop.permute.xlu1 %2009 }
 0x416   : > { %v2011_v28 = vsel %vm546_vm4, %v2008_v23, %v2010_v55  ;;  %v2014_v19 = vsel %vm546_vm4, %v2010_v55, %v4686_v29  ;;  %v3328_v8 = vpack.c.bf16 %v2945_v16, %v2941_v50  ;;  %v3360_v36 = vpack.c.bf16 %v2946_v17, %v2942_v18  ;;  %v2837_v18 = vld [vmem:[#allocation5 + $0x60] ss:$8 sm:$0xf] }
 0x417   : > { %2054 = vst [vmem:[#allocation2 + $0x48] sm:$0xf0] %v2046_v30  ;;  %2055 = vst [vmem:[#allocation2 + $0x50] sm:$0xf0] %v2047_v11  ;;  %v2037_v13 = vmul.f32 %v2020_v39, %v2014_v19  ;;  %v2040_v26 = vmul.f32 %v2032_v2, %v2011_v28  ;;  %v2819_v46 = vmul.f32 %v2808_v52, %v2011_v28  ;;  %vm4973_vm4 = vcmp.lt.s32.totalorder %v3881_v20, 8 }
 0x418   : > { %2833 = vst [vmem:[#allocation2 + $0x160] sm:$0xf0] %v2825_v1  ;;  %2834 = vst [vmem:[#allocation2 + $0x168] sm:$0xf0] %v2826_v34  ;;  %v2820_v3 = vmul.f32 %v2812_v62, %v2014_v19  ;;  %3329 = vmatprep.subr.bf16.mxu0 %v3328_v8  ;;  %v2944_v0 = vld [vmem:[#allocation2 + $0x20] sm:$0xff]  ;;  %v2947_v35 = vld [vmem:[#allocation2 + $0x38] sm:$0xff]  ;;  %v2128_v29 = vrot.slane %v4714_v25, %v3870_v14  ;;  %v1982_v2 = vrot.slane %v4746_v22, %v3849_v7 }
 0x419   : > { %v2045_v40 = vrot.slane %v2037_v13, 4  ;;  %v2048_v41 = vrot.slane %v2040_v26, 4  ;;  %v2827_v60 = vrot.slane %v2819_v46, 4  ;;  %v4748_v24 = vpop.permute.xlu0 %1961  ;;  %v2102_v47 = vpop.permute.xlu1 %2101  ;;  %v3330_v54 = vpack.c.bf16 %v2944_v0, %v2940_v61  ;;  %v2765_v39 = vld [vmem:[#allocation5 + $0x46] ss:$8 sm:$0xf] }
 0x41a   : > { %v2828_v23 = vrot.slane %v2820_v3, 4  ;;  %v2108_v49 = vsel %vm646_vm5, %v2102_v47, %v2104_v31  ;;  %v2109_v51 = vsel %vm646_vm5, %v4708_v12, %v2102_v47  ;;  %v3358_v9 = vpack.c.bf16 %v2947_v35, %v2943_v27 }
 0x41b   : > { %2053 = vst [vmem:[#allocation2 + $0x40] sm:$0xf0] %v2045_v40  ;;  %2056 = vst [vmem:[#allocation2 + $0x58] sm:$0xf0] %v2048_v41  ;;  %v2134_v33 = vmul.f32 %v2120_v32, %v2109_v51  ;;  %v2135_v44 = vmul.f32 %v2124_v5, %v2108_v49  ;;  %v2889_v45 = vmul.f32 %v2872_v10, %v2109_v51  ;;  %3331 = vmatpush1.bf16.msra.mxu0 %v3330_v54 }
 0x41c   : > { %2835 = vst [vmem:[#allocation2 + $0x170] sm:$0xf0] %v2827_v60  ;;  %2836 = vst [vmem:[#allocation2 + $0x178] sm:$0xf0] %v2828_v23  ;;  %v2890_v56 = vmul.f32 %v2876_v43, %v2108_v49  ;;  %3359 = vmatprep.subr.bf16.mxu1 %v3358_v9  ;;  %v1986_v25 = vrot.slane %v4746_v22, %v3872_v15  ;;  %v2770_v4 = vrot.slane %v2765_v39, %v3847_v6 }
 0x41d   : > { %v2142_v57 = vrot.slane %v2134_v33, 4  ;;  %v2143_v58 = vrot.slane %v2135_v44, 4  ;;  %v2897_v59 = vrot.slane %v2889_v45, 4  ;;  %3361 = vmatpush1.bf16.msra.mxu1 %v3360_v36  ;;  %v1966_v62 = vpop.permute.xlu0 %1965  ;;  %v2106_v63 = vpop.permute.xlu1 %2105  ;;  %v2774_v16 = vrot.slane %v2765_v39, %v3849_v7 }
 0x41e   : > { %v2898_v52 = vrot.slane %v2890_v56, 4  ;;  %v2107_v21 = vsel %vm646_vm5, %v2104_v31, %v2106_v63  ;;  %v2110_v48 = vsel %vm646_vm5, %v2106_v63, %v4708_v12  ;;  %v1978_v30 = vrot.slane %v4746_v22, %v3847_v6  ;;  %vm4974_vm5 = vmmov %vm4973_vm4 }
 0x41f   : > { %2150 = vst [vmem:[#allocation2 + $0x68] sm:$0xf0] %v2142_v57  ;;  %2151 = vst [vmem:[#allocation2 + $0x70] sm:$0xf0] %v2143_v58  ;;  %v2133_v32 = vmul.f32 %v2116_v42, %v2110_v48  ;;  %v2136_v5 = vmul.f32 %v2128_v29, %v2107_v21  ;;  %v2891_v10 = vmul.f32 %v2880_v37, %v2107_v21 }
 0x420   : > { %2905 = vst [vmem:[#allocation2 + $0x180] sm:$0xf0] %v2897_v59  ;;  %2906 = vst [vmem:[#allocation2 + $0x188] sm:$0xf0] %v2898_v52  ;;  %v2892_v43 = vmul.f32 %v2884_v38, %v2110_v48  ;;  %v1990_v11 = vrot.slane %v4746_v22, %v3870_v14  ;;  %v2778_v19 = vrot.slane %v2765_v39, %v3872_v15 }
 0x421   : > { %v2141_v1 = vrot.slane %v2133_v32, 4  ;;  %v2144_v12 = vrot.slane %v2136_v5, 4  ;;  %v2899_v34 = vrot.slane %v2891_v10, 4  ;;  %v2058_v55 = vpop.permute.xlu0 %2057  ;;  %v1964_v50 = vpop.permute.xlu1 %1963  ;;  %v2782_v8 = vrot.slane %v2765_v39, %v3870_v14  ;;  %v2069_v42 = vld [vmem:[#allocation5 + $0x6] ss:$8 sm:$0xf] }
 0x422   : > { %v2900_v31 = vrot.slane %v2892_v43, 4  ;;  %v1970_v17 = vsel %vm502_vm6, %v1964_v50, %v1966_v62  ;;  %v1971_v28 = vsel %vm502_vm6, %v4748_v24, %v1964_v50  ;;  %v2078_v36 = vrot.slane %v2069_v42, %v3849_v7 }
 0x423   : > { %2149 = vst [vmem:[#allocation2 + $0x60] sm:$0xf0] %v2141_v1  ;;  %2152 = vst [vmem:[#allocation2 + $0x78] sm:$0xf0] %v2144_v12  ;;  %v1996_v13 = vmul.f32 %v1982_v2, %v1971_v28  ;;  %v1997_v26 = vmul.f32 %v1986_v25, %v1970_v17  ;;  %v2787_v46 = vmul.f32 %v2770_v4, %v1971_v28 }
 0x424   : > { %2907 = vst [vmem:[#allocation2 + $0x190] sm:$0xf0] %v2899_v34  ;;  %2908 = vst [vmem:[#allocation2 + $0x198] sm:$0xf0] %v2900_v31  ;;  %v2788_v3 = vmul.f32 %v2774_v16, %v1970_v17  ;;  %v2082_v29 = vrot.slane %v2069_v42, %v3872_v15  ;;  %v2842_v22 = vrot.slane %v2837_v18, %v3847_v6 }
 0x425   : > { %2000 = vst [vmem:[#allocation2 + $0x48] sm:$0xf] %v1996_v13  ;;  %2001 = vst [vmem:[#allocation2 + $0x50] sm:$0xf] %v1997_v26  ;;  %v2062_v0 = vpop.permute.xlu0 %2061  ;;  %v1968_v35 = vpop.permute.xlu1 %1967  ;;  %v2846_v40 = vrot.slane %v2837_v18, %v3849_v7  ;;  %v2074_v49 = vrot.slane %v2069_v42, %v3847_v6  ;;  %v2086_v51 = vrot.slane %v2069_v42, %v3870_v14 }
 0x426   : > { %2791 = vst [vmem:[#allocation2 + $0x160] sm:$0xf] %v2787_v46  ;;  %2792 = vst [vmem:[#allocation2 + $0x168] sm:$0xf] %v2788_v3  ;;  %v1969_v37 = vsel %vm502_vm6, %v1966_v62, %v1968_v35  ;;  %v1972_v38 = vsel %vm502_vm6, %v1968_v35, %v4748_v24  ;;  %v2850_v9 = vrot.slane %v2837_v18, %v3872_v15 }
 0x427   : > { %v1995_v41 = vmul.f32 %v1978_v30, %v1972_v38  ;;  %v1998_v60 = vmul.f32 %v1990_v11, %v1969_v37  ;;  %v2789_v23 = vmul.f32 %v2778_v19, %v1969_v37  ;;  %v2790_v47 = vmul.f32 %v2782_v8, %v1972_v38  ;;  %v2207_v2 = vld [vmem:[#allocation5 + $0x21] ss:$8 sm:$0xf]  ;;  %v2303_v31 = vld [vmem:[#allocation5 + $0x23] ss:$8 sm:$0xf]  ;;  %vm4975_vm6 = vmmov %vm4973_vm4 }
 0x428   : > { %v2854_v33 = vrot.slane %v2837_v18, %v3870_v14  ;;  %v2216_v52 = vrot.slane %v2207_v2, %v3849_v7  ;;  %v2220_v62 = vrot.slane %v2207_v2, %v3872_v15  ;;  %v2212_v11 = vrot.slane %v2207_v2, %v3847_v6 }
 0x429   : > { %1999 = vst [vmem:[#allocation2 + $0x40] sm:$0xf] %v1995_v41  ;;  %2002 = vst [vmem:[#allocation2 + $0x58] sm:$0xf] %v1998_v60  ;;  %v2196_v61 = vpop.permute.xlu0 %2195  ;;  %v2060_v27 = vpop.permute.xlu1 %2059  ;;  %v2224_v1 = vrot.slane %v2207_v2, %v3870_v14  ;;  %v2312_v46 = vrot.slane %v2303_v31, %v3849_v7  ;;  %v2316_v3 = vrot.slane %v2303_v31, %v3872_v15 }
 0x42a   : > { %2793 = vst [vmem:[#allocation2 + $0x170] sm:$0xf] %v2789_v23  ;;  %2794 = vst [vmem:[#allocation2 + $0x178] sm:$0xf] %v2790_v47  ;;  %v2066_v24 = vsel %vm602_vm7, %v2060_v27, %v2062_v0  ;;  %v2067_v54 = vsel %vm602_vm7, %v2058_v55, %v2060_v27 }
 0x42b   : > { %v2092_v44 = vmul.f32 %v2078_v36, %v2067_v54  ;;  %v2093_v45 = vmul.f32 %v2082_v29, %v2066_v24  ;;  %v2859_v56 = vmul.f32 %v2842_v22, %v2067_v54  ;;  %v2860_v39 = vmul.f32 %v2846_v40, %v2066_v24 }
 0x42c   : > { %v2949_v12 = vld [vmem:[#allocation2 + $0x48] sm:$0xff]  ;;  %v2950_v23 = vld [vmem:[#allocation2 + $0x50] sm:$0xff]  ;;  %v2320_v54 = vrot.slane %v2303_v31, %v3870_v14 }
 0x42d   : > { %2096 = vst [vmem:[#allocation2 + $0x68] sm:$0xf] %v2092_v44  ;;  %2097 = vst [vmem:[#allocation2 + $0x70] sm:$0xf] %v2093_v45  ;;  %v2200_v25 = vpop.permute.xlu0 %2199  ;;  %v2064_v57 = vpop.permute.xlu1 %2063 }
 0x42e   : > { %2863 = vst [vmem:[#allocation2 + $0x180] sm:$0xf] %v2859_v56  ;;  %2864 = vst [vmem:[#allocation2 + $0x188] sm:$0xf] %v2860_v39  ;;  %v2065_v58 = vsel %vm602_vm7, %v2062_v0, %v2064_v57  ;;  %v2068_v59 = vsel %vm602_vm7, %v2064_v57, %v2058_v55 }
 0x42f   : > { %v2091_v63 = vmul.f32 %v2074_v49, %v2068_v59  ;;  %v2094_v21 = vmul.f32 %v2086_v51, %v2065_v58  ;;  %v2861_v48 = vmul.f32 %v2850_v9, %v2065_v58  ;;  %v2862_v4 = vmul.f32 %v2854_v33, %v2068_v59  ;;  %v2165_v9 = vld [vmem:[#allocation5 + $0x20] ss:$8 sm:$0xf]  ;;  %v2909_v33 = vld [vmem:[#allocation5 + $0x62] ss:$8 sm:$0xf]  ;;  %vm4976_vm7 = vmmov %vm4973_vm4 }
 0x430   : > { %v2948_v18 = vld [vmem:[#allocation2 + $0x40] sm:$0xff]  ;;  %v2951_v36 = vld [vmem:[#allocation2 + $0x58] sm:$0xff]  ;;  %v2308_v49 = vrot.slane %v2303_v31, %v3847_v6  ;;  %v2174_v57 = vrot.slane %v2165_v9, %v3849_v7  ;;  %v2178_v58 = vrot.slane %v2165_v9, %v3872_v15 }
 0x431   : > { %2095 = vst [vmem:[#allocation2 + $0x60] sm:$0xf] %v2091_v63  ;;  %2098 = vst [vmem:[#allocation2 + $0x78] sm:$0xf] %v2094_v21  ;;  %v2292_v16 = vpop.permute.xlu0 %2291  ;;  %v2198_v32 = vpop.permute.xlu1 %2197  ;;  %v2918_v63 = vrot.slane %v2909_v33, %v3849_v7 }
 0x432   : > { %2865 = vst [vmem:[#allocation2 + $0x190] sm:$0xf] %v2861_v48  ;;  %2866 = vst [vmem:[#allocation2 + $0x198] sm:$0xf] %v2862_v4  ;;  %v2204_v5 = vsel %vm746_vm8, %v2198_v32, %v2200_v25  ;;  %v2205_v10 = vsel %vm746_vm8, %v2196_v61, %v2198_v32 }
 0x433   : > { %v2230_v43 = vmul.f32 %v2216_v52, %v2205_v10  ;;  %v2231_v30 = vmul.f32 %v2220_v62, %v2204_v5  ;;  %v2914_v62 = vrot.slane %v2909_v33, %v3847_v6  ;;  %v2170_v5 = vrot.slane %v2165_v9, %v3847_v6 }
 0x434   : > { %v2953_v34 = vld [vmem:[#allocation2 + $0x68] sm:$0xff]  ;;  %v2954_v0 = vld [vmem:[#allocation2 + $0x70] sm:$0xff] }
 0x435   : > { %v2238_v55 = vrot.slane %v2230_v43, 4  ;;  %v2239_v50 = vrot.slane %v2231_v30, 4  ;;  %v2296_v17 = vpop.permute.xlu0 %2295  ;;  %v2202_v28 = vpop.permute.xlu1 %2201  ;;  %v3332_v19 = vpack.c.bf16 %v2953_v34, %v2949_v12  ;;  %v3364_v27 = vpack.c.bf16 %v2954_v0, %v2950_v23 }
 0x436   : > { %v2203_v8 = vsel %vm746_vm8, %v2200_v25, %v2202_v28  ;;  %v2206_v42 = vsel %vm746_vm8, %v2202_v28, %v2196_v61  ;;  %v2922_v30 = vrot.slane %v2909_v33, %v3872_v15  ;;  %vm4977_vm8 = vcmp.lt.s32.totalorder %v3881_v20, 121 }
 0x437   : > { %2246 = vst [vmem:[#allocation2 + $0x88] sm:$0xf0] %v2238_v55  ;;  %2247 = vst [vmem:[#allocation2 + $0x90] sm:$0xf0] %v2239_v50  ;;  %v2229_v13 = vmul.f32 %v2212_v11, %v2206_v42  ;;  %v2232_v26 = vmul.f32 %v2224_v1, %v2203_v8  ;;  %3333 = vmatprep.subr.bf16.mxu0 %v3332_v19  ;;  %v2926_v11 = vrot.slane %v2909_v33, %v3870_v14 }
 0x438   : > { %v2952_v35 = vld [vmem:[#allocation2 + $0x60] sm:$0xff]  ;;  %v2955_v29 = vld [vmem:[#allocation2 + $0x78] sm:$0xff]  ;;  %vm4979_vm10 = vmmov %vm4977_vm8 }
 0x439   : > { %v2237_v37 = vrot.slane %v2229_v13, 4  ;;  %v2240_v38 = vrot.slane %v2232_v26, 4  ;;  %v2154_v22 = vpop.permute.xlu0 %2153  ;;  %v2294_v40 = vpop.permute.xlu1 %2293  ;;  %v3334_v41 = vpack.c.bf16 %v2952_v35, %v2948_v18  ;;  %v3362_v60 = vpack.c.bf16 %v2955_v29, %v2951_v36  ;;  %v2261_v55 = vld [vmem:[#allocation5 + $0x22] ss:$8 sm:$0xf]  ;;  %vm4980_vm11 = vmmov %vm4977_vm8 }
 0x43a   : > { %v2300_v47 = vsel %vm846_vm9, %v2294_v40, %v2296_v17  ;;  %v2301_v61 = vsel %vm846_vm9, %v2292_v16, %v2294_v40  ;;  %v2270_v8 = vrot.slane %v2261_v55, %v3849_v7  ;;  %v2274_v42 = vrot.slane %v2261_v55, %v3872_v15  ;;  %v2483_v40 = vld [vmem:[#allocation5 + $0x27] ss:$8 sm:$0xf] }
 0x43b   : > { %2245 = vst [vmem:[#allocation2 + $0x80] sm:$0xf0] %v2237_v37  ;;  %2248 = vst [vmem:[#allocation2 + $0x98] sm:$0xf0] %v2240_v38  ;;  %v2326_v51 = vmul.f32 %v2312_v46, %v2301_v61  ;;  %v2327_v24 = vmul.f32 %v2316_v3, %v2300_v47  ;;  %3335 = vmatpush1.bf16.msra.mxu0 %v3334_v41  ;;  %3363 = vmatprep.subr.bf16.mxu1 %v3362_v60 }
 0x43c   : > { %3365 = vmatpush1.bf16.msra.mxu1 %v3364_v27  ;;  %v2266_v38 = vrot.slane %v2261_v55, %v3847_v6 }
 0x43d   : > { %v2334_v44 = vrot.slane %v2326_v51, 4  ;;  %v2335_v45 = vrot.slane %v2327_v24, 4  ;;  %v2158_v56 = vpop.permute.xlu0 %2157  ;;  %v2298_v39 = vpop.permute.xlu1 %2297  ;;  %v2492_v51 = vrot.slane %v2483_v40, %v3849_v7 }
 0x43e   : > { %v2299_v2 = vsel %vm846_vm9, %v2296_v17, %v2298_v39  ;;  %v2302_v25 = vsel %vm846_vm9, %v2298_v39, %v2292_v16  ;;  %v2182_v16 = vrot.slane %v2165_v9, %v3870_v14  ;;  %vm4978_vm9 = vmmov %vm4977_vm8  ;;  %v2500_v39 = vrot.slane %v2483_v40, %v3870_v14 }
 0x43f   : > { %2342 = vst [vmem:[#allocation2 + $0xa8] sm:$0xf0] %v2334_v44  ;;  %2343 = vst [vmem:[#allocation2 + $0xb0] sm:$0xf0] %v2335_v45  ;;  %v2325_v59 = vmul.f32 %v2308_v49, %v2302_v25  ;;  %v2328_v52 = vmul.f32 %v2320_v54, %v2299_v2  ;;  %v2488_v49 = vrot.slane %v2483_v40, %v3847_v6 }
 0x441   : > { %v2333_v21 = vrot.slane %v2325_v59, 4  ;;  %v2336_v48 = vrot.slane %v2328_v52, 4  ;;  %v2250_v4 = vpop.permute.xlu0 %2249  ;;  %v2156_v32 = vpop.permute.xlu1 %2155 }
 0x442   : > { %v2162_v10 = vsel %vm4969_vm0, %v2156_v32, %v2158_v56  ;;  %v2163_v43 = vsel %vm4970_vm1, %v2154_v22, %v2156_v32  ;;  %vm4984_vm0 = vmmov %vm4981_vm12  ;;  %vm4985_vm1 = vcmp.lt.s32.totalorder %v3881_v20, 127 }
 0x443   : > { %2341 = vst [vmem:[#allocation2 + $0xa0] sm:$0xf0] %v2333_v21  ;;  %2344 = vst [vmem:[#allocation2 + $0xb8] sm:$0xf0] %v2336_v48  ;;  %v2188_v1 = vmul.f32 %v2174_v57, %v2163_v43  ;;  %v2189_v12 = vmul.f32 %v2178_v58, %v2162_v10  ;;  %v2931_v34 = vmul.f32 %v2914_v62, %v2163_v43 }
 0x444   : > { %v2932_v31 = vmul.f32 %v2918_v63, %v2162_v10  ;;  %v2357_v57 = vld [vmem:[#allocation5 + $0x24] ss:$8 sm:$0xf] }
 0x445   : > { %2192 = vst [vmem:[#allocation2 + $0x88] sm:$0xf] %v2188_v1  ;;  %2193 = vst [vmem:[#allocation2 + $0x90] sm:$0xf] %v2189_v12  ;;  %v2254_v50 = vpop.permute.xlu0 %2253  ;;  %v2160_v17 = vpop.permute.xlu1 %2159 }
 0x446   : > { %2935 = vst [vmem:[#allocation2 + $0x1a0] sm:$0xf] %v2931_v34  ;;  %2936 = vst [vmem:[#allocation2 + $0x1a8] sm:$0xf] %v2932_v31  ;;  %v2161_v28 = vsel %vm4971_vm2, %v2158_v56, %v2160_v17  ;;  %v2164_v19 = vsel %vm4972_vm3, %v2160_v17, %v2154_v22  ;;  %v2278_v22 = vrot.slane %v2261_v55, %v3870_v14 }
 0x447   : > { %v2187_v13 = vmul.f32 %v2170_v5, %v2164_v19  ;;  %v2190_v26 = vmul.f32 %v2182_v16, %v2161_v28  ;;  %v2933_v46 = vmul.f32 %v2922_v30, %v2161_v28  ;;  %v2934_v3 = vmul.f32 %v2926_v11, %v2164_v19  ;;  %vm4986_vm2 = vmmov %vm4985_vm1 }
 0x448   : > { %v2496_v56 = vrot.slane %v2483_v40, %v3872_v15  ;;  %v2366_v5 = vrot.slane %v2357_v57, %v3849_v7  ;;  %v2370_v16 = vrot.slane %v2357_v57, %v3872_v15  ;;  %vm4987_vm3 = vmmov %vm4985_vm1 }
 0x449   : > { %2191 = vst [vmem:[#allocation2 + $0x80] sm:$0xf] %v2187_v13  ;;  %2194 = vst [vmem:[#allocation2 + $0x98] sm:$0xf] %v2190_v26  ;;  %v2472_v18 = vpop.permute.xlu0 %2471  ;;  %v2252_v0 = vpop.permute.xlu1 %2251  ;;  %v2362_v13 = vrot.slane %v2357_v57, %v3847_v6 }
 0x44a   : > { %2937 = vst [vmem:[#allocation2 + $0x1b0] sm:$0xf] %v2933_v46  ;;  %2938 = vst [vmem:[#allocation2 + $0x1b8] sm:$0xf] %v2934_v3  ;;  %v2258_v35 = vsel %vm4973_vm4, %v2252_v0, %v2254_v50  ;;  %v2259_v36 = vsel %vm4974_vm5, %v2250_v4, %v2252_v0  ;;  %v2374_v3 = vrot.slane %v2357_v57, %v3870_v14  ;;  %vm4989_vm5 = vcmp.lt.s32.totalorder %v3881_v20, 119 }
 0x44b   : > { %v2284_v29 = vmul.f32 %v2270_v8, %v2259_v36  ;;  %v2285_v37 = vmul.f32 %v2274_v42, %v2258_v35  ;;  %vm4988_vm4 = vmmov %vm4985_vm1 }
 0x44c   : > { %v2957_v2 = vld [vmem:[#allocation2 + $0x88] sm:$0xff]  ;;  %v2958_v28 = vld [vmem:[#allocation2 + $0x90] sm:$0xff] }
 0x44d   : > { %2288 = vst [vmem:[#allocation2 + $0xa8] sm:$0xf] %v2284_v29  ;;  %2289 = vst [vmem:[#allocation2 + $0xb0] sm:$0xf] %v2285_v37  ;;  %v2476_v41 = vpop.permute.xlu0 %2475  ;;  %v2256_v60 = vpop.permute.xlu1 %2255 }
 0x44e   : > { %v2257_v23 = vsel %vm4975_vm6, %v2254_v50, %v2256_v60  ;;  %v2260_v47 = vsel %vm4976_vm7, %v2256_v60, %v2250_v4  ;;  %vm4990_vm6 = vmmov %vm4989_vm5 }
 0x44f   : > { %v2283_v61 = vmul.f32 %v2266_v38, %v2260_v47  ;;  %v2286_v27 = vmul.f32 %v2278_v22, %v2257_v23  ;;  %vm4991_vm7 = vmmov %vm4989_vm5 }
 0x450   : > { %v2956_v10 = vld [vmem:[#allocation2 + $0x80] sm:$0xff]  ;;  %v2959_v11 = vld [vmem:[#allocation2 + $0x98] sm:$0xff] }
 0x451   : > { %2287 = vst [vmem:[#allocation2 + $0xa0] sm:$0xf] %v2283_v61  ;;  %2290 = vst [vmem:[#allocation2 + $0xb8] sm:$0xf] %v2286_v27  ;;  %v2346_v24 = vpop.permute.xlu0 %2345  ;;  %v2474_v54 = vpop.permute.xlu1 %2473 }
 0x452   : > { %v2480_v9 = vsel %vm4977_vm8, %v2474_v54, %v2476_v41  ;;  %v2481_v33 = vsel %vm4978_vm9, %v2472_v18, %v2474_v54  ;;  %v2579_v54 = vld [vmem:[#allocation5 + $0x41] ss:$8 sm:$0xf]  ;;  %vm4992_vm8 = vmmov %vm4989_vm5  ;;  %vm4993_vm9 = vcmp.lt.s32.totalorder %v3881_v20, 120 }
 0x453   : > { %v2505_v44 = vmul.f32 %v2488_v49, %v2481_v33  ;;  %v2506_v45 = vmul.f32 %v2492_v51, %v2480_v9 }
 0x454   : > { %v2961_v25 = vld [vmem:[#allocation2 + $0xa8] sm:$0xff]  ;;  %v2962_v43 = vld [vmem:[#allocation2 + $0xb0] sm:$0xff] }
 0x455   : > { %v2513_v58 = vrot.slane %v2505_v44, 4  ;;  %v2514_v59 = vrot.slane %v2506_v45, 4  ;;  %v2350_v52 = vpop.permute.xlu0 %2349  ;;  %v2478_v62 = vpop.permute.xlu1 %2477  ;;  %v3336_v63 = vpack.c.bf16 %v2961_v25, %v2957_v2  ;;  %v3368_v42 = vpack.c.bf16 %v2962_v43, %v2958_v28  ;;  %v2537_v43 = vld [vmem:[#allocation5 + $0x40] ss:$8 sm:$0xf] }
 0x456   : > { %v2479_v21 = vsel %vm4979_vm10, %v2476_v41, %v2478_v62  ;;  %v2482_v48 = vsel %vm4980_vm11, %v2478_v62, %v2472_v18  ;;  %v2441_v18 = vld [vmem:[#allocation5 + $0x26] ss:$8 sm:$0xf]  ;;  %v2588_v2 = vrot.slane %v2579_v54, %v3849_v7  ;;  %v2546_v28 = vrot.slane %v2537_v43, %v3849_v7  ;;  %vm4994_vm10 = vmmov %vm4993_vm9 }
 0x457   : > { %2521 = vst [vmem:[#allocation2 + $0xe0] sm:$0xf0] %v2513_v58  ;;  %2522 = vst [vmem:[#allocation2 + $0xe8] sm:$0xf0] %v2514_v59  ;;  %v2507_v4 = vmul.f32 %v2496_v56, %v2479_v21  ;;  %v2508_v32 = vmul.f32 %v2500_v39, %v2482_v48  ;;  %3337 = vmatprep.subr.bf16.mxu0 %v3336_v63  ;;  %v2446_v22 = vrot.slane %v2441_v18, %v3847_v6 }
 0x458   : > { %v2960_v30 = vld [vmem:[#allocation2 + $0xa0] sm:$0xff]  ;;  %v2963_v1 = vld [vmem:[#allocation2 + $0xb8] sm:$0xff]  ;;  %v2450_v40 = vrot.slane %v2441_v18, %v3849_v7  ;;  %v2454_v49 = vrot.slane %v2441_v18, %v3872_v15  ;;  %v2458_v51 = vrot.slane %v2441_v18, %v3870_v14  ;;  %v2584_v39 = vrot.slane %v2579_v54, %v3847_v6  ;;  %vm4995_vm11 = vmmov %vm4993_vm9 }
 0x459   : > { %v2515_v12 = vrot.slane %v2507_v4, 4  ;;  %v2516_v34 = vrot.slane %v2508_v32, 4  ;;  %v2430_v31 = vpop.permute.xlu0 %2429  ;;  %v2348_v55 = vpop.permute.xlu1 %2347  ;;  %v3338_v50 = vpack.c.bf16 %v2960_v30, %v2956_v10  ;;  %v3366_v17 = vpack.c.bf16 %v2963_v1, %v2959_v11 }
 0x45a   : > { %v2354_v19 = vsel %vm4981_vm12, %v2348_v55, %v2350_v52  ;;  %v2355_v8 = vsel %vm4982_vm14, %v2346_v24, %v2348_v55  ;;  %v2592_v21 = vrot.slane %v2579_v54, %v3872_v15  ;;  %v2596_v48 = vrot.slane %v2579_v54, %v3870_v14  ;;  %vm4996_vm12 = vmmov %vm4993_vm9 }
 0x45b   : > { %2523 = vst [vmem:[#allocation2 + $0xf0] sm:$0xf0] %v2515_v12  ;;  %2524 = vst [vmem:[#allocation2 + $0xf8] sm:$0xf0] %v2516_v34  ;;  %v2380_v26 = vmul.f32 %v2366_v5, %v2355_v8  ;;  %v2381_v46 = vmul.f32 %v2370_v16, %v2354_v19  ;;  %3339 = vmatpush1.bf16.msra.mxu0 %v3338_v50  ;;  %3367 = vmatprep.subr.bf16.mxu1 %v3366_v17  ;;  %vm4997_vm14 = vcmask 883712  }
 0x45c   : > { %3369 = vmatpush1.bf16.msra.mxu1 %v3368_v42  ;;  %v2542_v17 = vrot.slane %v2537_v43, %v3847_v6 }
 0x45d   : > { %2384 = vst [vmem:[#allocation2 + $0xc8] sm:$0xf] %v2380_v26  ;;  %2385 = vst [vmem:[#allocation2 + $0xd0] sm:$0xf] %v2381_v46  ;;  %v2434_v0 = vpop.permute.xlu0 %2433  ;;  %v2352_v35 = vpop.permute.xlu1 %2351 }
 0x45e   : > { %v2353_v36 = vsel %vm4983_vm15, %v2350_v52, %v2352_v35  ;;  %v2356_v29 = vsel %vm4984_vm0, %v2352_v35, %v2346_v24  ;;  %vm4998_vm15 = vmmov %vm4997_vm14 }
 0x45f   : > { %v2379_v37 = vmul.f32 %v2362_v13, %v2356_v29  ;;  %v2382_v38 = vmul.f32 %v2374_v3, %v2353_v36  ;;  %v2550_v29 = vrot.slane %v2537_v43, %v3872_v15  ;;  %v2985_v15 = vld [vmem:[#allocation2 + $0x168] sm:$0xff] }
 0x461   : > { %2383 = vst [vmem:[#allocation2 + $0xc0] sm:$0xf] %v2379_v37  ;;  %2386 = vst [vmem:[#allocation2 + $0xd8] sm:$0xf] %v2382_v38  ;;  %v2568_v41 = vpop.permute.xlu0 %2567  ;;  %v2432_v60 = vpop.permute.xlu1 %2431  ;;  %v2554_v37 = vrot.slane %v2537_v43, %v3870_v14 }
 0x462   : > { %v2438_v23 = vsel %vm4985_vm1, %v2432_v60, %v2434_v0  ;;  %v2439_v47 = vsel %vm4986_vm2, %v2430_v31, %v2432_v60 }
 0x463   : > { %v2463_v61 = vmul.f32 %v2446_v22, %v2439_v47  ;;  %v2464_v27 = vmul.f32 %v2450_v40, %v2438_v23  ;;  %v2977_v23 = vld [vmem:[#allocation2 + $0x128] sm:$0xff]  ;;  %v2976_v47 = vld [vmem:[#allocation2 + $0x120] sm:$0xff] }
 0x464   : > { %v2965_v59 = vld [vmem:[#allocation2 + $0xc8] sm:$0xff] }
 0x465   : > { %2467 = vst [vmem:[#allocation2 + $0xe0] sm:$0xf] %v2463_v61  ;;  %2468 = vst [vmem:[#allocation2 + $0xe8] sm:$0xf] %v2464_v27  ;;  %v2436_v24 = vpop.permute.xlu1 %2435  ;;  %v2572_v9 = vpop.permute.xlu0 %2571 }
 0x466   : > { %v2437_v33 = vsel %vm4987_vm3, %v2434_v0, %v2436_v24  ;;  %v2440_v44 = vsel %vm4988_vm4, %v2436_v24, %v2430_v31  ;;  %v2966_v31 = vld [vmem:[#allocation2 + $0xd0] sm:$0xff]  ;;  %v2979_v24 = vld [vmem:[#allocation2 + $0x138] sm:$0xff] }
 0x467   : > { %v2465_v45 = vmul.f32 %v2454_v49, %v2437_v33  ;;  %v2466_v56 = vmul.f32 %v2458_v51, %v2440_v44  ;;  %v2981_v51 = vld [vmem:[#allocation2 + $0x148] sm:$0xff]  ;;  %v2978_v33 = vld [vmem:[#allocation2 + $0x130] sm:$0xff]  ;;  %v2987_v44 = vld [vmem:[#allocation2 + $0x178] sm:$0xff] }
 0x468   : > { %v2964_v32 = vld [vmem:[#allocation2 + $0xc0] sm:$0xff]  ;;  %v2967_v19 = vld [vmem:[#allocation2 + $0xd8] sm:$0xff]  ;;  %v3348_v54 = vpack.c.bf16 %v2985_v15, %v2981_v51 }
 0x469   : > { %2469 = vst [vmem:[#allocation2 + $0xf0] sm:$0xf] %v2465_v45  ;;  %2470 = vst [vmem:[#allocation2 + $0xf8] sm:$0xf] %v2466_v56  ;;  %v2526_v52 = vpop.permute.xlu0 %2525  ;;  %v2993_v56 = vld [vmem:[#allocation2 + $0x1a8] sm:$0xf] }
 0x46a   : > { %v2570_v25 = vpop.permute.xlu1 %2569 }
 0x46b   : > { %v2576_v57 = vsel %vm4989_vm5, %v2570_v25, %v2572_v9  ;;  %v2577_v58 = vsel %vm4990_vm6, %v2568_v41, %v2570_v25 }
 0x46c   : > { %v2601_v62 = vmul.f32 %v2584_v39, %v2577_v58  ;;  %v2602_v63 = vmul.f32 %v2588_v2, %v2576_v57  ;;  %v2969_v4 = vld [vmem:[#allocation2 + $0xe8] sm:$0xff]  ;;  %v2968_v5 = vld [vmem:[#allocation2 + $0xe0] sm:$0xff] }
 0x46d   : > { %v3340_v16 = vpack.c.bf16 %v2969_v4, %v2965_v59  ;;  %v3342_v10 = vpack.c.bf16 %v2968_v5, %v2964_v32  ;;  %v2530_v46 = vpop.permute.xlu0 %2529  ;;  %v2980_v2 = vld [vmem:[#allocation2 + $0x140] sm:$0xff]  ;;  %v2989_v58 = vld [vmem:[#allocation2 + $0x188] sm:$0xff]  ;;  %v2983_v59 = vld [vmem:[#allocation2 + $0x158] sm:$0xff] }
 0x46e   : > { %v2609_v30 = vrot.slane %v2601_v62, 4  ;;  %v2610_v11 = vrot.slane %v2602_v63, 4  ;;  %v2574_v1 = vpop.permute.xlu1 %2573  ;;  %v3378_v62 = vpack.c.bf16 %v2987_v44, %v2983_v59  ;;  %v2992_v63 = vld [vmem:[#allocation2 + $0x1a0] sm:$0xf]  ;;  %v2982_v32 = vld [vmem:[#allocation2 + $0x150] sm:$0xff] }
 0x46f   : > { %v2575_v12 = vsel %vm4991_vm7, %v2572_v9, %v2574_v1  ;;  %v2578_v34 = vsel %vm4992_vm8, %v2574_v1, %v2568_v41  ;;  %3341 = vmatprep.subr.bf16.mxu0 %v3340_v16  ;;  %v2984_v9 = vld [vmem:[#allocation2 + $0x160] sm:$0xff]  ;;  %v2990_v1 = vld [vmem:[#allocation2 + $0x190] sm:$0xff] }
 0x470   : > { %2617 = vst [vmem:[#allocation2 + $0x100] sm:$0xf0] %v2609_v30  ;;  %2618 = vst [vmem:[#allocation2 + $0x108] sm:$0xf0] %v2610_v11  ;;  %v2603_v55 = vmul.f32 %v2592_v21, %v2575_v12  ;;  %v2604_v50 = vmul.f32 %v2596_v48, %v2578_v34  ;;  %3343 = vmatpush1.bf16.msra.mxu0 %v3342_v10  ;;  %v2971_v8 = vld [vmem:[#allocation2 + $0xf8] sm:$0xff]  ;;  %v2970_v42 = vld [vmem:[#allocation2 + $0xf0] sm:$0xff]  ;;  %v3350_v57 = vpack.c.bf16 %v2984_v9, %v2980_v2 }
 0x471   : > { %v3370_v13 = vpack.c.bf16 %v2971_v8, %v2967_v19  ;;  %v3372_v26 = vpack.c.bf16 %v2970_v42, %v2966_v31  ;;  %v2986_v21 = vld [vmem:[#allocation2 + $0x170] sm:$0xff]  ;;  %v2995_v48 = vld [vmem:[#allocation2 + $0x1b8] sm:$0xf]  ;;  %v2988_v4 = vld [vmem:[#allocation2 + $0x180] sm:$0xff] }
 0x472   : > { %v2611_v3 = vrot.slane %v2603_v55, 4  ;;  %v2612_v18 = vrot.slane %v2604_v50, 4  ;;  %v2528_v0 = vpop.permute.xlu1 %2527  ;;  %v3355_v5 = vpack.c.bf16 %v2992_v63, %v2988_v4  ;;  %v3380_v16 = vpack.c.bf16 %v2986_v21, %v2982_v32  ;;  %v2991_v10 = vld [vmem:[#allocation2 + $0x198] sm:$0xff]  ;;  %v2994_v30 = vld [vmem:[#allocation2 + $0x1b0] sm:$0xf] }
 0x473   : > { %v2534_v35 = vsel %vm4993_vm9, %v2528_v0, %v2530_v46  ;;  %v2535_v36 = vsel %vm4994_vm10, %v2526_v52, %v2528_v0  ;;  %3371 = vmatprep.subr.bf16.mxu1 %v3370_v13  ;;  %v3382_v43 = vpack.c.bf16 %v2995_v48, %v2991_v10  ;;  %v2939_v11 = vld [vmem:[%s4945_s4] sm:$0x3f]  ;;  %v3385_v12 = vpack.c.bf16 %v2994_v30, %v2990_v1 }
 0x474   : > { %2619 = vst [vmem:[#allocation2 + $0x110] sm:$0xf0] %v2611_v3  ;;  %2620 = vst [vmem:[#allocation2 + $0x118] sm:$0xf0] %v2612_v18  ;;  %v2559_v6 = vmul.f32 %v2542_v17, %v2535_v36  ;;  %v2560_v7 = vmul.f32 %v2546_v28, %v2534_v35  ;;  %3373 = vmatpush1.bf16.msra.mxu1 %v3372_v26 }
 0x476   : > { %2563 = vst [vmem:[#allocation2 + $0x100] sm:$0xf] %v2559_v6  ;;  %2564 = vst [vmem:[#allocation2 + $0x108] sm:$0xf] %v2560_v7  ;;  %v2532_v38 = vpop.permute.xlu1 %2531 }
 0x477   : > { %v2533_v22 = vsel %vm4995_vm11, %v2530_v46, %v2532_v38  ;;  %v2536_v40 = vsel %vm4996_vm12, %v2532_v38, %v2526_v52  ;;  %v3352_v52 = vpack.c.bf16 %v2993_v56, %v2989_v58 }
 0x478   : > { %v2561_v41 = vmul.f32 %v2550_v29, %v2533_v22  ;;  %v2562_v60 = vmul.f32 %v2554_v37, %v2536_v40 }
 0x47a   : > { %2565 = vst [vmem:[#allocation2 + $0x110] sm:$0xf] %v2561_v41  ;;  %2566 = vst [vmem:[#allocation2 + $0x118] sm:$0xf] %v2562_v60 }
 0x47d   : > { %v2973_v61 = vld [vmem:[#allocation2 + $0x108] sm:$0xff]  ;;  %v2972_v27 = vld [vmem:[#allocation2 + $0x100] sm:$0xff] }
 0x47e   : > { %v3344_v49 = vpack.c.bf16 %v2977_v23, %v2973_v61  ;;  %v3346_v14 = vpack.c.bf16 %v2976_v47, %v2972_v27  ;;  %v3000_v34 = vpop.permute.xlu0 %2999 }
 0x480   : > { %3345 = vmatprep.subr.bf16.mxu0 %v3344_v49 }
 0x481   : > { %3347 = vmatpush1.bf16.msra.mxu0 %v3346_v14  ;;  %v2975_v20 = vld [vmem:[#allocation2 + $0x118] sm:$0xff]  ;;  %v2974_v45 = vld [vmem:[#allocation2 + $0x110] sm:$0xff] }
 0x482   : > { %3349 = vmatprep.subr.bf16.mxu0 %v3348_v54  ;;  %v3374_v39 = vpack.c.bf16 %v2979_v24, %v2975_v20  ;;  %v3376_v25 = vpack.c.bf16 %v2978_v33, %v2974_v45 }
 0x484   : > { %3375 = vmatprep.subr.bf16.mxu1 %v3374_v39 }
 0x485   : > { %3351 = vmatpush1.bf16.msra.mxu0 %v3350_v57  ;;  %3377 = vmatpush1.bf16.msra.mxu1 %v3376_v25 }
 0x486   : > { %3354 = vmatprep.subr.msk.bf16.mxu0 %vm4420_vm13, %v3352_v52  ;;  %3379 = vmatprep.subr.bf16.mxu1 %v3378_v62 }
 0x489   : > { %3357 = vmatpush1.bf16.msk.msra.mxu0 %vm4420_vm13, %v3355_v5  ;;  %3381 = vmatpush1.bf16.msra.mxu1 %v3380_v16 }
 0x48a   : > { %3384 = vmatprep.subr.msk.bf16.mxu1 %vm4420_vm13, %v3382_v43 }
 0x48c   : > { %3260 = vmatmul.mubr.msk.f32.vlgmr.msra.gmra.mrb[2].mxu0 %vm4997_vm14, %v2939_v11 }
 0x48d   : > { %3387 = vmatpush1.bf16.msk.msra.mxu1 %vm4420_vm13, %v3385_v12 }
 0x490   : > { %3263 = vmatmul.mubr.msk.f32.vlgmr.msra.gmra.mrb[2].mxu1 %vm4998_vm15, %v2939_v11 }
 0x55f   : > { %v3083_v31 = vpop.f32.mrb[2].mxu0 }
 0x560   : > { %v3084_v55 = vadd.f32 %v3083_v31, %v3000_v34  ;;  %v3085_v50 = vpop.f32.mrb[3].mxu0 }
 0x561   : > { %v3086_v17 = vadd.f32 %v3085_v50, %v3000_v34 }
 0x562   : > { %3159 = vst [vmem:[%s284_s17] sm:$0x3f] %v3084_v55 }
 0x563   : > { %3160 = vst [vmem:[%s284_s17 + $0x8] sm:$0x3f] %v3086_v17  ;;  %v3154_v28 = vpop.f32.mrb[2].mxu1 }
 0x564   : > { %v3155_v19 = vadd.f32 %v3154_v28, %v3000_v34  ;;  %v3156_v53 = vpop.f32.mrb[3].mxu1 }
 0x565   : > { %v3157_v8 = vadd.f32 %v3156_v53, %v3000_v34 }
 0x566   : > { %3161 = vst [vmem:[%s284_s17 + $0x10] sm:$0x3f] %v3155_v19 }
 0x567   : > { %3162 = vst [vmem:[%s284_s17 + $0x18] sm:$0x3f] %v3157_v8 }
 0x568 PF: > { %p17_p8 = scmp.ge.s32.totalorder %s3666_s7, 4   ;;  %s4999_s21 = smov %s3553_s22 }
 0x569   : > { %s5000_s22 = smov %s3557_s23  ;;  %s5001_s23 = smov %s3692_s28 }
 0x56a   : > { %s5002_s24 = smov %s3666_s7  ;;  %19 = sbr.rel (!%p17_p8) target bundleno = 4 (0x4), region = 114 }
 0x571   :  { %3184 = vsyncpa [#allocation4], 1 }
 0x572   :  { %3186 = vsyncpa [#allocation4 + $0x1], 1 }
 0x573   :  { %3187 = vsyncpa [#allocation6], 1 }

</bundles_post_ra>
